<compile_context>
chip_gen: v5e
topology: v5e:2x2
jax: 0.10.0
libtpu: 0.0.40
codegen_flags: <defaults>
</compile_context>

<pallas_src>
import numpy as np
import jax
import jax.numpy as jnp
from jax.experimental import pallas as pl
from jax.experimental.pallas import tpu as pltpu

EPS = 1e-5
NEG_SLOPE = 0.01


# ------------------------------ fused kernel --------------------------------

def _disc_fused_kernel(p0e_ref, p0o_ref, g1_ref, g2_ref, wf1_ref,
                       gb1_ref, gb2_ref, gbf1_ref, wf2_ref, bf2_ref, out_ref):
    B = out_ref.shape[0]
    f32 = jnp.float32
    bf16 = jnp.bfloat16

    # ---------------- Conv1 (4x4, s=2, p=1) ---------------------------------
    # Packed input: packed row r holds padded image rows 2r (lanes 0..27) and
    # 2r+1 (lanes 64..91); p0e = packed rows 0,2,...,14 (rows m*B+b), p0o =
    # packed rows 1,3,...,13.  Even / odd conv1 output rows are each two
    # accumulate-matmuls over contiguous row slices (no patch assembly).
    g1a = g1_ref[0:128, :]                       # tap group j=0   (128,256) bf16
    g1b = g1_ref[128:256, :]                     # tap group j=1

    a_e0 = p0e_ref[0:7 * B, :].astype(bf16)      # packed rows 0,2,...,12
    a_e1 = p0e_ref[B:8 * B, :].astype(bf16)      # packed rows 2,4,...,14
    a_o = p0o_ref[...].astype(bf16)              # packed rows 1,3,...,13

    # y1e rows: (oh1=2m, b); y1o rows: (oh1=2m+1, b); lanes: ow1*16 + c1
    y1e = (jnp.dot(a_e0, g1a, preferred_element_type=f32)
           + jnp.dot(a_o, g1b, preferred_element_type=f32))      # (7B,256)
    y1o = (jnp.dot(a_o, g1a, preferred_element_type=f32)
           + jnp.dot(a_e1, g1b, preferred_element_type=f32))     # (7B,256)

    # ---------------- BatchNorm2d(16) (batch stats) + LeakyReLU -------------
    # (conv bias dropped: a per-channel constant cancels in train-mode BN)
    cnt1 = 14.0 * 14.0 * B
    s1 = jnp.sum(y1e, axis=0, keepdims=True) + jnp.sum(y1o, axis=0, keepdims=True)
    q1 = (jnp.sum(y1e * y1e, axis=0, keepdims=True)
          + jnp.sum(y1o * y1o, axis=0, keepdims=True))
    s1c = sum(s1[:, g * 16:(g + 1) * 16] for g in range(14))     # (1,16)
    q1c = sum(q1[:, g * 16:(g + 1) * 16] for g in range(14))
    mean1 = s1c / cnt1
    var1 = jnp.maximum(q1c / cnt1 - mean1 * mean1, 0.0)
    inv1 = jax.lax.rsqrt(var1 + EPS)
    scale1c = gb1_ref[0:1, :] * inv1
    shift1c = gb1_ref[1:2, :] - mean1 * scale1c
    zpad32 = jnp.zeros((1, 32), f32)
    scale1 = jnp.concatenate([scale1c] * 14 + [zpad32], axis=1)  # (1,256)
    shift1 = jnp.concatenate([shift1c] * 14 + [zpad32], axis=1)
    y1e = y1e * scale1 + shift1
    y1o = y1o * scale1 + shift1
    y1e = jnp.where(y1e >= 0, y1e, NEG_SLOPE * y1e)
    y1o = jnp.where(y1o >= 0, y1o, NEG_SLOPE * y1o)

    # ---------------- Conv2 (4x4, s=2, p=1) ---------------------------------
    # Row padding = one zero block prepended (even padded rows) / appended
    # (odd); column padding folded into G2.  Four accumulate-matmuls over
    # contiguous row slices, bf16 operands.
    zblk = jnp.zeros((B, 256), bf16)
    p1e = jnp.concatenate([zblk, y1o.astype(bf16)], axis=0)      # (8B,256): pr=0,2,...,14
    p1o = jnp.concatenate([y1e.astype(bf16), zblk], axis=0)      # (8B,256): pr=1,3,...,15
    y2 = (jnp.dot(p1e[0:7 * B], g2_ref[0:256, :], preferred_element_type=f32)       # kh=0
          + jnp.dot(p1o[0:7 * B], g2_ref[256:512, :], preferred_element_type=f32)   # kh=1
          + jnp.dot(p1e[B:8 * B], g2_ref[512:768, :], preferred_element_type=f32)   # kh=2
          + jnp.dot(p1o[B:8 * B], g2_ref[768:1024, :], preferred_element_type=f32)) # kh=3
    # y2 rows: (oh2, b); lanes: ow2*32 + c2 (lanes 224..255 are exactly zero)

    # ---------------- BatchNorm2d(32) + LeakyReLU ---------------------------
    cnt2 = 7.0 * 7.0 * B
    s2 = jnp.sum(y2, axis=0, keepdims=True)
    q2 = jnp.sum(y2 * y2, axis=0, keepdims=True)
    s2c = sum(s2[:, g * 32:(g + 1) * 32] for g in range(7))      # (1,32)
    q2c = sum(q2[:, g * 32:(g + 1) * 32] for g in range(7))
    mean2 = s2c / cnt2
    var2 = jnp.maximum(q2c / cnt2 - mean2 * mean2, 0.0)
    inv2 = jax.lax.rsqrt(var2 + EPS)
    scale2c = gb2_ref[0:1, :] * inv2
    shift2c = gb2_ref[1:2, :] - mean2 * scale2c
    scale2 = jnp.concatenate([scale2c] * 7 + [zpad32], axis=1)   # (1,256)
    shift2 = jnp.concatenate([shift2c] * 7 + [zpad32], axis=1)
    y2 = y2 * scale2 + shift2
    y2 = jnp.where(y2 >= 0, y2, NEG_SLOPE * y2)

    # ---------------- Flatten + Linear(1568 -> 100, padded to 128) ----------
    # No flatten copy: 7 accumulate-matmuls, one per conv2 output row block.
    z = y2.astype(bf16)                                          # (7B,256)
    h = jnp.dot(z[0:B, :], wf1_ref[0:256, :], preferred_element_type=f32)
    for oh2 in range(1, 7):
        h = h + jnp.dot(z[oh2 * B:(oh2 + 1) * B, :],
                        wf1_ref[oh2 * 256:(oh2 + 1) * 256, :],
                        preferred_element_type=f32)              # (B,128)

    # ---------------- BatchNorm1d(100) + LeakyReLU --------------------------
    mean3 = jnp.sum(h, axis=0, keepdims=True) / B
    var3 = jnp.maximum(jnp.sum(h * h, axis=0, keepdims=True) / B - mean3 * mean3,
                       0.0)
    inv3 = jax.lax.rsqrt(var3 + EPS)
    scale3 = gbf1_ref[0:1, :] * inv3          # zero in the 28 pad lanes
    shift3 = gbf1_ref[1:2, :] - mean3 * scale3
    h = h * scale3 + shift3
    h = jnp.where(h >= 0, h, NEG_SLOPE * h)

    # ---------------- Linear(100, 1) on the VPU/XLU (no N=1 MXU dot) --------
    out_ref[...] = (jnp.sum(h * wf2_ref[...], axis=1, keepdims=True)
                    + bf2_ref[...])


# ------------------------------- parameters ---------------------------------

def init_params(key):
    ks = jax.random.split(key, 16)
    s = 0.1
    p = {}
    p["w1"] = s * jax.random.normal(ks[0], (16, 1, 4, 4), jnp.float32)
    p["b1"] = s * jax.random.normal(ks[1], (16,), jnp.float32)    # cancels in BN
    p["g1"] = 1.0 + s * jax.random.normal(ks[2], (16,), jnp.float32)
    p["be1"] = s * jax.random.normal(ks[3], (16,), jnp.float32)
    p["w2"] = s * jax.random.normal(ks[4], (32, 16, 4, 4), jnp.float32)
    p["b2"] = s * jax.random.normal(ks[5], (32,), jnp.float32)    # cancels in BN
    p["g2"] = 1.0 + s * jax.random.normal(ks[6], (32,), jnp.float32)
    p["be2"] = s * jax.random.normal(ks[7], (32,), jnp.float32)
    # Linear(1568,100) stored as (K, N); row index = PyTorch input feature
    p["wf1"] = s * jax.random.normal(ks[8], (32 * 7 * 7, 100), jnp.float32)
    p["bf1"] = s * jax.random.normal(ks[9], (100,), jnp.float32)  # cancels in BN
    p["gf1"] = 1.0 + s * jax.random.normal(ks[10], (100,), jnp.float32)
    p["bef1"] = s * jax.random.normal(ks[11], (100,), jnp.float32)
    p["wf2"] = s * jax.random.normal(ks[12], (100, 1), jnp.float32)
    p["bf2"] = s * jax.random.normal(ks[13], (1,), jnp.float32)
    return p


def prepare_params(p):
    """One-time host-side weight permutation / banded-matrix construction
    (layout shuffles live on the tiny weights, never on activations)."""
    # --- conv1 banded weights, packed-row layout, bf16 ----------------------
    # G1[128*j + 64*q + ic, 16*ow + c] = w1[c,0, 2*j+q, ic+1-2*ow]
    #   (column padding folded in: only taps hitting real image columns appear)
    w1s = p["w1"][:, 0, :, :]                                    # (16,4,4)
    r = np.arange(256)
    j_r, q_r, ic_r = r // 128, (r % 128) // 64, r % 64
    kh_r = 2 * j_r + q_r
    col = np.arange(256)
    ow_c, c_c = col // 16, col % 16
    kw = ic_r[:, None] + 1 - 2 * ow_c[None, :]
    valid = (kw >= 0) & (kw < 4) & (ow_c[None, :] < 14) & (ic_r[:, None] < 28)
    g1 = jnp.where(valid,
                   w1s[c_c[None, :], kh_r[:, None], np.clip(kw, 0, 3)],
                   0.0).astype(jnp.bfloat16)                     # (256,256)

    # --- conv2 banded weights (one 256x256 block per kh), bf16 --------------
    # G2[kh*256 + 16*ow1 + c1, 32*ow2 + c2] = w2[c2,c1,kh, ow1+1-2*ow2]
    r = np.arange(4 * 256)
    kh_r, rem = r // 256, r % 256
    ow1_r, c1_r = rem // 16, rem % 16
    col = np.arange(256)
    ow2_c, c2_c = col // 32, col % 32
    kw = ow1_r[:, None] + 1 - 2 * ow2_c[None, :]
    valid = (kw >= 0) & (kw < 4) & (ow2_c[None, :] < 7) & (ow1_r[:, None] < 14)
    g2 = jnp.where(valid,
                   p["w2"][c2_c[None, :], c1_r[:, None], kh_r[:, None],
                           np.clip(kw, 0, 3)],
                   0.0).astype(jnp.bfloat16)                     # (1024,256)

    # --- fc1: PyTorch feature c2*49+oh2*7+ow2 -> row oh2*256 + ow2*32 + c2,
    #     output padded 100 -> 128 lanes, bf16 -------------------------------
    w = p["wf1"].reshape(32, 7, 7, 100)                          # [c2,oh2,ow2,n]
    w = jnp.transpose(w, (1, 2, 0, 3))                           # [oh2,ow2,c2,n]
    wf1p = jnp.zeros((7, 8, 32, 128), jnp.float32).at[:, :7, :, :100].set(w)
    wf1p = wf1p.reshape(7 * 256, 128).astype(jnp.bfloat16)       # (1792,128)

    gbf1 = jnp.zeros((2, 128), jnp.float32).at[:, :100].set(
        jnp.stack([p["gf1"], p["bef1"]]))
    wf2 = jnp.zeros((1, 128), jnp.float32).at[0, :100].set(p["wf2"][:, 0])

    # conv/fc1 biases (b1,b2,bf1) cancel under train-mode BatchNorm -> dropped.
    return dict(
        g1=g1, g2=g2, wf1=wf1p,
        gb1=jnp.stack([p["g1"], p["be1"]]),       # (2,16)
        gb2=jnp.stack([p["g2"], p["be2"]]),       # (2,32)
        gbf1=gbf1,                                # (2,128)
        wf2=wf2,                                  # (1,128)
        bf2=p["bf2"].reshape(1, 1).astype(jnp.float32),
    )


# -------------------------------- forward -----------------------------------

def discriminator_forward(x, kp):
    B = x.shape[0]
    # B % 8 keeps f32 row blocks sublane-aligned; B % 16 (used in the demo)
    # additionally keeps the bf16 row-block slices pack-aligned.
    assert B % 8 == 0, "batch must be a multiple of 8 (16 preferred)"

    img = x.reshape(B, 28, 28).astype(jnp.float32)
    # Pack two zero-padded image rows per 128-lane row: packed row r holds
    # padded row 2r at lanes 0..27 and padded row 2r+1 at lanes 64..91; the
    # +1 column padding is folded into G1.  Even/odd packed rows are supplied
    # as separate (row-major, 2-D) operands so the kernel only takes
    # contiguous row slices.
    imgT = jnp.transpose(img, (1, 0, 2))                         # (28,B,28)
    rows = jnp.pad(imgT, ((1, 1), (0, 0), (0, 36)))              # (30,B,64)
    packed = rows.reshape(15, 2, B, 64).transpose(0, 2, 1, 3).reshape(15, B, 128)
    p0e = packed[0::2].reshape(8 * B, 128)                       # packed rows 0,2,...,14
    p0o = packed[1::2].reshape(7 * B, 128)                       # packed rows 1,3,...,13

    macs = B * (14 * 256 * 256 + 4 * 7 * 256 * 256 + 7 * 256 * 128 + 128)
    bytes_acc = int(4 * (p0e.size + p0o.size)
                    + 2 * (kp["g1"].size + kp["g2"].size + kp["wf1"].size)
                    + 4 * (kp["gb1"].size + kp["gb2"].size + kp["gbf1"].size
                           + kp["wf2"].size + 1 + B))
    cost = pl.CostEstimate(flops=2 * macs, transcendentals=176,
                           bytes_accessed=bytes_acc)

    vmem = pl.BlockSpec(memory_space=pltpu.MemorySpace.VMEM)
    return pl.pallas_call(
        _disc_fused_kernel,
        out_shape=jax.ShapeDtypeStruct((B, 1), jnp.float32),
        in_specs=[vmem] * 10,
        out_specs=vmem,
        compiler_params=pltpu.CompilerParams(vmem_limit_bytes=32 * 1024 * 1024),
        cost_estimate=cost,
    )(p0e, p0o, kp["g1"], kp["g2"], kp["wf1"], kp["gb1"], kp["gb2"],
      kp["gbf1"], kp["wf2"], kp["bf2"])


if __name__ == "__main__":
    key = jax.random.PRNGKey(0)
    k_param, k_x = jax.random.split(key)
    params = init_params(k_param)
    kparams = prepare_params(params)          # one-time weight permutation

    B = 16                                    # multiple of 16: bf16 row blocks aligned
    x = jax.random.normal(k_x, (B, 28 * 28), jnp.float32)

    fwd = jax.jit(discriminator_forward)
    out = jax.block_until_ready(fwd(x, kparams))
    assert out.shape == (B, 1), out.shape
    assert bool(jnp.all(jnp.isfinite(out)))
    print("KERNEL_OK")
</pallas_src>

<mosaic_0001>
module attributes {stable_mosaic.version = 11 : i64} {
  func.func @_disc_fused_kernel(%arg0: memref<128x128xf32, #tpu.memory_space<vmem>>, %arg1: memref<112x128xf32, #tpu.memory_space<vmem>>, %arg2: memref<256x256xbf16, #tpu.memory_space<vmem>>, %arg3: memref<1024x256xbf16, #tpu.memory_space<vmem>>, %arg4: memref<1792x128xbf16, #tpu.memory_space<vmem>>, %arg5: memref<2x16xf32, #tpu.memory_space<vmem>>, %arg6: memref<2x32xf32, #tpu.memory_space<vmem>>, %arg7: memref<2x128xf32, #tpu.memory_space<vmem>>, %arg8: memref<1x128xf32, #tpu.memory_space<vmem>>, %arg9: memref<1x1xf32, #tpu.memory_space<vmem>>, %arg10: memref<16x1xf32, #tpu.memory_space<vmem>>) attributes {dimension_semantics = [], scalar_prefetch = 0 : i64, scratch_operands = 0 : i64, tpu.core_type = #tpu.core_type<tc>} {
    %c0 = arith.constant 0 : index
    %c0_0 = arith.constant 0 : index
    %0 = vector.load %arg2[%c0, %c0_0] : memref<256x256xbf16, #tpu.memory_space<vmem>>, vector<128x256xbf16>
    %c128 = arith.constant 128 : index
    %c0_1 = arith.constant 0 : index
    %1 = vector.load %arg2[%c128, %c0_1] : memref<256x256xbf16, #tpu.memory_space<vmem>>, vector<128x256xbf16>
    %c0_2 = arith.constant 0 : index
    %c0_3 = arith.constant 0 : index
    %2 = vector.load %arg0[%c0_2, %c0_3] : memref<128x128xf32, #tpu.memory_space<vmem>>, vector<112x128xf32>
    %3 = arith.truncf %2 : vector<112x128xf32> to vector<112x128xbf16>
    %c16 = arith.constant 16 : index
    %c0_4 = arith.constant 0 : index
    %4 = vector.load %arg0[%c16, %c0_4] : memref<128x128xf32, #tpu.memory_space<vmem>>, vector<112x128xf32>
    %5 = arith.truncf %4 : vector<112x128xf32> to vector<112x128xbf16>
    %c0_5 = arith.constant 0 : index
    %c0_6 = arith.constant 0 : index
    %6 = vector.load %arg1[%c0_5, %c0_6] : memref<112x128xf32, #tpu.memory_space<vmem>>, vector<112x128xf32>
    %7 = arith.truncf %6 : vector<112x128xf32> to vector<112x128xbf16>
    %cst = arith.constant dense<0.000000e+00> : vector<112x256xf32>
    %8 = tpu.matmul %3, %0, %cst {dimension_numbers = #tpu.dot_dimension_numbers<[1], [0], [0], [1], [0, 0, 1, 1], [], []>} : vector<112x128xbf16>, vector<128x256xbf16>, vector<112x256xf32> -> vector<112x256xf32>
    %cst_7 = arith.constant dense<0.000000e+00> : vector<112x256xf32>
    %9 = tpu.matmul %7, %1, %cst_7 {dimension_numbers = #tpu.dot_dimension_numbers<[1], [0], [0], [1], [0, 0, 1, 1], [], []>} : vector<112x128xbf16>, vector<128x256xbf16>, vector<112x256xf32> -> vector<112x256xf32>
    %10 = arith.addf %8, %9 : vector<112x256xf32>
    %cst_8 = arith.constant dense<0.000000e+00> : vector<112x256xf32>
    %11 = tpu.matmul %7, %0, %cst_8 {dimension_numbers = #tpu.dot_dimension_numbers<[1], [0], [0], [1], [0, 0, 1, 1], [], []>} : vector<112x128xbf16>, vector<128x256xbf16>, vector<112x256xf32> -> vector<112x256xf32>
    %cst_9 = arith.constant dense<0.000000e+00> : vector<112x256xf32>
    %12 = tpu.matmul %5, %1, %cst_9 {dimension_numbers = #tpu.dot_dimension_numbers<[1], [0], [0], [1], [0, 0, 1, 1], [], []>} : vector<112x128xbf16>, vector<128x256xbf16>, vector<112x256xf32> -> vector<112x256xf32>
    %13 = arith.addf %11, %12 : vector<112x256xf32>
    %cst_10 = arith.constant dense<0.000000e+00> : vector<256xf32>
    %14 = vector.multi_reduction <add>, %10, %cst_10 [0] : vector<112x256xf32> to vector<256xf32>
    %15 = vector.shape_cast %14 : vector<256xf32> to vector<1x256xf32>
    %cst_11 = arith.constant dense<0.000000e+00> : vector<256xf32>
    %16 = vector.multi_reduction <add>, %13, %cst_11 [0] : vector<112x256xf32> to vector<256xf32>
    %17 = vector.shape_cast %16 : vector<256xf32> to vector<1x256xf32>
    %18 = arith.addf %15, %17 : vector<1x256xf32>
    %19 = arith.mulf %10, %10 : vector<112x256xf32>
    %cst_12 = arith.constant dense<0.000000e+00> : vector<256xf32>
    %20 = vector.multi_reduction <add>, %19, %cst_12 [0] : vector<112x256xf32> to vector<256xf32>
    %21 = vector.shape_cast %20 : vector<256xf32> to vector<1x256xf32>
    %22 = arith.mulf %13, %13 : vector<112x256xf32>
    %cst_13 = arith.constant dense<0.000000e+00> : vector<256xf32>
    %23 = vector.multi_reduction <add>, %22, %cst_13 [0] : vector<112x256xf32> to vector<256xf32>
    %24 = vector.shape_cast %23 : vector<256xf32> to vector<1x256xf32>
    %25 = arith.addf %21, %24 : vector<1x256xf32>
    %26 = vector.extract_strided_slice %18 {offsets = [0, 0], sizes = [1, 16], strides = [1, 1]} : vector<1x256xf32> to vector<1x16xf32>
    %cst_14 = arith.constant 0.000000e+00 : f32
    %27 = vector.broadcast %cst_14 : f32 to vector<1x16xf32>
    %28 = arith.addf %27, %26 : vector<1x16xf32>
    %29 = vector.extract_strided_slice %18 {offsets = [0, 16], sizes = [1, 16], strides = [1, 1]} : vector<1x256xf32> to vector<1x16xf32>
    %30 = arith.addf %28, %29 : vector<1x16xf32>
    %31 = vector.extract_strided_slice %18 {offsets = [0, 32], sizes = [1, 16], strides = [1, 1]} : vector<1x256xf32> to vector<1x16xf32>
    %32 = arith.addf %30, %31 : vector<1x16xf32>
    %33 = vector.extract_strided_slice %18 {offsets = [0, 48], sizes = [1, 16], strides = [1, 1]} : vector<1x256xf32> to vector<1x16xf32>
    %34 = arith.addf %32, %33 : vector<1x16xf32>
    %35 = vector.extract_strided_slice %18 {offsets = [0, 64], sizes = [1, 16], strides = [1, 1]} : vector<1x256xf32> to vector<1x16xf32>
    %36 = arith.addf %34, %35 : vector<1x16xf32>
    %37 = vector.extract_strided_slice %18 {offsets = [0, 80], sizes = [1, 16], strides = [1, 1]} : vector<1x256xf32> to vector<1x16xf32>
    %38 = arith.addf %36, %37 : vector<1x16xf32>
    %39 = vector.extract_strided_slice %18 {offsets = [0, 96], sizes = [1, 16], strides = [1, 1]} : vector<1x256xf32> to vector<1x16xf32>
    %40 = arith.addf %38, %39 : vector<1x16xf32>
    %41 = vector.extract_strided_slice %18 {offsets = [0, 112], sizes = [1, 16], strides = [1, 1]} : vector<1x256xf32> to vector<1x16xf32>
    %42 = arith.addf %40, %41 : vector<1x16xf32>
    %43 = vector.extract_strided_slice %18 {offsets = [0, 128], sizes = [1, 16], strides = [1, 1]} : vector<1x256xf32> to vector<1x16xf32>
    %44 = arith.addf %42, %43 : vector<1x16xf32>
    %45 = vector.extract_strided_slice %18 {offsets = [0, 144], sizes = [1, 16], strides = [1, 1]} : vector<1x256xf32> to vector<1x16xf32>
    %46 = arith.addf %44, %45 : vector<1x16xf32>
    %47 = vector.extract_strided_slice %18 {offsets = [0, 160], sizes = [1, 16], strides = [1, 1]} : vector<1x256xf32> to vector<1x16xf32>
    %48 = arith.addf %46, %47 : vector<1x16xf32>
    %49 = vector.extract_strided_slice %18 {offsets = [0, 176], sizes = [1, 16], strides = [1, 1]} : vector<1x256xf32> to vector<1x16xf32>
    %50 = arith.addf %48, %49 : vector<1x16xf32>
    %51 = vector.extract_strided_slice %18 {offsets = [0, 192], sizes = [1, 16], strides = [1, 1]} : vector<1x256xf32> to vector<1x16xf32>
    %52 = arith.addf %50, %51 : vector<1x16xf32>
    %53 = vector.extract_strided_slice %18 {offsets = [0, 208], sizes = [1, 16], strides = [1, 1]} : vector<1x256xf32> to vector<1x16xf32>
    %54 = arith.addf %52, %53 : vector<1x16xf32>
    %55 = vector.extract_strided_slice %25 {offsets = [0, 0], sizes = [1, 16], strides = [1, 1]} : vector<1x256xf32> to vector<1x16xf32>
    %cst_15 = arith.constant 0.000000e+00 : f32
    %56 = vector.broadcast %cst_15 : f32 to vector<1x16xf32>
    %57 = arith.addf %56, %55 : vector<1x16xf32>
    %58 = vector.extract_strided_slice %25 {offsets = [0, 16], sizes = [1, 16], strides = [1, 1]} : vector<1x256xf32> to vector<1x16xf32>
    %59 = arith.addf %57, %58 : vector<1x16xf32>
    %60 = vector.extract_strided_slice %25 {offsets = [0, 32], sizes = [1, 16], strides = [1, 1]} : vector<1x256xf32> to vector<1x16xf32>
    %61 = arith.addf %59, %60 : vector<1x16xf32>
    %62 = vector.extract_strided_slice %25 {offsets = [0, 48], sizes = [1, 16], strides = [1, 1]} : vector<1x256xf32> to vector<1x16xf32>
    %63 = arith.addf %61, %62 : vector<1x16xf32>
    %64 = vector.extract_strided_slice %25 {offsets = [0, 64], sizes = [1, 16], strides = [1, 1]} : vector<1x256xf32> to vector<1x16xf32>
    %65 = arith.addf %63, %64 : vector<1x16xf32>
    %66 = vector.extract_strided_slice %25 {offsets = [0, 80], sizes = [1, 16], strides = [1, 1]} : vector<1x256xf32> to vector<1x16xf32>
    %67 = arith.addf %65, %66 : vector<1x16xf32>
    %68 = vector.extract_strided_slice %25 {offsets = [0, 96], sizes = [1, 16], strides = [1, 1]} : vector<1x256xf32> to vector<1x16xf32>
    %69 = arith.addf %67, %68 : vector<1x16xf32>
    %70 = vector.extract_strided_slice %25 {offsets = [0, 112], sizes = [1, 16], strides = [1, 1]} : vector<1x256xf32> to vector<1x16xf32>
    %71 = arith.addf %69, %70 : vector<1x16xf32>
    %72 = vector.extract_strided_slice %25 {offsets = [0, 128], sizes = [1, 16], strides = [1, 1]} : vector<1x256xf32> to vector<1x16xf32>
    %73 = arith.addf %71, %72 : vector<1x16xf32>
    %74 = vector.extract_strided_slice %25 {offsets = [0, 144], sizes = [1, 16], strides = [1, 1]} : vector<1x256xf32> to vector<1x16xf32>
    %75 = arith.addf %73, %74 : vector<1x16xf32>
    %76 = vector.extract_strided_slice %25 {offsets = [0, 160], sizes = [1, 16], strides = [1, 1]} : vector<1x256xf32> to vector<1x16xf32>
    %77 = arith.addf %75, %76 : vector<1x16xf32>
    %78 = vector.extract_strided_slice %25 {offsets = [0, 176], sizes = [1, 16], strides = [1, 1]} : vector<1x256xf32> to vector<1x16xf32>
    %79 = arith.addf %77, %78 : vector<1x16xf32>
    %80 = vector.extract_strided_slice %25 {offsets = [0, 192], sizes = [1, 16], strides = [1, 1]} : vector<1x256xf32> to vector<1x16xf32>
    %81 = arith.addf %79, %80 : vector<1x16xf32>
    %82 = vector.extract_strided_slice %25 {offsets = [0, 208], sizes = [1, 16], strides = [1, 1]} : vector<1x256xf32> to vector<1x16xf32>
    %83 = arith.addf %81, %82 : vector<1x16xf32>
    %cst_16 = arith.constant 3.136000e+03 : f32
    %84 = vector.broadcast %cst_16 : f32 to vector<1x16xf32>
    %85 = arith.divf %54, %84 : vector<1x16xf32>
    %cst_17 = arith.constant 3.136000e+03 : f32
    %86 = vector.broadcast %cst_17 : f32 to vector<1x16xf32>
    %87 = arith.divf %83, %86 : vector<1x16xf32>
    %88 = arith.mulf %85, %85 : vector<1x16xf32>
    %89 = arith.subf %87, %88 : vector<1x16xf32>
    %cst_18 = arith.constant 0.000000e+00 : f32
    %90 = vector.broadcast %cst_18 : f32 to vector<1x16xf32>
    %91 = arith.maximumf %89, %90 : vector<1x16xf32>
    %cst_19 = arith.constant 9.99999974E-6 : f32
    %92 = vector.broadcast %cst_19 : f32 to vector<1x16xf32>
    %93 = arith.addf %91, %92 : vector<1x16xf32>
    %94 = math.rsqrt %93 : vector<1x16xf32>
    %c0_20 = arith.constant 0 : index
    %c0_21 = arith.constant 0 : index
    %95 = vector.load %arg5[%c0_20, %c0_21] : memref<2x16xf32, #tpu.memory_space<vmem>>, vector<1x16xf32>
    %96 = arith.mulf %95, %94 : vector<1x16xf32>
    %c1 = arith.constant 1 : index
    %c0_22 = arith.constant 0 : index
    %97 = vector.load %arg5[%c1, %c0_22] : memref<2x16xf32, #tpu.memory_space<vmem>>, vector<1x16xf32>
    %98 = arith.mulf %85, %96 : vector<1x16xf32>
    %99 = arith.subf %97, %98 : vector<1x16xf32>
    %cst_23 = arith.constant 0.000000e+00 : f32
    %100 = vector.broadcast %cst_23 : f32 to vector<1x32xf32>
    %101 = tpu.concatenate %96, %96, %96, %96, %96, %96, %96, %96, %96, %96, %96, %96, %96, %96, %100 in 1 : vector<1x16xf32>, vector<1x16xf32>, vector<1x16xf32>, vector<1x16xf32>, vector<1x16xf32>, vector<1x16xf32>, vector<1x16xf32>, vector<1x16xf32>, vector<1x16xf32>, vector<1x16xf32>, vector<1x16xf32>, vector<1x16xf32>, vector<1x16xf32>, vector<1x16xf32>, vector<1x32xf32> -> vector<1x256xf32>
    %102 = tpu.concatenate %99, %99, %99, %99, %99, %99, %99, %99, %99, %99, %99, %99, %99, %99, %100 in 1 : vector<1x16xf32>, vector<1x16xf32>, vector<1x16xf32>, vector<1x16xf32>, vector<1x16xf32>, vector<1x16xf32>, vector<1x16xf32>, vector<1x16xf32>, vector<1x16xf32>, vector<1x16xf32>, vector<1x16xf32>, vector<1x16xf32>, vector<1x16xf32>, vector<1x16xf32>, vector<1x32xf32> -> vector<1x256xf32>
    %103 = vector.broadcast %101 : vector<1x256xf32> to vector<112x256xf32>
    %104 = arith.mulf %10, %103 : vector<112x256xf32>
    %105 = vector.broadcast %102 : vector<1x256xf32> to vector<112x256xf32>
    %106 = arith.addf %104, %105 : vector<112x256xf32>
    %107 = vector.broadcast %101 : vector<1x256xf32> to vector<112x256xf32>
    %108 = arith.mulf %13, %107 : vector<112x256xf32>
    %109 = vector.broadcast %102 : vector<1x256xf32> to vector<112x256xf32>
    %110 = arith.addf %108, %109 : vector<112x256xf32>
    %cst_24 = arith.constant 0.000000e+00 : f32
    %111 = vector.broadcast %cst_24 : f32 to vector<112x256xf32>
    %112 = arith.cmpf oge, %106, %111 : vector<112x256xf32>
    %cst_25 = arith.constant 0.00999999977 : f32
    %113 = vector.broadcast %cst_25 : f32 to vector<112x256xf32>
    %114 = arith.mulf %113, %106 : vector<112x256xf32>
    %115 = arith.select %112, %106, %114 : vector<112x256xi1>, vector<112x256xf32>
    %cst_26 = arith.constant 0.000000e+00 : f32
    %116 = vector.broadcast %cst_26 : f32 to vector<112x256xf32>
    %117 = arith.cmpf oge, %110, %116 : vector<112x256xf32>
    %cst_27 = arith.constant 0.00999999977 : f32
    %118 = vector.broadcast %cst_27 : f32 to vector<112x256xf32>
    %119 = arith.mulf %118, %110 : vector<112x256xf32>
    %120 = arith.select %117, %110, %119 : vector<112x256xi1>, vector<112x256xf32>
    %cst_28 = arith.constant 0.000000e+00 : bf16
    %121 = vector.broadcast %cst_28 : bf16 to vector<16x256xbf16>
    %122 = arith.truncf %120 : vector<112x256xf32> to vector<112x256xbf16>
    %123 = tpu.concatenate %121, %122 in 0 : vector<16x256xbf16>, vector<112x256xbf16> -> vector<128x256xbf16>
    %124 = arith.truncf %115 : vector<112x256xf32> to vector<112x256xbf16>
    %125 = tpu.concatenate %124, %121 in 0 : vector<112x256xbf16>, vector<16x256xbf16> -> vector<128x256xbf16>
    %126 = vector.extract_strided_slice %123 {offsets = [0, 0], sizes = [112, 256], strides = [1, 1]} : vector<128x256xbf16> to vector<112x256xbf16>
    %c0_29 = arith.constant 0 : index
    %c0_30 = arith.constant 0 : index
    %127 = vector.load %arg3[%c0_29, %c0_30] : memref<1024x256xbf16, #tpu.memory_space<vmem>>, vector<256x256xbf16>
    %cst_31 = arith.constant dense<0.000000e+00> : vector<112x256xf32>
    %128 = tpu.matmul %126, %127, %cst_31 {dimension_numbers = #tpu.dot_dimension_numbers<[1], [0], [0], [1], [0, 0, 1, 1], [], []>} : vector<112x256xbf16>, vector<256x256xbf16>, vector<112x256xf32> -> vector<112x256xf32>
    %129 = vector.extract_strided_slice %125 {offsets = [0, 0], sizes = [112, 256], strides = [1, 1]} : vector<128x256xbf16> to vector<112x256xbf16>
    %c256 = arith.constant 256 : index
    %c0_32 = arith.constant 0 : index
    %130 = vector.load %arg3[%c256, %c0_32] : memref<1024x256xbf16, #tpu.memory_space<vmem>>, vector<256x256xbf16>
    %cst_33 = arith.constant dense<0.000000e+00> : vector<112x256xf32>
    %131 = tpu.matmul %129, %130, %cst_33 {dimension_numbers = #tpu.dot_dimension_numbers<[1], [0], [0], [1], [0, 0, 1, 1], [], []>} : vector<112x256xbf16>, vector<256x256xbf16>, vector<112x256xf32> -> vector<112x256xf32>
    %132 = arith.addf %128, %131 : vector<112x256xf32>
    %133 = vector.extract_strided_slice %123 {offsets = [16, 0], sizes = [112, 256], strides = [1, 1]} : vector<128x256xbf16> to vector<112x256xbf16>
    %c512 = arith.constant 512 : index
    %c0_34 = arith.constant 0 : index
    %134 = vector.load %arg3[%c512, %c0_34] : memref<1024x256xbf16, #tpu.memory_space<vmem>>, vector<256x256xbf16>
    %cst_35 = arith.constant dense<0.000000e+00> : vector<112x256xf32>
    %135 = tpu.matmul %133, %134, %cst_35 {dimension_numbers = #tpu.dot_dimension_numbers<[1], [0], [0], [1], [0, 0, 1, 1], [], []>} : vector<112x256xbf16>, vector<256x256xbf16>, vector<112x256xf32> -> vector<112x256xf32>
    %136 = arith.addf %132, %135 : vector<112x256xf32>
    %137 = vector.extract_strided_slice %125 {offsets = [16, 0], sizes = [112, 256], strides = [1, 1]} : vector<128x256xbf16> to vector<112x256xbf16>
    %c768 = arith.constant 768 : index
    %c0_36 = arith.constant 0 : index
    %138 = vector.load %arg3[%c768, %c0_36] : memref<1024x256xbf16, #tpu.memory_space<vmem>>, vector<256x256xbf16>
    %cst_37 = arith.constant dense<0.000000e+00> : vector<112x256xf32>
    %139 = tpu.matmul %137, %138, %cst_37 {dimension_numbers = #tpu.dot_dimension_numbers<[1], [0], [0], [1], [0, 0, 1, 1], [], []>} : vector<112x256xbf16>, vector<256x256xbf16>, vector<112x256xf32> -> vector<112x256xf32>
    %140 = arith.addf %136, %139 : vector<112x256xf32>
    %cst_38 = arith.constant dense<0.000000e+00> : vector<256xf32>
    %141 = vector.multi_reduction <add>, %140, %cst_38 [0] : vector<112x256xf32> to vector<256xf32>
    %142 = vector.shape_cast %141 : vector<256xf32> to vector<1x256xf32>
    %143 = arith.mulf %140, %140 : vector<112x256xf32>
    %cst_39 = arith.constant dense<0.000000e+00> : vector<256xf32>
    %144 = vector.multi_reduction <add>, %143, %cst_39 [0] : vector<112x256xf32> to vector<256xf32>
    %145 = vector.shape_cast %144 : vector<256xf32> to vector<1x256xf32>
    %146 = vector.extract_strided_slice %142 {offsets = [0, 0], sizes = [1, 32], strides = [1, 1]} : vector<1x256xf32> to vector<1x32xf32>
    %cst_40 = arith.constant 0.000000e+00 : f32
    %147 = vector.broadcast %cst_40 : f32 to vector<1x32xf32>
    %148 = arith.addf %147, %146 : vector<1x32xf32>
    %149 = vector.extract_strided_slice %142 {offsets = [0, 32], sizes = [1, 32], strides = [1, 1]} : vector<1x256xf32> to vector<1x32xf32>
    %150 = arith.addf %148, %149 : vector<1x32xf32>
    %151 = vector.extract_strided_slice %142 {offsets = [0, 64], sizes = [1, 32], strides = [1, 1]} : vector<1x256xf32> to vector<1x32xf32>
    %152 = arith.addf %150, %151 : vector<1x32xf32>
    %153 = vector.extract_strided_slice %142 {offsets = [0, 96], sizes = [1, 32], strides = [1, 1]} : vector<1x256xf32> to vector<1x32xf32>
    %154 = arith.addf %152, %153 : vector<1x32xf32>
    %155 = vector.extract_strided_slice %142 {offsets = [0, 128], sizes = [1, 32], strides = [1, 1]} : vector<1x256xf32> to vector<1x32xf32>
    %156 = arith.addf %154, %155 : vector<1x32xf32>
    %157 = vector.extract_strided_slice %142 {offsets = [0, 160], sizes = [1, 32], strides = [1, 1]} : vector<1x256xf32> to vector<1x32xf32>
    %158 = arith.addf %156, %157 : vector<1x32xf32>
    %159 = vector.extract_strided_slice %142 {offsets = [0, 192], sizes = [1, 32], strides = [1, 1]} : vector<1x256xf32> to vector<1x32xf32>
    %160 = arith.addf %158, %159 : vector<1x32xf32>
    %161 = vector.extract_strided_slice %145 {offsets = [0, 0], sizes = [1, 32], strides = [1, 1]} : vector<1x256xf32> to vector<1x32xf32>
    %cst_41 = arith.constant 0.000000e+00 : f32
    %162 = vector.broadcast %cst_41 : f32 to vector<1x32xf32>
    %163 = arith.addf %162, %161 : vector<1x32xf32>
    %164 = vector.extract_strided_slice %145 {offsets = [0, 32], sizes = [1, 32], strides = [1, 1]} : vector<1x256xf32> to vector<1x32xf32>
    %165 = arith.addf %163, %164 : vector<1x32xf32>
    %166 = vector.extract_strided_slice %145 {offsets = [0, 64], sizes = [1, 32], strides = [1, 1]} : vector<1x256xf32> to vector<1x32xf32>
    %167 = arith.addf %165, %166 : vector<1x32xf32>
    %168 = vector.extract_strided_slice %145 {offsets = [0, 96], sizes = [1, 32], strides = [1, 1]} : vector<1x256xf32> to vector<1x32xf32>
    %169 = arith.addf %167, %168 : vector<1x32xf32>
    %170 = vector.extract_strided_slice %145 {offsets = [0, 128], sizes = [1, 32], strides = [1, 1]} : vector<1x256xf32> to vector<1x32xf32>
    %171 = arith.addf %169, %170 : vector<1x32xf32>
    %172 = vector.extract_strided_slice %145 {offsets = [0, 160], sizes = [1, 32], strides = [1, 1]} : vector<1x256xf32> to vector<1x32xf32>
    %173 = arith.addf %171, %172 : vector<1x32xf32>
    %174 = vector.extract_strided_slice %145 {offsets = [0, 192], sizes = [1, 32], strides = [1, 1]} : vector<1x256xf32> to vector<1x32xf32>
    %175 = arith.addf %173, %174 : vector<1x32xf32>
    %cst_42 = arith.constant 7.840000e+02 : f32
    %176 = vector.broadcast %cst_42 : f32 to vector<1x32xf32>
    %177 = arith.divf %160, %176 : vector<1x32xf32>
    %cst_43 = arith.constant 7.840000e+02 : f32
    %178 = vector.broadcast %cst_43 : f32 to vector<1x32xf32>
    %179 = arith.divf %175, %178 : vector<1x32xf32>
    %180 = arith.mulf %177, %177 : vector<1x32xf32>
    %181 = arith.subf %179, %180 : vector<1x32xf32>
    %cst_44 = arith.constant 0.000000e+00 : f32
    %182 = vector.broadcast %cst_44 : f32 to vector<1x32xf32>
    %183 = arith.maximumf %181, %182 : vector<1x32xf32>
    %cst_45 = arith.constant 9.99999974E-6 : f32
    %184 = vector.broadcast %cst_45 : f32 to vector<1x32xf32>
    %185 = arith.addf %183, %184 : vector<1x32xf32>
    %186 = math.rsqrt %185 : vector<1x32xf32>
    %c0_46 = arith.constant 0 : index
    %c0_47 = arith.constant 0 : index
    %187 = vector.load %arg6[%c0_46, %c0_47] : memref<2x32xf32, #tpu.memory_space<vmem>>, vector<1x32xf32>
    %188 = arith.mulf %187, %186 : vector<1x32xf32>
    %c1_48 = arith.constant 1 : index
    %c0_49 = arith.constant 0 : index
    %189 = vector.load %arg6[%c1_48, %c0_49] : memref<2x32xf32, #tpu.memory_space<vmem>>, vector<1x32xf32>
    %190 = arith.mulf %177, %188 : vector<1x32xf32>
    %191 = arith.subf %189, %190 : vector<1x32xf32>
    %192 = tpu.concatenate %188, %188, %188, %188, %188, %188, %188, %100 in 1 : vector<1x32xf32>, vector<1x32xf32>, vector<1x32xf32>, vector<1x32xf32>, vector<1x32xf32>, vector<1x32xf32>, vector<1x32xf32>, vector<1x32xf32> -> vector<1x256xf32>
    %193 = tpu.concatenate %191, %191, %191, %191, %191, %191, %191, %100 in 1 : vector<1x32xf32>, vector<1x32xf32>, vector<1x32xf32>, vector<1x32xf32>, vector<1x32xf32>, vector<1x32xf32>, vector<1x32xf32>, vector<1x32xf32> -> vector<1x256xf32>
    %194 = vector.broadcast %192 : vector<1x256xf32> to vector<112x256xf32>
    %195 = arith.mulf %140, %194 : vector<112x256xf32>
    %196 = vector.broadcast %193 : vector<1x256xf32> to vector<112x256xf32>
    %197 = arith.addf %195, %196 : vector<112x256xf32>
    %cst_50 = arith.constant 0.000000e+00 : f32
    %198 = vector.broadcast %cst_50 : f32 to vector<112x256xf32>
    %199 = arith.cmpf oge, %197, %198 : vector<112x256xf32>
    %cst_51 = arith.constant 0.00999999977 : f32
    %200 = vector.broadcast %cst_51 : f32 to vector<112x256xf32>
    %201 = arith.mulf %200, %197 : vector<112x256xf32>
    %202 = arith.select %199, %197, %201 : vector<112x256xi1>, vector<112x256xf32>
    %203 = arith.truncf %202 : vector<112x256xf32> to vector<112x256xbf16>
    %204 = vector.extract_strided_slice %203 {offsets = [0, 0], sizes = [16, 256], strides = [1, 1]} : vector<112x256xbf16> to vector<16x256xbf16>
    %c0_52 = arith.constant 0 : index
    %c0_53 = arith.constant 0 : index
    %205 = vector.load %arg4[%c0_52, %c0_53] : memref<1792x128xbf16, #tpu.memory_space<vmem>>, vector<256x128xbf16>
    %cst_54 = arith.constant dense<0.000000e+00> : vector<16x128xf32>
    %206 = tpu.matmul %204, %205, %cst_54 {dimension_numbers = #tpu.dot_dimension_numbers<[1], [0], [0], [1], [0, 0, 1, 1], [], []>} : vector<16x256xbf16>, vector<256x128xbf16>, vector<16x128xf32> -> vector<16x128xf32>
    %207 = vector.extract_strided_slice %203 {offsets = [16, 0], sizes = [16, 256], strides = [1, 1]} : vector<112x256xbf16> to vector<16x256xbf16>
    %c256_55 = arith.constant 256 : index
    %c0_56 = arith.constant 0 : index
    %208 = vector.load %arg4[%c256_55, %c0_56] : memref<1792x128xbf16, #tpu.memory_space<vmem>>, vector<256x128xbf16>
    %cst_57 = arith.constant dense<0.000000e+00> : vector<16x128xf32>
    %209 = tpu.matmul %207, %208, %cst_57 {dimension_numbers = #tpu.dot_dimension_numbers<[1], [0], [0], [1], [0, 0, 1, 1], [], []>} : vector<16x256xbf16>, vector<256x128xbf16>, vector<16x128xf32> -> vector<16x128xf32>
    %210 = arith.addf %206, %209 : vector<16x128xf32>
    %211 = vector.extract_strided_slice %203 {offsets = [32, 0], sizes = [16, 256], strides = [1, 1]} : vector<112x256xbf16> to vector<16x256xbf16>
    %c512_58 = arith.constant 512 : index
    %c0_59 = arith.constant 0 : index
    %212 = vector.load %arg4[%c512_58, %c0_59] : memref<1792x128xbf16, #tpu.memory_space<vmem>>, vector<256x128xbf16>
    %cst_60 = arith.constant dense<0.000000e+00> : vector<16x128xf32>
    %213 = tpu.matmul %211, %212, %cst_60 {dimension_numbers = #tpu.dot_dimension_numbers<[1], [0], [0], [1], [0, 0, 1, 1], [], []>} : vector<16x256xbf16>, vector<256x128xbf16>, vector<16x128xf32> -> vector<16x128xf32>
    %214 = arith.addf %210, %213 : vector<16x128xf32>
    %215 = vector.extract_strided_slice %203 {offsets = [48, 0], sizes = [16, 256], strides = [1, 1]} : vector<112x256xbf16> to vector<16x256xbf16>
    %c768_61 = arith.constant 768 : index
    %c0_62 = arith.constant 0 : index
    %216 = vector.load %arg4[%c768_61, %c0_62] : memref<1792x128xbf16, #tpu.memory_space<vmem>>, vector<256x128xbf16>
    %cst_63 = arith.constant dense<0.000000e+00> : vector<16x128xf32>
    %217 = tpu.matmul %215, %216, %cst_63 {dimension_numbers = #tpu.dot_dimension_numbers<[1], [0], [0], [1], [0, 0, 1, 1], [], []>} : vector<16x256xbf16>, vector<256x128xbf16>, vector<16x128xf32> -> vector<16x128xf32>
    %218 = arith.addf %214, %217 : vector<16x128xf32>
    %219 = vector.extract_strided_slice %203 {offsets = [64, 0], sizes = [16, 256], strides = [1, 1]} : vector<112x256xbf16> to vector<16x256xbf16>
    %c1024 = arith.constant 1024 : index
    %c0_64 = arith.constant 0 : index
    %220 = vector.load %arg4[%c1024, %c0_64] : memref<1792x128xbf16, #tpu.memory_space<vmem>>, vector<256x128xbf16>
    %cst_65 = arith.constant dense<0.000000e+00> : vector<16x128xf32>
    %221 = tpu.matmul %219, %220, %cst_65 {dimension_numbers = #tpu.dot_dimension_numbers<[1], [0], [0], [1], [0, 0, 1, 1], [], []>} : vector<16x256xbf16>, vector<256x128xbf16>, vector<16x128xf32> -> vector<16x128xf32>
    %222 = arith.addf %218, %221 : vector<16x128xf32>
    %223 = vector.extract_strided_slice %203 {offsets = [80, 0], sizes = [16, 256], strides = [1, 1]} : vector<112x256xbf16> to vector<16x256xbf16>
    %c1280 = arith.constant 1280 : index
    %c0_66 = arith.constant 0 : index
    %224 = vector.load %arg4[%c1280, %c0_66] : memref<1792x128xbf16, #tpu.memory_space<vmem>>, vector<256x128xbf16>
    %cst_67 = arith.constant dense<0.000000e+00> : vector<16x128xf32>
    %225 = tpu.matmul %223, %224, %cst_67 {dimension_numbers = #tpu.dot_dimension_numbers<[1], [0], [0], [1], [0, 0, 1, 1], [], []>} : vector<16x256xbf16>, vector<256x128xbf16>, vector<16x128xf32> -> vector<16x128xf32>
    %226 = arith.addf %222, %225 : vector<16x128xf32>
    %227 = vector.extract_strided_slice %203 {offsets = [96, 0], sizes = [16, 256], strides = [1, 1]} : vector<112x256xbf16> to vector<16x256xbf16>
    %c1536 = arith.constant 1536 : index
    %c0_68 = arith.constant 0 : index
    %228 = vector.load %arg4[%c1536, %c0_68] : memref<1792x128xbf16, #tpu.memory_space<vmem>>, vector<256x128xbf16>
    %cst_69 = arith.constant dense<0.000000e+00> : vector<16x128xf32>
    %229 = tpu.matmul %227, %228, %cst_69 {dimension_numbers = #tpu.dot_dimension_numbers<[1], [0], [0], [1], [0, 0, 1, 1], [], []>} : vector<16x256xbf16>, vector<256x128xbf16>, vector<16x128xf32> -> vector<16x128xf32>
    %230 = arith.addf %226, %229 : vector<16x128xf32>
    %cst_70 = arith.constant dense<0.000000e+00> : vector<128xf32>
    %231 = vector.multi_reduction <add>, %230, %cst_70 [0] : vector<16x128xf32> to vector<128xf32>
    %232 = vector.shape_cast %231 : vector<128xf32> to vector<1x128xf32>
    %cst_71 = arith.constant 1.600000e+01 : f32
    %233 = vector.broadcast %cst_71 : f32 to vector<1x128xf32>
    %234 = arith.divf %232, %233 : vector<1x128xf32>
    %235 = arith.mulf %230, %230 : vector<16x128xf32>
    %cst_72 = arith.constant dense<0.000000e+00> : vector<128xf32>
    %236 = vector.multi_reduction <add>, %235, %cst_72 [0] : vector<16x128xf32> to vector<128xf32>
    %237 = vector.shape_cast %236 : vector<128xf32> to vector<1x128xf32>
    %cst_73 = arith.constant 1.600000e+01 : f32
    %238 = vector.broadcast %cst_73 : f32 to vector<1x128xf32>
    %239 = arith.divf %237, %238 : vector<1x128xf32>
    %240 = arith.mulf %234, %234 : vector<1x128xf32>
    %241 = arith.subf %239, %240 : vector<1x128xf32>
    %cst_74 = arith.constant 0.000000e+00 : f32
    %242 = vector.broadcast %cst_74 : f32 to vector<1x128xf32>
    %243 = arith.maximumf %241, %242 : vector<1x128xf32>
    %cst_75 = arith.constant 9.99999974E-6 : f32
    %244 = vector.broadcast %cst_75 : f32 to vector<1x128xf32>
    %245 = arith.addf %243, %244 : vector<1x128xf32>
    %246 = math.rsqrt %245 : vector<1x128xf32>
    %c0_76 = arith.constant 0 : index
    %c0_77 = arith.constant 0 : index
    %247 = vector.load %arg7[%c0_76, %c0_77] : memref<2x128xf32, #tpu.memory_space<vmem>>, vector<1x128xf32>
    %248 = arith.mulf %247, %246 : vector<1x128xf32>
    %c1_78 = arith.constant 1 : index
    %c0_79 = arith.constant 0 : index
    %249 = vector.load %arg7[%c1_78, %c0_79] : memref<2x128xf32, #tpu.memory_space<vmem>>, vector<1x128xf32>
    %250 = arith.mulf %234, %248 : vector<1x128xf32>
    %251 = arith.subf %249, %250 : vector<1x128xf32>
    %252 = vector.broadcast %248 : vector<1x128xf32> to vector<16x128xf32>
    %253 = arith.mulf %230, %252 : vector<16x128xf32>
    %254 = vector.broadcast %251 : vector<1x128xf32> to vector<16x128xf32>
    %255 = arith.addf %253, %254 : vector<16x128xf32>
    %cst_80 = arith.constant 0.000000e+00 : f32
    %256 = vector.broadcast %cst_80 : f32 to vector<16x128xf32>
    %257 = arith.cmpf oge, %255, %256 : vector<16x128xf32>
    %cst_81 = arith.constant 0.00999999977 : f32
    %258 = vector.broadcast %cst_81 : f32 to vector<16x128xf32>
    %259 = arith.mulf %258, %255 : vector<16x128xf32>
    %260 = arith.select %257, %255, %259 : vector<16x128xi1>, vector<16x128xf32>
    %c0_82 = arith.constant 0 : index
    %c0_83 = arith.constant 0 : index
    %261 = vector.load %arg8[%c0_82, %c0_83] : memref<1x128xf32, #tpu.memory_space<vmem>>, vector<1x128xf32>
    %262 = vector.broadcast %261 : vector<1x128xf32> to vector<16x128xf32>
    %263 = arith.mulf %260, %262 : vector<16x128xf32>
    %cst_84 = arith.constant dense<0.000000e+00> : vector<16xf32>
    %264 = vector.multi_reduction <add>, %263, %cst_84 [1] : vector<16x128xf32> to vector<16xf32>
    %265 = vector.shape_cast %264 : vector<16xf32> to vector<16x1xf32>
    %c0_85 = arith.constant 0 : index
    %c0_86 = arith.constant 0 : index
    %266 = vector.load %arg9[%c0_85, %c0_86] : memref<1x1xf32, #tpu.memory_space<vmem>>, vector<1x1xf32>
    %267 = vector.broadcast %266 : vector<1x1xf32> to vector<16x1xf32>
    %268 = arith.addf %265, %267 : vector<16x1xf32>
    %c0_87 = arith.constant 0 : index
    %c0_88 = arith.constant 0 : index
    %269 = vector.load %arg10[%c0_87, %c0_88] : memref<16x1xf32, #tpu.memory_space<vmem>>, vector<16x1xf32>
    tpu.vector_store %arg10[%c0_87, %c0_88], %268 {strides = array<i32>} : memref<16x1xf32, #tpu.memory_space<vmem>>, vector<16x1xf32>,
    return
  }
}

</mosaic_0001>

<bundles_post_ra>
// kernel: discriminator_forward.1
= control target key start
LH: loop header
LB: loop body
LE: loop exit
PB: predicated region body
PF: predicated region fallthrough
CT: control target
= control target key end

     0   :  { %s6039_s17 = smov 80   ;;  %s6040_s18 = smov 112   ;;  %vm1011_vm4 = vcmask 130048   ;;  %vm1013_vm5 = vcmask 261120   ;;  %vm1015_vm6 = vcmask 392192   ;;  %vm1017_vm7 = vcmask 523264   ;;  %s9193_s2 = inlined_call_operand.vmem [shape: bf16[256,256], index: 2, kind: input, shape index: {}]   ;;  %s9194_s1 = inlined_call_operand.vmem [shape: f32[112,128], index: 1, kind: input, shape index: {}]   ;;  %s9195_s0 = inlined_call_operand.vmem [shape: f32[128,128], index: 0, kind: input, shape index: {}]   ;;  %s9196_s5 = inlined_call_operand.vmem [shape: f32[2,16], index: 5, kind: input, shape index: {}]   ;;  %s9197_s3 = inlined_call_operand.vmem [shape: bf16[1024,256], index: 3, kind: input, shape index: {}]   ;;  %s9198_s4 = inlined_call_operand.vmem [shape: bf16[1792,128], index: 4, kind: input, shape index: {}]   ;;  %s9199_s6 = inlined_call_operand.vmem [shape: f32[2,32], index: 6, kind: input, shape index: {}]   ;;  %s9200_s8 = inlined_call_operand.vmem [shape: f32[1,128], index: 8, kind: input, shape index: {}]   ;;  %s9201_s9 = inlined_call_operand.<no memory space> [shape: f32[1,1], index: 9, kind: input, shape index: {}]   ;;  %s9202_s7 = inlined_call_operand.vmem [shape: f32[2,128], index: 7, kind: input, shape index: {}]   ;;  %s9203_s10 = inlined_call_operand.vmem [shape: f32[16,1], index: 10, kind: output, shape index: {}]  }
   0x1   :  { %v4711_v0 = vld [vmem:[%s9193_s2 + $0xf0] sm:$0xf]  ;;  %v5772_v1 = vld [vmem:[%s9193_s2 + $0xf4] sm:$0xf0]  ;;  %v5755_v5 = vld [vmem:[%s9193_s2 + $0x74] sm:$0xf] }
   0x2   :  { %v4775_v2 = vld [vmem:[%s9193_s2 + $0x70] sm:$0xf]  ;;  %v6113_v3 = vor.u32 %v5772_v1, %v4711_v0  ;;  %v5756_v4 = vld [vmem:[%s9193_s2 + $0x74] sm:$0xf0]  ;;  %v4777_v6 = vld [vmem:[%s9193_s2 + $0x78] sm:$0xf0] }
   0x3   :  { %v6124_v7 = vor.u32 %v5756_v4, %v4775_v2  ;;  %v6126_v8 = vor.u32 %v5755_v5, %v4777_v6  ;;  %v4703_v9 = vld [vmem:[%s9193_s2 + $0xe0] sm:$0xf]  ;;  %v5770_v10 = vld [vmem:[%s9193_s2 + $0xe4] sm:$0xf0]  ;;  %v5753_v14 = vld [vmem:[%s9193_s2 + $0x64] sm:$0xf] }
   0x4   :  { %v4767_v11 = vld [vmem:[%s9193_s2 + $0x60] sm:$0xf]  ;;  %213 = vmatpush.bf16.msra.mxu0 %v6113_v3  ;;  %v6138_v12 = vor.u32 %v5770_v10, %v4703_v9  ;;  %v5754_v13 = vld [vmem:[%s9193_s2 + $0x64] sm:$0xf0]  ;;  %v4769_v15 = vld [vmem:[%s9193_s2 + $0x68] sm:$0xf0] }
   0x5   :  { %381 = vmatpush.bf16.msra.mxu2 %v6124_v7  ;;  %425 = vmatpush.bf16.msra.mxu3 %v6126_v8  ;;  %v6151_v16 = vor.u32 %v5754_v13, %v4767_v11  ;;  %v6153_v17 = vor.u32 %v5753_v14, %v4769_v15  ;;  %v5771_v18 = vld [vmem:[%s9193_s2 + $0xf4] sm:$0xf]  ;;  %v4713_v19 = vld [vmem:[%s9193_s2 + $0xf8] sm:$0xf0]  ;;  %v4695_v20 = vld [vmem:[%s9193_s2 + $0xd0] sm:$0xf] }
   0x6   :  { %v6164_v21 = vor.u32 %v5771_v18, %v4713_v19  ;;  %v5768_v22 = vld [vmem:[%s9193_s2 + $0xd4] sm:$0xf0]  ;;  %v4759_v23 = vld [vmem:[%s9193_s2 + $0x50] sm:$0xf]  ;;  %v5751_v25 = vld [vmem:[%s9193_s2 + $0x54] sm:$0xf] }
   0x7   :  { %v5752_v24 = vld [vmem:[%s9193_s2 + $0x54] sm:$0xf0]  ;;  %v4761_v26 = vld [vmem:[%s9193_s2 + $0x58] sm:$0xf0]  ;;  %v5769_v27 = vld [vmem:[%s9193_s2 + $0xe4] sm:$0xf]  ;;  %v6186_v28 = vor.u32 %v5768_v22, %v4695_v20 }
   0x8   :  { %214 = vmatpush.bf16.msra.mxu0 %v6138_v12  ;;  %257 = vmatpush.bf16.msra.mxu1 %v6164_v21  ;;  %v4705_v29 = vld [vmem:[%s9193_s2 + $0xe8] sm:$0xf0]  ;;  %v4687_v30 = vld [vmem:[%s9193_s2 + $0xc0] sm:$0xf]  ;;  %v5766_v31 = vld [vmem:[%s9193_s2 + $0xc4] sm:$0xf0]  ;;  %v6199_v32 = vor.u32 %v5752_v24, %v4759_v23  ;;  %v6201_v33 = vor.u32 %v5751_v25, %v4761_v26 }
   0x9   :  { %382 = vmatpush.bf16.msra.mxu2 %v6151_v16  ;;  %426 = vmatpush.bf16.msra.mxu3 %v6153_v17  ;;  %v6203_v34 = vor.u32 %v5769_v27, %v4705_v29  ;;  %v4751_v35 = vld [vmem:[%s9193_s2 + $0x40] sm:$0xf]  ;;  %v5750_v36 = vld [vmem:[%s9193_s2 + $0x44] sm:$0xf0]  ;;  %v5749_v37 = vld [vmem:[%s9193_s2 + $0x44] sm:$0xf]  ;;  %v6225_v41 = vor.u32 %v5766_v31, %v4687_v30 }
   0xa   :  { %v4753_v38 = vld [vmem:[%s9193_s2 + $0x48] sm:$0xf0]  ;;  %v5767_v39 = vld [vmem:[%s9193_s2 + $0xd4] sm:$0xf]  ;;  %v4697_v40 = vld [vmem:[%s9193_s2 + $0xd8] sm:$0xf0]  ;;  %v6237_v45 = vor.u32 %v5750_v36, %v4751_v35 }
   0xb   :  { %v6227_v42 = vor.u32 %v5767_v39, %v4697_v40  ;;  %v4679_v43 = vld [vmem:[%s9193_s2 + $0xb0] sm:$0xf]  ;;  %v5764_v44 = vld [vmem:[%s9193_s2 + $0xb4] sm:$0xf0]  ;;  %v6239_v46 = vor.u32 %v5749_v37, %v4753_v38  ;;  %v5765_v48 = vld [vmem:[%s9193_s2 + $0xc4] sm:$0xf] }
   0xc   :  { %215 = vmatpush.bf16.msra.mxu0 %v6186_v28  ;;  %258 = vmatpush.bf16.msra.mxu1 %v6203_v34  ;;  %v4743_v47 = vld [vmem:[%s9193_s2 + $0x30] sm:$0xf]  ;;  %v4689_v49 = vld [vmem:[%s9193_s2 + $0xc8] sm:$0xf0]  ;;  %v5748_v50 = vld [vmem:[%s9193_s2 + $0x34] sm:$0xf0]  ;;  %v6261_v53 = vor.u32 %v5764_v44, %v4679_v43 }
   0xd   :  { %383 = vmatpush.bf16.msra.mxu2 %v6199_v32  ;;  %427 = vmatpush.bf16.msra.mxu3 %v6201_v33  ;;  %v5747_v51 = vld [vmem:[%s9193_s2 + $0x34] sm:$0xf]  ;;  %v4745_v52 = vld [vmem:[%s9193_s2 + $0x38] sm:$0xf0]  ;;  %v6263_v54 = vor.u32 %v5765_v48, %v4689_v49  ;;  %v4671_v55 = vld [vmem:[%s9193_s2 + $0xa0] sm:$0xf]  ;;  %v6273_v57 = vor.u32 %v5748_v50, %v4743_v47 }
   0xe   :  { %v5762_v56 = vld [vmem:[%s9193_s2 + $0xa4] sm:$0xf0]  ;;  %v6275_v58 = vor.u32 %v5747_v51, %v4745_v52  ;;  %v4735_v59 = vld [vmem:[%s9193_s2 + $0x20] sm:$0xf]  ;;  %v5763_v60 = vld [vmem:[%s9193_s2 + $0xb4] sm:$0xf] }
   0xf   :  { %v4681_v61 = vld [vmem:[%s9193_s2 + $0xb8] sm:$0xf0]  ;;  %v5746_v62 = vld [vmem:[%s9193_s2 + $0x24] sm:$0xf0]  ;;  %v5745_v63 = vld [vmem:[%s9193_s2 + $0x24] sm:$0xf]  ;;  %v6297_v1 = vor.u32 %v5762_v56, %v4671_v55 }
  0x10   :  { %216 = vmatpush.bf16.msra.mxu0 %v6225_v41  ;;  %259 = vmatpush.bf16.msra.mxu1 %v6227_v42  ;;  %v4737_v0 = vld [vmem:[%s9193_s2 + $0x28] sm:$0xf0]  ;;  %v6299_v2 = vor.u32 %v5763_v60, %v4681_v61  ;;  %v4663_v4 = vld [vmem:[%s9193_s2 + $0x90] sm:$0xf]  ;;  %v5760_v5 = vld [vmem:[%s9193_s2 + $0x94] sm:$0xf0]  ;;  %v6309_v6 = vor.u32 %v5746_v62, %v4735_v59 }
  0x11   :  { %384 = vmatpush.bf16.msra.mxu2 %v6237_v45  ;;  %428 = vmatpush.bf16.msra.mxu3 %v6239_v46  ;;  %v6311_v9 = vor.u32 %v5745_v63, %v4737_v0  ;;  %v4727_v10 = vld [vmem:[%s9193_s2 + $0x10] sm:$0xf]  ;;  %v5761_v11 = vld [vmem:[%s9193_s2 + $0xa4] sm:$0xf]  ;;  %v4673_v13 = vld [vmem:[%s9193_s2 + $0xa8] sm:$0xf0]  ;;  %v6333_v19 = vor.u32 %v5760_v5, %v4663_v4 }
  0x12   :  { %v5744_v14 = vld [vmem:[%s9193_s2 + $0x14] sm:$0xf0]  ;;  %v5743_v15 = vld [vmem:[%s9193_s2 + $0x14] sm:$0xf]  ;;  %v4729_v18 = vld [vmem:[%s9193_s2 + $0x18] sm:$0xf0]  ;;  %v6335_v20 = vor.u32 %v5761_v11, %v4673_v13 }
  0x13   :  { %v4655_v22 = vld [vmem:[%s9193_s2 + $0x80] sm:$0xf]  ;;  %v5758_v23 = vld [vmem:[%s9193_s2 + $0x84] sm:$0xf0]  ;;  %v6345_v24 = vor.u32 %v5744_v14, %v4727_v10  ;;  %v6347_v25 = vor.u32 %v5743_v15, %v4729_v18  ;;  %v5759_v27 = vld [vmem:[%s9193_s2 + $0x94] sm:$0xf] }
  0x14   :  { %217 = vmatpush.bf16.msra.mxu0 %v6261_v53  ;;  %260 = vmatpush.bf16.msra.mxu1 %v6263_v54  ;;  %v4719_v26 = vld [vmem:[%s9193_s2] sm:$0xf]  ;;  %v4665_v29 = vld [vmem:[%s9193_s2 + $0x98] sm:$0xf0]  ;;  %v5742_v30 = vld [vmem:[%s9193_s2 + $0x4] sm:$0xf0]  ;;  %v6369_v36 = vor.u32 %v5758_v23, %v4655_v22 }
  0x15   :  { %385 = vmatpush.bf16.msra.mxu2 %v6273_v57  ;;  %429 = vmatpush.bf16.msra.mxu3 %v6275_v58  ;;  %v5741_v31 = vld [vmem:[%s9193_s2 + $0x4] sm:$0xf]  ;;  %v4721_v35 = vld [vmem:[%s9193_s2 + $0x8] sm:$0xf0]  ;;  %v6371_v37 = vor.u32 %v5759_v27, %v4665_v29  ;;  %v4720_v40 = vor.u32 %v5742_v30, %v4719_v26  ;;  %v122_v62 = vld [vmem:[%s9194_s1 + $0x50] sm:$0xff]  ;;  %s6041_s19 = smov 16  }
  0x16   :  { %v112_v38 = vld [vmem:[%s9194_s1] sm:$0xff]  ;;  %v113_v39 = vld [vmem:[%s9194_s1 + $0x8] sm:$0xff]  ;;  %v6381_v43 = vor.u32 %v5741_v31, %v4721_v35  ;;  %v123_v63 = vld [vmem:[%s9194_s1 + $0x58] sm:$0xff]  ;;  %s6042_s20 = smov 48   ;;  %s6043_s21 = smov 96   ;;  %vm1019_vm8 = vcmask 654336  }
  0x17   :  { %v70_v44 = vld [vmem:[%s9195_s0] sm:$0xff]  ;;  %v71_v47 = vld [vmem:[%s9195_s0 + $0x8] sm:$0xff]  ;;  %v6395_v50 = vpack.c.bf16 %v113_v39, %v112_v38  ;;  %v80_v0 = vld [vmem:[%s9195_s0 + $0x50] sm:$0xff]  ;;  %s6044_s22 = smov 32   ;;  %vm1021_vm9 = vcmask 785408   ;;  %vm1023_vm10 = vcmask 916480  }
  0x18   :  { %218 = vmatpush.bf16.msra.mxu0 %v6297_v1  ;;  %261 = vmatpush.bf16.msra.mxu1 %v6299_v2  ;;  %v5757_v48 = vld [vmem:[%s9193_s2 + $0x84] sm:$0xf]  ;;  %v4657_v49 = vld [vmem:[%s9193_s2 + $0x88] sm:$0xf0]  ;;  %v84_v51 = vpack.c.bf16 %v71_v47, %v70_v44 }
  0x19   :  { %386 = vmatpush.bf16.msra.mxu2 %v6309_v6  ;;  %430 = vmatpush.bf16.msra.mxu3 %v6311_v9  ;;  %v4660_v52 = vor.u32 %v5757_v48, %v4657_v49  ;;  %v120_v56 = vld [vmem:[%s9194_s1 + $0x40] sm:$0xff]  ;;  %v79_v59 = vld [vmem:[%s9195_s0 + $0x48] sm:$0xff] }
  0x1a   :  { %v124_v5 = vld [vmem:[%s9194_s1 + $0x60] sm:$0xff]  ;;  %v83_v10 = vld [vmem:[%s9195_s0 + $0x68] sm:$0xff] }
  0x1c   :  { %219 = vmatpush.bf16.msra.mxu0 %v6333_v19  ;;  %262 = vmatpush.bf16.msra.mxu1 %v6335_v20 }
  0x1d   :  { %387 = vmatpush.bf16.msra.mxu2 %v6345_v24  ;;  %431 = vmatpush.bf16.msra.mxu3 %v6347_v25 }
  0x20   :  { %220 = vmatpush.bf16.msra.mxu0 %v6369_v36  ;;  %263 = vmatpush.bf16.msra.mxu1 %v6371_v37 }
  0x21   :  { %388 = vmatpush.bf16.msra.mxu2 %v4720_v40  ;;  %432 = vmatpush.bf16.msra.mxu3 %v6381_v43 }
  0x23   :  { %221 = vmatmul.bf16.vlgmr.msra.gmra.mxu0 %v6395_v50 }
  0x24   :  { %469 = vmatpush.bf16.msrb.mxu0 %v6113_v3  ;;  %389 = vmatmul.bf16.vlgmr.msra.gmra.mxu2 %v84_v51  ;;  %v114_v3 = vld [vmem:[%s9194_s1 + $0x10] sm:$0xff] }
  0x25   :  { %557 = vmatpush.bf16.msrb.mxu2 %v6124_v7  ;;  %601 = vmatpush.bf16.msrb.mxu3 %v6126_v8  ;;  %v115_v7 = vld [vmem:[%s9194_s1 + $0x18] sm:$0xff]  ;;  %v72_v8 = vld [vmem:[%s9195_s0 + $0x10] sm:$0xff] }
  0x26   :  { %433 = vmatmul.bf16.vlgmr.msra.gmra.mxu3 %v84_v51  ;;  %264 = vmatpush.bf16.msra.mxu1 %v4660_v52 }
  0x28   :  { %470 = vmatpush.bf16.msrb.mxu0 %v6138_v12  ;;  %v73_v12 = vld [vmem:[%s9195_s0 + $0x18] sm:$0xff] }
  0x29   :  { %558 = vmatpush.bf16.msrb.mxu2 %v6151_v16  ;;  %602 = vmatpush.bf16.msrb.mxu3 %v6153_v17  ;;  %v6427_v16 = vpack.c.bf16 %v115_v7, %v114_v3  ;;  %v6431_v17 = vpack.c.bf16 %v73_v12, %v72_v8 }
  0x2a   :  { %513 = vmatpush.bf16.msrb.mxu1 %v6164_v21  ;;  %v116_v21 = vld [vmem:[%s9194_s1 + $0x20] sm:$0xff] }
  0x2b   :  { %265 = vmatmul.bf16.vlgmr.msra.gmra.mxu1 %v6395_v50 }
  0x2c   :  { %471 = vmatpush.bf16.msrb.mxu0 %v6186_v28  ;;  %v117_v28 = vld [vmem:[%s9194_s1 + $0x28] sm:$0xff] }
  0x2d   :  { %559 = vmatpush.bf16.msrb.mxu2 %v6199_v32  ;;  %603 = vmatpush.bf16.msrb.mxu3 %v6201_v33  ;;  %v74_v32 = vld [vmem:[%s9195_s0 + $0x20] sm:$0xff]  ;;  %v75_v33 = vld [vmem:[%s9195_s0 + $0x28] sm:$0xff] }
  0x2e   :  { %514 = vmatpush.bf16.msrb.mxu1 %v6203_v34  ;;  %v6462_v34 = vpack.c.bf16 %v117_v28, %v116_v21 }
  0x30   :  { %472 = vmatpush.bf16.msrb.mxu0 %v6225_v41  ;;  %v86_v41 = vpack.c.bf16 %v75_v33, %v74_v32 }
  0x31   :  { %560 = vmatpush.bf16.msrb.mxu2 %v6237_v45  ;;  %604 = vmatpush.bf16.msrb.mxu3 %v6239_v46  ;;  %v119_v45 = vld [vmem:[%s9194_s1 + $0x38] sm:$0xff]  ;;  %v76_v46 = vld [vmem:[%s9195_s0 + $0x30] sm:$0xff] }
  0x32   :  { %515 = vmatpush.bf16.msrb.mxu1 %v6227_v42  ;;  %v118_v42 = vld [vmem:[%s9194_s1 + $0x30] sm:$0xff] }
  0x33   :  { %226 = vmatmul.bf16.gmra.mxu0 %v6427_v16 }
  0x34   :  { %473 = vmatpush.bf16.msrb.mxu0 %v6261_v53  ;;  %394 = vmatmul.bf16.gmra.mxu2 %v6431_v17  ;;  %v77_v53 = vld [vmem:[%s9195_s0 + $0x38] sm:$0xff] }
  0x35   :  { %561 = vmatpush.bf16.msrb.mxu2 %v6273_v57  ;;  %605 = vmatpush.bf16.msrb.mxu3 %v6275_v58  ;;  %v6482_v55 = vpack.c.bf16 %v77_v53, %v76_v46  ;;  %v121_v57 = vld [vmem:[%s9194_s1 + $0x48] sm:$0xff]  ;;  %v78_v58 = vld [vmem:[%s9195_s0 + $0x40] sm:$0xff] }
  0x36   :  { %516 = vmatpush.bf16.msrb.mxu1 %v6263_v54  ;;  %438 = vmatmul.bf16.gmra.mxu3 %v6431_v17  ;;  %v6480_v54 = vpack.c.bf16 %v119_v45, %v118_v42  ;;  %v6500_v60 = vpack.c.bf16 %v121_v57, %v120_v56  ;;  %v6502_v61 = vpack.c.bf16 %v79_v59, %v78_v58 }
  0x38   :  { %474 = vmatpush.bf16.msrb.mxu0 %v6297_v1  ;;  %v81_v1 = vld [vmem:[%s9195_s0 + $0x58] sm:$0xff] }
  0x39   :  { %562 = vmatpush.bf16.msrb.mxu2 %v6309_v6  ;;  %606 = vmatpush.bf16.msrb.mxu3 %v6311_v9  ;;  %v6522_v4 = vpack.c.bf16 %v81_v1, %v80_v0  ;;  %v125_v6 = vld [vmem:[%s9194_s1 + $0x68] sm:$0xff]  ;;  %v82_v9 = vld [vmem:[%s9195_s0 + $0x60] sm:$0xff] }
  0x3a   :  { %517 = vmatpush.bf16.msrb.mxu1 %v6299_v2  ;;  %v6520_v2 = vpack.c.bf16 %v123_v63, %v122_v62  ;;  %v6540_v11 = vpack.c.bf16 %v125_v6, %v124_v5  ;;  %v6542_v13 = vpack.c.bf16 %v83_v10, %v82_v9  ;;  %v104_v62 = vld [vmem:[%s9195_s0 + $0x78] sm:$0xff] }
  0x3b   :  { %270 = vmatmul.bf16.gmra.mxu1 %v6427_v16 }
  0x3c   :  { %475 = vmatpush.bf16.msrb.mxu0 %v6333_v19 }
  0x3d   :  { %563 = vmatpush.bf16.msrb.mxu2 %v6345_v24  ;;  %607 = vmatpush.bf16.msrb.mxu3 %v6347_v25 }
  0x3e   :  { %518 = vmatpush.bf16.msrb.mxu1 %v6335_v20 }
  0x40   :  { %476 = vmatpush.bf16.msrb.mxu0 %v6369_v36 }
  0x41   :  { %564 = vmatpush.bf16.msrb.mxu2 %v4720_v40  ;;  %608 = vmatpush.bf16.msrb.mxu3 %v6381_v43 }
  0x42   :  { %519 = vmatpush.bf16.msrb.mxu1 %v6371_v37 }
  0x43   :  { %231 = vmatmul.bf16.gmra.mxu0 %v6462_v34 }
  0x44   :  { %399 = vmatmul.bf16.gmra.mxu2 %v86_v41 }
  0x46   :  { %520 = vmatpush.bf16.msrb.mxu1 %v4660_v52  ;;  %443 = vmatmul.bf16.gmra.mxu3 %v86_v41 }
  0x4b   :  { %275 = vmatmul.bf16.gmra.mxu1 %v6462_v34 }
  0x53   :  { %236 = vmatmul.bf16.gmra.mxu0 %v6480_v54 }
  0x54   :  { %404 = vmatmul.bf16.gmra.mxu2 %v6482_v55 }
  0x56   :  { %448 = vmatmul.bf16.gmra.mxu3 %v6482_v55 }
  0x5b   :  { %280 = vmatmul.bf16.gmra.mxu1 %v6480_v54 }
  0x63   :  { %241 = vmatmul.bf16.gmra.mxu0 %v6500_v60 }
  0x64   :  { %409 = vmatmul.bf16.gmra.mxu2 %v6502_v61 }
  0x66   :  { %453 = vmatmul.bf16.gmra.mxu3 %v6502_v61 }
  0x6b   :  { %285 = vmatmul.bf16.gmra.mxu1 %v6500_v60 }
  0x73   :  { %246 = vmatmul.bf16.gmra.mxu0 %v6520_v2 }
  0x74   :  { %414 = vmatmul.bf16.gmra.mxu2 %v6522_v4 }
  0x76   :  { %458 = vmatmul.bf16.gmra.mxu3 %v6522_v4 }
  0x7b   :  { %290 = vmatmul.bf16.gmra.mxu1 %v6520_v2 }
  0x83   :  { %251 = vmatmul.bf16.gmra.mxu0 %v6540_v11 }
  0x84   :  { %419 = vmatmul.bf16.gmra.mxu2 %v6542_v13 }
  0x86   :  { %463 = vmatmul.bf16.gmra.mxu3 %v6542_v13 }
  0x8b   :  { %295 = vmatmul.bf16.gmra.mxu1 %v6540_v11 }
  0x93   :  { %477 = vmatmul.bf16.vlgmr.msrb.gmra.mxu0 %v6431_v17 }
  0x94   :  { %565 = vmatmul.bf16.vlgmr.msrb.gmra.mxu2 %v6395_v50 }
  0x96   :  { %609 = vmatmul.bf16.vlgmr.msrb.gmra.mxu3 %v6395_v50 }
  0x9b   :  { %521 = vmatmul.bf16.vlgmr.msrb.gmra.mxu1 %v6431_v17 }
  0xa0   :  { %v222_v14 = vpop.f32.mrf.mxu0 }
  0xa3   :  { %482 = vmatmul.bf16.gmra.mxu0 %v86_v41 }
  0xa4   :  { %570 = vmatmul.bf16.gmra.mxu2 %v6427_v16 }
  0xa6   :  { %614 = vmatmul.bf16.gmra.mxu3 %v6427_v16 }
  0xa7   :  { %v390_v18 = vpop.f32.mrf.mxu2 }
  0xa8   :  { %v266_v15 = vpop.f32.mrf.mxu1  ;;  %v6554_v20 = vadd.f32 %v390_v18, %v222_v14  ;;  %v224_v23 = vpop.f32.mrf.mxu0 }
  0xa9   :  { %v434_v19 = vpop.f32.mrf.mxu3 }
  0xaa   :  { %9247 = vst [vmem:[#allocation3_spill] sm:$0xff] %v6554_v20  ;;  %v6556_v22 = vadd.f32 %v434_v19, %v266_v15 }
  0xab   :  { %526 = vmatmul.bf16.gmra.mxu1 %v86_v41 }
  0xac   :  { %9248 = vst [vmem:[#allocation4_spill] sm:$0xff] %v6556_v22 }
  0xaf   :  { %v392_v25 = vpop.f32.mrf.mxu2 }
  0xb0   :  { %v268_v24 = vpop.f32.mrf.mxu1  ;;  %v6558_v27 = vadd.f32 %v392_v25, %v224_v23  ;;  %v227_v30 = vpop.f32.mrf.mxu0 }
  0xb1   :  { %v436_v26 = vpop.f32.mrf.mxu3 }
  0xb2   :  { %9249 = vst [vmem:[#allocation5_spill] sm:$0xff] %v6558_v27  ;;  %v6560_v29 = vadd.f32 %v436_v26, %v268_v24 }
  0xb3   :  { %487 = vmatmul.bf16.gmra.mxu0 %v6482_v55 }
  0xb4   :  { %9250 = vst [vmem:[#allocation6_spill] sm:$0xff] %v6560_v29  ;;  %575 = vmatmul.bf16.gmra.mxu2 %v6462_v34 }
  0xb6   :  { %619 = vmatmul.bf16.gmra.mxu3 %v6462_v34 }
  0xb7   :  { %v395_v35 = vpop.f32.mrf.mxu2 }
  0xb8   :  { %v271_v31 = vpop.f32.mrf.mxu1  ;;  %v6565_v37 = vadd.f32 %v395_v35, %v227_v30  ;;  %v229_v39 = vpop.f32.mrf.mxu0 }
  0xb9   :  { %v439_v36 = vpop.f32.mrf.mxu3 }
  0xba   :  { %9251 = vst [vmem:[#allocation7_spill] sm:$0xff] %v6565_v37  ;;  %v6567_v38 = vadd.f32 %v439_v36, %v271_v31 }
  0xbb   :  { %531 = vmatmul.bf16.gmra.mxu1 %v6482_v55 }
  0xbf   :  { %v397_v43 = vpop.f32.mrf.mxu2 }
  0xc0   :  { %v273_v40 = vpop.f32.mrf.mxu1  ;;  %v6570_v47 = vadd.f32 %v397_v43, %v229_v39  ;;  %v232_v49 = vpop.f32.mrf.mxu0 }
  0xc1   :  { %v441_v44 = vpop.f32.mrf.mxu3 }
  0xc2   :  { %9252 = vst [vmem:[#allocation8_spill] sm:$0xff] %v6570_v47  ;;  %v6572_v48 = vadd.f32 %v441_v44, %v273_v40 }
  0xc3   :  { %492 = vmatmul.bf16.gmra.mxu0 %v6502_v61 }
  0xc4   :  { %580 = vmatmul.bf16.gmra.mxu2 %v6480_v54 }
  0xc6   :  { %624 = vmatmul.bf16.gmra.mxu3 %v6480_v54 }
  0xc7   :  { %v400_v51 = vpop.f32.mrf.mxu2 }
  0xc8   :  { %v276_v50 = vpop.f32.mrf.mxu1  ;;  %v6577_v3 = vadd.f32 %v400_v51, %v232_v49  ;;  %v6581_v8 = vpop.f32.mrf.mxu0 }
  0xc9   :  { %v444_v52 = vpop.f32.mrf.mxu3 }
  0xca   :  { %v6579_v7 = vadd.f32 %v444_v52, %v276_v50 }
  0xcb   :  { %536 = vmatmul.bf16.gmra.mxu1 %v6502_v61  ;;  %v103_v61 = vld [vmem:[%s9195_s0 + $0x70] sm:$0xff]  ;;  %s6038_s0 = smov 64  }
  0xcf   :  { %v6586_v16 = vpop.f32.mrf.mxu2 }
  0xd0   :  { %v6584_v12 = vpop.f32.mrf.mxu1  ;;  %v237_v21 = vpop.f32.mrf.mxu0 }
  0xd1   :  { %v6588_v17 = vpop.f32.mrf.mxu3 }
  0xd3   :  { %497 = vmatmul.bf16.gmra.mxu0 %v6522_v4 }
  0xd4   :  { %585 = vmatmul.bf16.gmra.mxu2 %v6500_v60 }
  0xd6   :  { %629 = vmatmul.bf16.gmra.mxu3 %v6500_v60 }
  0xd7   :  { %v405_v32 = vpop.f32.mrf.mxu2 }
  0xd8   :  { %v281_v28 = vpop.f32.mrf.mxu1  ;;  %v6593_v34 = vadd.f32 %v405_v32, %v237_v21  ;;  %v6597_v42 = vpop.f32.mrf.mxu0 }
  0xd9   :  { %v449_v33 = vpop.f32.mrf.mxu3 }
  0xda   :  { %v6595_v41 = vadd.f32 %v449_v33, %v281_v28 }
  0xdb   :  { %541 = vmatmul.bf16.gmra.mxu1 %v6522_v4 }
  0xdf   :  { %v6602_v46 = vpop.f32.mrf.mxu2 }
  0xe0   :  { %v6600_v45 = vpop.f32.mrf.mxu1  ;;  %v242_v54 = vpop.f32.mrf.mxu0 }
  0xe1   :  { %v6604_v53 = vpop.f32.mrf.mxu3 }
  0xe3   :  { %502 = vmatmul.bf16.gmra.mxu0 %v6542_v13 }
  0xe4   :  { %590 = vmatmul.bf16.gmra.mxu2 %v6520_v2 }
  0xe6   :  { %634 = vmatmul.bf16.gmra.mxu3 %v6520_v2  ;;  %v111_v2 = vpack.c.bf16 %v104_v62, %v103_v61 }
  0xe7   :  { %v410_v56 = vpop.f32.mrf.mxu2 }
  0xe8   :  { %v286_v55 = vpop.f32.mrf.mxu1  ;;  %v6609_v58 = vadd.f32 %v410_v56, %v242_v54  ;;  %v6613_v60 = vpop.f32.mrf.mxu0 }
  0xe9   :  { %v454_v57 = vpop.f32.mrf.mxu3 }
  0xea   :  { %v6611_v59 = vadd.f32 %v454_v57, %v286_v55 }
  0xeb   :  { %546 = vmatmul.bf16.gmra.mxu1 %v6542_v13 }
  0xec   :  { %9253 = vst [vmem:[#allocation9_spill] sm:$0xff] %v6611_v59 }
  0xef   :  { %v6624_v0 = vpop.f32.mrf.mxu2 }
  0xf0   :  { %v6622_v63 = vpop.f32.mrf.mxu1  ;;  %v247_v4 = vpop.f32.mrf.mxu0 }
  0xf1   :  { %9254 = vst [vmem:[#allocation10_spill] sm:$0xff] %v6622_v63  ;;  %v6626_v1 = vpop.f32.mrf.mxu3  ;;  %v664_v63 = vadd.f32 %v6560_v29, %v6556_v22  ;;  %v729_v29 = vmul.f32 %v6570_v47, %v6570_v47  ;;  %v6728_v22 = vadd.f32 %v6586_v16, %v6581_v8 }
  0xf2   :  { %9255 = vst [vmem:[#allocation11_spill] sm:$0xff] %v6626_v1 }
  0xf3   :  { %507 = vmatmul.bf16.gmra.mxu0 %v111_v2 }
  0xf4   :  { %595 = vmatmul.bf16.gmra.mxu2 %v6540_v11 }
  0xf6   :  { %639 = vmatmul.bf16.gmra.mxu3 %v6540_v11 }
  0xf7   :  { %v415_v6 = vpop.f32.mrf.mxu2 }
  0xf8   :  { %v291_v5 = vpop.f32.mrf.mxu1  ;;  %v6630_v10 = vadd.f32 %v415_v6, %v247_v4  ;;  %v6634_v14 = vpop.f32.mrf.mxu0 }
  0xf9   :  { %v459_v9 = vpop.f32.mrf.mxu3 }
  0xfa   :  { %v6632_v13 = vadd.f32 %v459_v9, %v291_v5 }
  0xfb   :  { %551 = vmatmul.bf16.gmra.mxu1 %v111_v2 }
  0xfc   :  { %9256 = vst [vmem:[#allocation12_spill] sm:$0xff] %v6632_v13 }
  0xff   :  { %v6638_v18 = vpop.f32.mrf.mxu2 }
 0x100   :  { %v6636_v15 = vpop.f32.mrf.mxu1  ;;  %v252_v23 = vpop.f32.mrf.mxu0 }
 0x101   :  { %9257 = vst [vmem:[#allocation13_spill] sm:$0xff] %v6636_v15  ;;  %v6640_v19 = vpop.f32.mrf.mxu3 }
 0x102   :  { %9258 = vst [vmem:[#allocation14_spill] sm:$0xff] %v6640_v19 }
 0x107   :  { %v420_v25 = vpop.f32.mrf.mxu2 }
 0x108   :  { %v296_v24 = vpop.f32.mrf.mxu1  ;;  %v6642_v26 = vadd.f32 %v420_v25, %v252_v23  ;;  %v6646_v31 = vpop.f32.mrf.mxu0 }
 0x109   :  { %v464_v11 = vpop.f32.mrf.mxu3 }
 0x10a   :  { %9259 = vst [vmem:[#allocation15_spill] sm:$0xff] %v6642_v26  ;;  %v6644_v30 = vadd.f32 %v464_v11, %v296_v24  ;;  %v723_v26 = vmul.f32 %v6554_v20, %v6554_v20 }
 0x10c   :  { %9260 = vst [vmem:[#allocation16_spill] sm:$0xff] %v6644_v30 }
 0x10f   :  { %v6650_v36 = vpop.f32.mrf.mxu2 }
 0x110   :  { %v6648_v35 = vpop.f32.mrf.mxu1  ;;  %v478_v40 = vpop.f32.mrf.mxu0 }
 0x111   :  { %9261 = vst [vmem:[#allocation17_spill] sm:$0xff] %v6648_v35  ;;  %v6652_v39 = vpop.f32.mrf.mxu3 }
 0x112   :  { %9262 = vst [vmem:[#allocation18_spill] sm:$0xff] %v6652_v39 }
 0x117   :  { %v566_v44 = vpop.f32.mrf.mxu2 }
 0x118   :  { %v522_v43 = vpop.f32.mrf.mxu1  ;;  %v480_v50 = vpop.f32.mrf.mxu0  ;;  %v6654_v51 = vadd.f32 %v566_v44, %v478_v40 }
 0x119   :  { %v610_v49 = vpop.f32.mrf.mxu3 }
 0x11a   :  { %9263 = vst [vmem:[#allocation19_spill] sm:$0xff] %v6654_v51  ;;  %v6656_v52 = vadd.f32 %v610_v49, %v522_v43 }
 0x11c   :  { %9264 = vst [vmem:[#allocation20_spill] sm:$0xff] %v6656_v52 }
 0x11f   :  { %v568_v28 = vpop.f32.mrf.mxu2 }
 0x120   :  { %v524_v21 = vpop.f32.mrf.mxu1  ;;  %v483_v33 = vpop.f32.mrf.mxu0 }
 0x121   :  { %v612_v32 = vpop.f32.mrf.mxu3 }
 0x127   :  { %v571_v55 = vpop.f32.mrf.mxu2 }
 0x128   :  { %v527_v54 = vpop.f32.mrf.mxu1  ;;  %v6658_v57 = vadd.f32 %v571_v55, %v483_v33  ;;  %v6662_v62 = vpop.f32.mrf.mxu0 }
 0x129   :  { %v615_v56 = vpop.f32.mrf.mxu3 }
 0x12a   :  { %9265 = vst [vmem:[#allocation21_spill] sm:$0xff] %v6658_v57  ;;  %v6660_v61 = vadd.f32 %v615_v56, %v527_v54 }
 0x12f   :  { %v573_v4 = vpop.f32.mrf.mxu2 }
 0x130   :  { %v6664_v2 = vpop.f32.mrf.mxu1  ;;  %v6668_v6 = vpop.f32.mrf.mxu0 }
 0x131   :  { %v6666_v5 = vpop.f32.mrf.mxu3 }
 0x137   :  { %v6672_v23 = vpop.f32.mrf.mxu2 }
 0x138   :  { %v6670_v9 = vpop.f32.mrf.mxu1  ;;  %v6676_v25 = vpop.f32.mrf.mxu0 }
 0x139   :  { %v6674_v24 = vpop.f32.mrf.mxu3 }
 0x13f   :  { %v6680_v40 = vpop.f32.mrf.mxu2 }
 0x140   :  { %v6678_v11 = vpop.f32.mrf.mxu1  ;;  %v6684_v44 = vpop.f32.mrf.mxu0 }
 0x141   :  { %v6682_v43 = vpop.f32.mrf.mxu3 }
 0x147   :  { %v6688_v33 = vpop.f32.mrf.mxu2 }
 0x148   :  { %v6686_v49 = vpop.f32.mrf.mxu1  ;;  %v6692_v55 = vpop.f32.mrf.mxu0 }
 0x149   :  { %v6690_v54 = vpop.f32.mrf.mxu3 }
 0x14a   :  { %9266 = vst [vmem:[#allocation22_spill] sm:$0xff] %v6690_v54 }
 0x14f   :  { %v6696_v30 = vpop.f32.mrf.mxu2 }
 0x150   :  { %v6694_v56 = vpop.f32.mrf.mxu1  ;;  %v6700_v35 = vpop.f32.mrf.mxu0 }
 0x151   :  { %9267 = vst [vmem:[#allocation23_spill] sm:$0xff] %v6694_v56  ;;  %v6698_v39 = vpop.f32.mrf.mxu3  ;;  %v725_v56 = vmul.f32 %v6558_v27, %v6558_v27 }
 0x152   :  { %9268 = vst [vmem:[#allocation24_spill] sm:$0xff] %v6698_v39  ;;  %v645_v39 = vadd.f32 %v6558_v27, %v6554_v20 }
 0x153   :  { %9269 = vst [vmem:[#allocation25_spill] sm:$0xff] %v6700_v35 }
 0x157   :  { %v6704_v19 = vpop.f32.mrf.mxu2 }
 0x158   :  { %v6702_v13 = vpop.f32.mrf.mxu1  ;;  %9271 = vst [vmem:[#allocation27_spill] sm:$0xff] %v6704_v19  ;;  %v6708_v1 = vpop.f32.mrf.mxu0  ;;  %v646_v19 = vadd.f32 %v645_v39, %v6565_v37  ;;  %v6742_v39 = vadd.f32 %v6588_v17, %v6584_v12 }
 0x159   :  { %9270 = vst [vmem:[#allocation26_spill] sm:$0xff] %v6702_v13  ;;  %v6706_v15 = vpop.f32.mrf.mxu3  ;;  %v727_v13 = vmul.f32 %v6565_v37, %v6565_v37  ;;  %v6747_v37 = vadd.f32 %v612_v32, %v524_v21 }
 0x15a   :  { %9272 = vst [vmem:[#allocation28_spill] sm:$0xff] %v6706_v15  ;;  %v665_v15 = vadd.f32 %v664_v63, %v6567_v38  ;;  %v731_v63 = vmul.f32 %v6577_v3, %v6577_v3 }
 0x15b   :  { %9273 = vst [vmem:[#allocation29_spill] sm:$0xff] %v6708_v1  ;;  %v751_v1 = vadd.f32 %v725_v56, %v723_v26  ;;  %v733_v56 = vmul.f32 %v6728_v22, %v6728_v22 }
 0x15c   :  { %v666_v26 = vadd.f32 %v665_v15, %v6572_v48  ;;  %9275 = vst [vmem:[#allocation31_spill] sm:$0xff] %v6747_v37  ;;  %v735_v15 = vmul.f32 %v6593_v34, %v6593_v34 }
 0x15d   :  { %v752_v54 = vadd.f32 %v751_v1, %v727_v13  ;;  %v6750_v13 = vadd.f32 %v568_v28, %v480_v50  ;;  %v6765_v50 = vadd.f32 %v6604_v53, %v6600_v45  ;;  %v702_v28 = vadd.f32 %v6747_v37, %v6656_v52 }
 0x15e   :  { %v667_v1 = vadd.f32 %v666_v26, %v6579_v7  ;;  %v6784_v53 = vadd.f32 %v6624_v0, %v6613_v60 }
 0x15f   :  { %v6730_v35 = vpop.f32.mrf.mxu2  ;;  %v753_v8 = vadd.f32 %v752_v54, %v729_v29  ;;  %9276 = vst [vmem:[#allocation32_spill] sm:$0xff] %v6750_v13  ;;  %v6757_v29 = vadd.f32 %v6602_v46, %v6597_v42  ;;  %v791_v46 = vmul.f32 %v6750_v13, %v6750_v13  ;;  %v703_v0 = vadd.f32 %v702_v28, %v6660_v61 }
 0x160   :  { %v6720_v59 = vpop.f32.mrf.mxu1  ;;  %v6734_v20 = vpop.f32.mrf.mxu0  ;;  %v668_v17 = vadd.f32 %v667_v1, %v6742_v39  ;;  %v6815_v28 = vadd.f32 %v6638_v18, %v6634_v14 }
 0x161   :  { %9274 = vst [vmem:[#allocation30_spill] sm:$0xff] %v6720_v59  ;;  %v6732_v27 = vpop.f32.mrf.mxu3  ;;  %v647_v59 = vadd.f32 %v646_v19, %v6570_v47  ;;  %v754_v19 = vadd.f32 %v753_v8, %v731_v63  ;;  %v6777_v63 = vadd.f32 %v573_v4, %v6662_v62  ;;  %v737_v45 = vmul.f32 %v6757_v29, %v6757_v29 }
 0x162   :  { %v669_v42 = vadd.f32 %v668_v17, %v6595_v41  ;;  %v789_v8 = vmul.f32 %v6654_v51, %v6654_v51  ;;  %v793_v62 = vmul.f32 %v6658_v57, %v6658_v57  ;;  %v6794_v4 = vadd.f32 %v6672_v23, %v6668_v6 }
 0x163   :  { %v648_v16 = vadd.f32 %v647_v59, %v6577_v3  ;;  %v755_v59 = vadd.f32 %v754_v19, %v733_v56  ;;  %9277 = vst [vmem:[#allocation33_spill] sm:$0xff] %v6777_v63  ;;  %v6803_v19 = vadd.f32 %v6666_v5, %v6664_v2  ;;  %v6810_v6 = vadd.f32 %v6680_v40, %v6676_v25 }
 0x164   :  { %9278 = vst [vmem:[#allocation34_spill] sm:$0xff] %v6794_v4  ;;  %v670_v1 = vadd.f32 %v669_v42, %v6765_v50  ;;  %v6819_v2 = vadd.f32 %v6674_v24, %v6670_v9  ;;  %v6826_v25 = vadd.f32 %v6688_v33, %v6684_v44  ;;  %v739_v40 = vmul.f32 %v6609_v58, %v6609_v58 }
 0x165   :  { %v649_v47 = vadd.f32 %v648_v16, %v6728_v22  ;;  %v683_v16 = vadd.f32 %v6750_v13, %v6654_v51  ;;  %9279 = vst [vmem:[#allocation35_spill] sm:$0xff] %v6810_v6  ;;  %v704_v18 = vadd.f32 %v703_v0, %v6803_v19  ;;  %v6834_v9 = vadd.f32 %v6682_v43, %v6678_v11  ;;  %v9283_v43 = vld [vmem:[#allocation22_spill] sm:$0xff] }
 0x166   :  { %9280 = vst [vmem:[#allocation36_spill] sm:$0xff] %v6826_v25  ;;  %v799_v44 = vmul.f32 %v6810_v6, %v6810_v6  ;;  %v6841_v33 = vadd.f32 %v6696_v30, %v6692_v55  ;;  %v9284_v30 = vld [vmem:[#allocation25_spill] sm:$0xff]  ;;  %v9285_v55 = vld [vmem:[#allocation27_spill] sm:$0xff] }
 0x167   :  { %v650_v21 = vadd.f32 %v649_v47, %v6593_v34  ;;  %v6769_v32 = vpop.f32.mrf.mxu2  ;;  %v756_v47 = vadd.f32 %v755_v59, %v735_v15  ;;  %v817_v15 = vadd.f32 %v791_v46, %v789_v8  ;;  %v684_v17 = vadd.f32 %v683_v16, %v6658_v57 }
 0x168   :  { %v6759_v12 = vpop.f32.mrf.mxu1  ;;  %v6796_v56 = vpop.f32.mrf.mxu0  ;;  %v795_v59 = vmul.f32 %v6777_v63, %v6777_v63  ;;  %9281 = vst [vmem:[#allocation37_spill] sm:$0xff] %v6841_v33  ;;  %v705_v11 = vadd.f32 %v704_v18, %v6819_v2  ;;  %v9290_v18 = vld [vmem:[#allocation24_spill] sm:$0xff]  ;;  %v794_v57 = vmul.f32 %v6660_v61, %v6660_v61 }
 0x169   :  { %v6771_v54 = vpop.f32.mrf.mxu3  ;;  %v651_v26 = vadd.f32 %v650_v21, %v6757_v29  ;;  %v757_v23 = vadd.f32 %v756_v47, %v737_v45  ;;  %v818_v42 = vadd.f32 %v817_v15, %v793_v62  ;;  %v685_v46 = vadd.f32 %v684_v17, %v6777_v63 }
 0x16a   :  { %v6846_v62 = vadd.f32 %v6650_v36, %v6646_v31  ;;  %v801_v17 = vmul.f32 %v6826_v25, %v6826_v25  ;;  %v9288_v31 = vld [vmem:[#allocation15_spill] sm:$0xff] }
 0x16b   :  { %v652_v60 = vadd.f32 %v651_v26, %v6609_v58  ;;  %v797_v26 = vmul.f32 %v6794_v4, %v6794_v4  ;;  %v819_v45 = vadd.f32 %v818_v42, %v795_v59  ;;  %v686_v8 = vadd.f32 %v685_v46, %v6794_v4 }
 0x16c   :  { %9282 = vst [vmem:[#allocation38_spill] sm:$0xff] %v6846_v62  ;;  %v6858_v59 = vadd.f32 %v9285_v55, %v9284_v30  ;;  %v706_v46 = vadd.f32 %v705_v11, %v6834_v9 }
 0x16d   :  { %v653_v21 = vadd.f32 %v652_v60, %v6784_v53  ;;  %v6851_v60 = vadd.f32 %v9283_v43, %v6686_v49  ;;  %v820_v0 = vadd.f32 %v819_v45, %v797_v26  ;;  %v687_v15 = vadd.f32 %v686_v8, %v6810_v6  ;;  %v9291_v43 = vld [vmem:[#allocation29_spill] sm:$0xff]  ;;  %v9294_v6 = vld [vmem:[#allocation11_spill] sm:$0xff] }
 0x16e   :  { %9286 = vst [vmem:[#allocation22_spill] sm:$0xff] %v6858_v59  ;;  %v803_v8 = vmul.f32 %v6841_v33, %v6841_v33  ;;  %v6872_v30 = vadd.f32 %v6730_v35, %v9291_v43  ;;  %v805_v35 = vmul.f32 %v6858_v59, %v6858_v59  ;;  %v6889_v43 = vadd.f32 %v6769_v32, %v6734_v20 }
 0x16f   :  { %v654_v14 = vadd.f32 %v653_v21, %v6630_v10  ;;  %v593_v24 = vpop.f32.mrf.mxu2  ;;  %v9287_v21 = vld [vmem:[#allocation9_spill] sm:$0xff]  ;;  %v821_v26 = vadd.f32 %v820_v0, %v799_v44  ;;  %v688_v45 = vadd.f32 %v687_v15, %v6826_v25  ;;  %v9296_v44 = vld [vmem:[#allocation28_spill] sm:$0xff] }
 0x170   :  { %v549_v5 = vpop.f32.mrf.mxu1  ;;  %v671_v42 = vadd.f32 %v670_v1, %v9287_v21  ;;  %9292 = vst [vmem:[#allocation25_spill] sm:$0xff] %v6872_v30  ;;  %v508_v55 = vpop.f32.mrf.mxu0  ;;  %v9293_v1 = vld [vmem:[#allocation10_spill] sm:$0xff]  ;;  %v6902_v20 = vadd.f32 %v593_v24, %v6796_v56  ;;  %v743_v56 = vmul.f32 %v6630_v10, %v6630_v10  ;;  %v9301_v24 = vld [vmem:[#allocation13_spill] sm:$0xff] }
 0x171   :  { %v637_v47 = vpop.f32.mrf.mxu3  ;;  %v655_v16 = vadd.f32 %v654_v14, %v6815_v28  ;;  %v9289_v14 = vld [vmem:[#allocation23_spill] sm:$0xff]  ;;  %v822_v25 = vadd.f32 %v821_v26, %v801_v17  ;;  %v689_v4 = vadd.f32 %v688_v45, %v6841_v33  ;;  %9297 = vst [vmem:[#allocation27_spill] sm:$0xff] %v6889_v43  ;;  %v807_v33 = vmul.f32 %v6872_v30, %v6872_v30 }
 0x172   :  { %v6865_v49 = vadd.f32 %v9290_v18, %v9289_v14  ;;  %v707_v14 = vadd.f32 %v706_v46, %v6851_v60  ;;  %v9295_v18 = vld [vmem:[#allocation26_spill] sm:$0xff]  ;;  %9299 = vst [vmem:[#allocation9_spill] sm:$0xff] %v6902_v20 }
 0x173   :  { %v656_v36 = vadd.f32 %v655_v16, %v9288_v31  ;;  %v6876_v16 = vadd.f32 %v9294_v6, %v9293_v1  ;;  %v6882_v0 = vadd.f32 %v9296_v44, %v9295_v18  ;;  %v758_v6 = vadd.f32 %v757_v23, %v739_v40  ;;  %v9298_v1 = vld [vmem:[#allocation30_spill] sm:$0xff] }
 0x174   :  { %v708_v46 = vadd.f32 %v707_v14, %v6865_v49  ;;  %v6896_v18 = vadd.f32 %v6732_v27, %v9298_v1  ;;  %v823_v45 = vadd.f32 %v822_v25, %v803_v8  ;;  %v690_v44 = vadd.f32 %v689_v4, %v6858_v59 }
 0x175   :  { %v657_v11 = vadd.f32 %v656_v36, %v6846_v62  ;;  %v741_v36 = vmul.f32 %v6784_v53, %v6784_v53  ;;  %v672_v32 = vadd.f32 %v671_v42, %v6876_v16  ;;  %v6908_v27 = vadd.f32 %v6771_v54, %v6759_v12  ;;  %v9302_v42 = vld [vmem:[#allocation14_spill] sm:$0xff] }
 0x176   :  { %v709_v40 = vadd.f32 %v708_v46, %v6882_v0  ;;  %v824_v14 = vadd.f32 %v823_v45, %v805_v35  ;;  %v691_v25 = vadd.f32 %v690_v44, %v6872_v30  ;;  %v809_v4 = vmul.f32 %v6889_v43, %v6889_v43 }
 0x177   :  { %v596_v17 = vpop.f32.mrf.mxu2  ;;  %v658_v23 = vrot.slane %v657_v11, 4  ;;  %v6919_v1 = vadd.f32 %v9302_v42, %v9301_v24  ;;  %v6922_v59 = vadd.f32 %v637_v47, %v549_v5  ;;  %v759_v12 = vadd.f32 %v758_v6, %v741_v36 }
 0x178   :  { %v552_v15 = vpop.f32.mrf.mxu1  ;;  %v6913_v8 = vadd.f32 %v596_v17, %v508_v55  ;;  %v710_v46 = vadd.f32 %v709_v40, %v6896_v18  ;;  %v825_v54 = vadd.f32 %v824_v14, %v807_v33  ;;  %v692_v35 = vadd.f32 %v691_v25, %v6889_v43  ;;  %v9303_v55 = vld [vmem:[#allocation12_spill] sm:$0xff]  ;;  %v510_v6 = vpop.f32.mrf.mxu0 }
 0x179   :  { %v640_v26 = vpop.f32.mrf.mxu3  ;;  %v811_v45 = vmul.f32 %v6902_v20, %v6902_v20  ;;  %v673_v17 = vadd.f32 %v672_v32, %v9303_v55  ;;  %v745_v44 = vmul.f32 %v6815_v28, %v6815_v28  ;;  %v659_v30 = vadd.f32 %v658_v23, %v657_v11 }
 0x17a   :  { %9300 = vst [vmem:[#allocation15_spill] sm:$0xff] %v6913_v8  ;;  %v711_v24 = vadd.f32 %v710_v46, %v6908_v27  ;;  %v826_v63 = vadd.f32 %v825_v54, %v809_v4  ;;  %v693_v5 = vadd.f32 %v692_v35, %v6902_v20  ;;  %v813_v47 = vmul.f32 %v6913_v8, %v6913_v8  ;;  %v9308_v35 = vld [vmem:[#allocation18_spill] sm:$0xff] }
 0x17b   :  { %v6934_v33 = vadd.f32 %v640_v26, %v552_v15  ;;  %v760_v36 = vadd.f32 %v759_v12, %v743_v56  ;;  %v674_v40 = vadd.f32 %v673_v17, %v6919_v1  ;;  %v747_v32 = vmul.f32 %v9288_v31, %v9288_v31  ;;  %v9307_v12 = vld [vmem:[#allocation17_spill] sm:$0xff] }
 0x17c   :  { %v712_v11 = vadd.f32 %v711_v24, %v6922_v59  ;;  %v827_v25 = vadd.f32 %v826_v63, %v811_v45  ;;  %v694_v4 = vadd.f32 %v693_v5, %v6913_v8  ;;  %v660_v26 = vrot.slane %v659_v30, 2  ;;  %v9309_v5 = vld [vmem:[#allocation16_spill] sm:$0xff] }
 0x17d   :  { %9304 = vst [vmem:[#allocation23_spill] sm:$0xff] %v6934_v33  ;;  %v761_v15 = vadd.f32 %v760_v36, %v745_v44  ;;  %v749_v56 = vmul.f32 %v6846_v62, %v6846_v62  ;;  %v6949_v17 = vadd.f32 %v9308_v35, %v9307_v12  ;;  %v790_v44 = vmul.f32 %v6656_v52, %v6656_v52 }
 0x17e   :  { %v828_v20 = vadd.f32 %v827_v25, %v813_v47  ;;  %v713_v24 = vadd.f32 %v712_v11, %v6934_v33  ;;  %v9310_v25 = vld [vmem:[#allocation4_spill] sm:$0xff] }
 0x17f   :  { %v598_v23 = vpop.f32.mrf.mxu2  ;;  %v762_v36 = vadd.f32 %v761_v15, %v747_v32  ;;  %v724_v11 = vmul.f32 %v9310_v25, %v9310_v25 }
 0x180   :  { %v554_v42 = vpop.f32.mrf.mxu1  ;;  %v6941_v46 = vadd.f32 %v598_v23, %v510_v6  ;;  %v792_v6 = vmul.f32 %v6747_v37, %v6747_v37 }
 0x181   :  { %v642_v14 = vpop.f32.mrf.mxu3 }
 0x182   :  { %9305 = vst [vmem:[#allocation24_spill] sm:$0xff] %v6941_v46  ;;  %v6943_v54 = vadd.f32 %v642_v14, %v554_v42  ;;  %v695_v63 = vadd.f32 %v694_v4, %v6941_v46  ;;  %v815_v45 = vmul.f32 %v6941_v46, %v6941_v46  ;;  %v675_v42 = vadd.f32 %v674_v40, %v9309_v5  ;;  %v9311_v4 = vld [vmem:[#allocation6_spill] sm:$0xff] }
 0x183   :  { %v726_v12 = vmul.f32 %v9311_v4, %v9311_v4  ;;  %v661_v40 = vadd.f32 %v660_v26, %v659_v30  ;;  %v763_v46 = vadd.f32 %v762_v36, %v749_v56  ;;  %v836_v43 = vadd.f32 %v792_v6, %v790_v44 }
 0x184   :  { %9306 = vst [vmem:[#allocation29_spill] sm:$0xff] %v6943_v54  ;;  %v696_v23 = vrot.slane %v695_v63, 4  ;;  %v829_v14 = vadd.f32 %v828_v20, %v815_v45  ;;  %v714_v47 = vadd.f32 %v713_v24, %v6943_v54  ;;  %v676_v35 = vadd.f32 %v675_v42, %v6949_v17 }
 0x185   :  { %v770_v45 = vadd.f32 %v726_v12, %v724_v11  ;;  %v728_v24 = vmul.f32 %v6567_v38, %v6567_v38  ;;  %v662_v52 = vrot.slane %v661_v40, 1  ;;  %v764_v13 = vrot.slane %v763_v46, 4 }
 0x186   :  { %v697_v8 = vadd.f32 %v696_v23, %v695_v63  ;;  %v830_v15 = vrot.slane %v829_v14, 4  ;;  %v715_v20 = vrot.slane %v714_v47, 4  ;;  %v677_v37 = vrot.slane %v676_v35, 4 }
 0x187   :  { %v837_v62 = vadd.f32 %v836_v43, %v794_v57  ;;  %v796_v30 = vmul.f32 %v6803_v19, %v6803_v19  ;;  %v771_v42 = vadd.f32 %v770_v45, %v728_v24  ;;  %v730_v44 = vmul.f32 %v6572_v48, %v6572_v48 }
 0x188   :  { %v698_v32 = vrot.slane %v697_v8, 2  ;;  %v831_v56 = vadd.f32 %v830_v15, %v829_v14  ;;  %v716_v63 = vadd.f32 %v715_v20, %v714_v47  ;;  %v678_v6 = vadd.f32 %v677_v37, %v676_v35 }
 0x189   :  { %v663_v36 = vadd.f32 %v662_v52, %v661_v40  ;;  %v765_v23 = vadd.f32 %v764_v13, %v763_v46  ;;  %v798_v11 = vmul.f32 %v6819_v2, %v6819_v2  ;;  %v732_v57 = vmul.f32 %v6579_v7, %v6579_v7 }
 0x18a   :  { %v699_v51 = vadd.f32 %v698_v32, %v697_v8  ;;  %v838_v43 = vadd.f32 %v837_v62, %v796_v30  ;;  %v800_v8 = vmul.f32 %v6834_v9, %v6834_v9  ;;  %v832_v47 = vrot.slane %v831_v56, 2 }
 0x18b   :  { %v717_v32 = vrot.slane %v716_v63, 2  ;;  %v772_v15 = vadd.f32 %v771_v42, %v730_v44  ;;  %v734_v37 = vmul.f32 %v6742_v39, %v6742_v39  ;;  %v766_v52 = vrot.slane %v765_v23, 2 }
 0x18c   :  { %v700_v26 = vrot.slane %v699_v51, 1  ;;  %v679_v13 = vrot.slane %v678_v6, 2  ;;  %v839_v46 = vadd.f32 %v838_v43, %v798_v11  ;;  %v736_v35 = vmul.f32 %v6595_v41, %v6595_v41 }
 0x18d   :  { %v773_v62 = vadd.f32 %v772_v15, %v732_v57  ;;  %v804_v20 = vmul.f32 %v6865_v49, %v6865_v49  ;;  %v833_v45 = vadd.f32 %v832_v47, %v831_v56  ;;  %v718_v24 = vadd.f32 %v717_v32, %v716_v63 }
 0x18e   :  { %v701_v12 = vadd.f32 %v700_v26, %v699_v51  ;;  %v802_v51 = vmul.f32 %v6851_v60, %v6851_v60  ;;  %v840_v40 = vadd.f32 %v839_v46, %v800_v8  ;;  %v738_v26 = vmul.f32 %v6765_v50, %v6765_v50 }
 0x18f   :  { %v774_v30 = vadd.f32 %v773_v62, %v734_v37  ;;  %v767_v42 = vadd.f32 %v766_v52, %v765_v23  ;;  %v680_v44 = vadd.f32 %v679_v13, %v678_v6  ;;  %v806_v11 = vmul.f32 %v6882_v0, %v6882_v0 }
 0x190   :  { %v6980_v14 = vadd.f32 %v701_v12, %v663_v36  ;;  %v841_v36 = vadd.f32 %v840_v40, %v802_v51  ;;  %v740_v57 = vmul.f32 %v9287_v21, %v9287_v21  ;;  %v808_v8 = vmul.f32 %v6896_v18, %v6896_v18 }
 0x191   :  { %v775_v12 = vadd.f32 %v774_v30, %v736_v35  ;;  %v834_v56 = vrot.slane %v833_v45, 1  ;;  %v719_v63 = vrot.slane %v718_v24, 1  ;;  %v742_v32 = vmul.f32 %v6876_v16, %v6876_v16 }
 0x192   :  { %871 = vrot.lane.b32.xlu2 %v6980_v14, %s6038_s0  ;;  %867 = vrot.lane.b32.xlu1 %v6980_v14, %s6039_s17  ;;  %v842_v43 = vadd.f32 %v841_v36, %v804_v20  ;;  %v768_v23 = vrot.slane %v767_v42, 1  ;;  %v681_v6 = vrot.slane %v680_v44, 1  ;;  %v810_v37 = vmul.f32 %v6908_v27, %v6908_v27 }
 0x193   :  { %859 = vrot.lane.b32.xlu0 %v6980_v14, %s6040_s18  ;;  %v776_v47 = vadd.f32 %v775_v12, %v738_v26  ;;  %v744_v13 = vmul.f32 %v9303_v55, %v9303_v55  ;;  %v812_v51 = vmul.f32 %v6922_v59, %v6922_v59  ;;  %v835_v62 = vadd.f32 %v834_v56, %v833_v45 }
 0x194   :  { %v843_v15 = vadd.f32 %v842_v43, %v806_v11  ;;  %v720_v35 = vadd.f32 %v719_v63, %v718_v24  ;;  %v746_v20 = vmul.f32 %v6919_v1, %v6919_v1  ;;  %v769_v30 = vadd.f32 %v768_v23, %v767_v42 }
 0x195   :  { %v777_v52 = vadd.f32 %v776_v47, %v740_v57  ;;  %v682_v26 = vadd.f32 %v681_v6, %v680_v44  ;;  %v814_v11 = vmul.f32 %v6934_v33, %v6934_v33  ;;  %v748_v57 = vmul.f32 %v9309_v5, %v9309_v5 }
 0x196   :  { %v844_v46 = vadd.f32 %v843_v15, %v808_v8  ;;  %v855_v8 = vadd.f32 %v835_v62, %v769_v30  ;;  %v816_v45 = vmul.f32 %v6943_v54, %v6943_v54  ;;  %v750_v42 = vmul.f32 %v6949_v17, %v6949_v17 }
 0x197   :  { %v778_v40 = vadd.f32 %v777_v52, %v742_v32  ;;  %v7024_v47 = vadd.f32 %v720_v35, %v682_v26 }
 0x198   :  { %v845_v36 = vadd.f32 %v844_v46, %v810_v37 }
 0x199   :  { %v779_v12 = vadd.f32 %v778_v40, %v744_v13 }
 0x19a   :  { %883 = vrot.lane.b32.xlu2 %v6980_v14, %s6041_s19  ;;  %875 = vrot.lane.b32.xlu1 %v6980_v14, %s6042_s20  ;;  %v846_v43 = vadd.f32 %v845_v36, %v812_v51 }
 0x19b   :  { %863 = vrot.lane.b32.xlu0 %v6980_v14, %s6043_s21  ;;  %v780_v24 = vadd.f32 %v779_v12, %v746_v20 }
 0x19c   :  { %v847_v44 = vadd.f32 %v846_v43, %v814_v11 }
 0x19d   :  { %v781_v56 = vadd.f32 %v780_v24, %v748_v57 }
 0x19e   :  { %v848_v63 = vadd.f32 %v847_v44, %v816_v45 }
 0x19f   :  { %v782_v32 = vadd.f32 %v781_v56, %v750_v42 }
 0x1a0   :  { %v849_v23 = vrot.slane %v848_v63, 4 }
 0x1a1   :  { %v783_v6 = vrot.slane %v782_v32, 4 }
 0x1a2   :  { %889 = vrot.lane.b32.xlu2 %v7024_v47, %s6040_s18  ;;  %911 = vrot.lane.b32.xlu1 %v855_v8, %s6040_s18  ;;  %v850_v15 = vadd.f32 %v849_v23, %v848_v63 }
 0x1a3   :  { %879 = vrot.lane.b32.xlu0 %v6980_v14, %s6044_s22  ;;  %v784_v37 = vadd.f32 %v783_v6, %v782_v32 }
 0x1a4   :  { %v851_v52 = vrot.slane %v850_v15, 2 }
 0x1a5   :  { %v785_v13 = vrot.slane %v784_v37, 2 }
 0x1a6   :  { %v852_v46 = vadd.f32 %v851_v52, %v850_v15 }
 0x1a7   :  { %v786_v51 = vadd.f32 %v785_v13, %v784_v37 }
 0x1a8   :  { %v853_v62 = vrot.slane %v852_v46, 1 }
 0x1a9   :  { %v787_v35 = vrot.slane %v786_v51, 1 }
 0x1aa   :  { %915 = vrot.lane.b32.xlu2 %v855_v8, %s6043_s21  ;;  %901 = vrot.lane.b32.xlu1 %v7024_v47, %s6038_s0  ;;  %v854_v40 = vadd.f32 %v853_v62, %v852_v46 }
 0x1ab   :  { %893 = vrot.lane.b32.xlu0 %v7024_v47, %s6043_s21  ;;  %v788_v20 = vadd.f32 %v787_v35, %v786_v51  ;;  %v6045_v35 = vmov 3136.0  }
 0x1ac   :  { %6026 = vrcp.f32 %v6045_v35 }
 0x1ad   :  { %v856_v30 = vadd.f32 %v854_v40, %v788_v20 }
 0x1b2   :  { %923 = vrot.lane.b32.xlu2 %v855_v8, %s6038_s0  ;;  %927 = vrot.lane.b32.xlu1 %v855_v8, %s6042_s20 }
 0x1b3   :  { %919 = vrot.lane.b32.xlu0 %v855_v8, %s6039_s17 }
 0x1ba   :  { %897 = vrot.lane.b32.xlu2 %v7024_v47, %s6039_s17  ;;  %935 = vrot.lane.b32.xlu1 %v855_v8, %s6041_s19 }
 0x1bb   :  { %931 = vrot.lane.b32.xlu0 %v855_v8, %s6044_s22 }
 0x1c2   :  { %949 = vrot.lane.b32.xlu2 %v856_v30, %s6039_s17  ;;  %941 = vrot.lane.b32.xlu1 %v856_v30, %s6040_s18 }
 0x1c3   :  { %945 = vrot.lane.b32.xlu0 %v856_v30, %s6043_s21 }
 0x1ca   :  { %957 = vrot.lane.b32.xlu2 %v856_v30, %s6042_s20  ;;  %953 = vrot.lane.b32.xlu1 %v856_v30, %s6038_s0 }
 0x1cb   :  { %905 = vrot.lane.b32.xlu0 %v7024_v47, %s6042_s20 }
 0x1ec   :  { %v872_v26 = vpop.permute.xlu2 %871 }
 0x1f4   :  { %v884_v36 = vpop.permute.xlu2 %883 }
 0x1fc   :  { %v890_v57 = vpop.permute.xlu2 %889 }
 0x204   :  { %v868_v11 = vpop.permute.xlu1 %867  ;;  %v916_v63 = vpop.permute.xlu2 %915 }
 0x205   :  { %v860_v12 = vpop.permute.xlu0 %859 }
 0x206   :  { %v862_v24 = vadd.f32 %v860_v12, %v6980_v14  ;;  %v6027_v12 = vpop.eup %6026 }
 0x207   :  { %vm966_vm0 = vweird.f32 %v6027_v12 }
 0x20c   :  { %v876_v43 = vpop.permute.xlu1 %875  ;;  %v924_v37 = vpop.permute.xlu2 %923 }
 0x20d   :  { %v864_v45 = vpop.permute.xlu0 %863 }
 0x20e   :  { %v866_v42 = vadd.f32 %v864_v45, %v862_v24 }
 0x210   :  { %v870_v32 = vadd.f32 %v868_v11, %v866_v42 }
 0x212   :  { %v874_v23 = vadd.f32 %v872_v26, %v870_v32  ;;  %v962_v32 = vmul.f32 3136.0, %v6027_v12 }
 0x214   :  { %v912_v44 = vpop.permute.xlu1 %911  ;;  %v878_v13 = vadd.f32 %v876_v43, %v874_v23  ;;  %v898_v45 = vpop.permute.xlu2 %897 }
 0x215   :  { %v880_v56 = vpop.permute.xlu0 %879  ;;  %v914_v52 = vadd.f32 %v912_v44, %v855_v8  ;;  %v963_v44 = vsub.f32 1.0, %v962_v32 }
 0x216   :  { %v882_v46 = vadd.f32 %v880_v56, %v878_v13 }
 0x217   :  { %v918_v62 = vadd.f32 %v916_v63, %v914_v52 }
 0x218   :  { %v886_v54 = vadd.f32 %v884_v36, %v882_v46  ;;  %v964_v36 = vmul.f32 %v6027_v12, %v963_v44 }
 0x21a   :  { %v887_v24 = vadd.f32 %v886_v54, %v7024_v47  ;;  %v965_v35 = vadd.f32 %v6027_v12, %v964_v36 }
 0x21c   :  { %v902_v6 = vpop.permute.xlu1 %901  ;;  %v892_v8 = vadd.f32 %v890_v57, %v887_v24  ;;  %v950_v63 = vpop.permute.xlu2 %949 }
 0x21d   :  { %v894_v15 = vpop.permute.xlu0 %893 }
 0x21e   :  { %v896_v23 = vadd.f32 %v894_v15, %v892_v8 }
 0x220   :  { %v900_v46 = vadd.f32 %v898_v45, %v896_v23 }
 0x224   :  { %v928_v51 = vpop.permute.xlu1 %927  ;;  %v958_v57 = vpop.permute.xlu2 %957 }
 0x225   :  { %v920_v40 = vpop.permute.xlu0 %919 }
 0x226   :  { %v922_v20 = vadd.f32 %v920_v40, %v918_v62 }
 0x228   :  { %v926_v14 = vadd.f32 %v924_v37, %v922_v20  ;;  %v967_v20 = vsel %vm966_vm0, %v6027_v12, %v965_v35  ;;  %v4841_v35 = vld [vmem:[%s9197_s3 + $0x178] sm:$0xf0] }
 0x22a   :  { %v930_v26 = vadd.f32 %v928_v51, %v926_v14  ;;  %v904_v51 = vadd.f32 %v902_v6, %v900_v46  ;;  %v984_v6 = vld [vmem:[%s9196_s5] sm:$0x1]  ;;  %v5819_v46 = vld [vmem:[%s9197_s3 + $0x174] sm:$0xf] }
 0x22c   :  { %v936_v11 = vpop.permute.xlu1 %935 }
 0x22d   :  { %v932_v42 = vpop.permute.xlu0 %931 }
 0x22e   :  { %v934_v33 = vadd.f32 %v932_v42, %v930_v26 }
 0x230   :  { %v938_v43 = vadd.f32 %v936_v11, %v934_v33 }
 0x232   :  { %v939_v56 = vadd.f32 %v938_v43, %v856_v30 }
 0x234   :  { %v942_v52 = vpop.permute.xlu1 %941 }
 0x235   :  { %v944_v13 = vadd.f32 %v942_v52, %v939_v56  ;;  %v946_v62 = vpop.permute.xlu0 %945  ;;  %v4839_v52 = vld [vmem:[%s9197_s3 + $0x170] sm:$0xf] }
 0x237   :  { %v948_v37 = vadd.f32 %v946_v62, %v944_v13  ;;  %v5820_v13 = vld [vmem:[%s9197_s3 + $0x174] sm:$0xf0]  ;;  %v4903_v62 = vld [vmem:[%s9197_s3 + $0x1f0] sm:$0xf] }
 0x238   :  { %v4840_v36 = vor.u32 %v5820_v13, %v4839_v52 }
 0x239   :  { %v952_v54 = vadd.f32 %v950_v63, %v948_v37  ;;  %v5836_v37 = vld [vmem:[%s9197_s3 + $0x1f4] sm:$0xf0] }
 0x23a   :  { %1732 = vmatpush.bf16.msra.mxu0 %v4840_v36 }
 0x23c   :  { %v954_v47 = vpop.permute.xlu1 %953 }
 0x23d   :  { %v956_v40 = vadd.f32 %v954_v47, %v952_v54  ;;  %v906_v14 = vpop.permute.xlu0 %905  ;;  %v4904_v54 = vor.u32 %v5836_v37, %v4903_v62  ;;  %v4844_v47 = vor.u32 %v5819_v46, %v4841_v35  ;;  %v986_v62 = vld [vmem:[%s9196_s5 + $0x1] sm:$0x1]  ;;  %v4825_v37 = vld [vmem:[%s9197_s3 + $0x158] sm:$0xf0]  ;;  %v5831_v46 = vld [vmem:[%s9197_s3 + $0x1d4] sm:$0xf] }
 0x23e   :  { %v908_v33 = vadd.f32 %v906_v14, %v904_v51  ;;  %v5835_v51 = vld [vmem:[%s9197_s3 + $0x1f4] sm:$0xf] }
 0x23f   :  { %v960_v24 = vadd.f32 %v958_v57, %v956_v40  ;;  %v4905_v40 = vld [vmem:[%s9197_s3 + $0x1f8] sm:$0xf0]  ;;  %v5818_v57 = vld [vmem:[%s9197_s3 + $0x164] sm:$0xf0]  ;;  %1776 = vmatpush.bf16.msra.mxu1 %v4904_v54  ;;  %1820 = vmatpush.bf16.msra.mxu2 %v4844_v47  ;;  %v4815_v47 = vld [vmem:[%s9197_s3 + $0x140] sm:$0xf] }
 0x240   :  { %v968_v30 = vmul.f32 %v967_v20, %v908_v33  ;;  %v4908_v14 = vor.u32 %v5835_v51, %v4905_v40  ;;  %v4895_v33 = vld [vmem:[%s9197_s3 + $0x1e0] sm:$0xf]  ;;  %v4889_v54 = vld [vmem:[%s9197_s3 + $0x1d8] sm:$0xf0]  ;;  %v5814_v51 = vld [vmem:[%s9197_s3 + $0x144] sm:$0xf0] }
 0x241   :  { %v969_v11 = vmul.f32 %v967_v20, %v960_v24  ;;  %v4831_v20 = vld [vmem:[%s9197_s3 + $0x160] sm:$0xf]  ;;  %v5834_v24 = vld [vmem:[%s9197_s3 + $0x1e4] sm:$0xf0]  ;;  %v4892_v40 = vor.u32 %v5831_v46, %v4889_v54 }
 0x242   :  { %v970_v15 = vmul.f32 %v968_v30, %v968_v30  ;;  %1864 = vmatpush.bf16.msra.mxu3 %v4908_v14  ;;  %v4879_v14 = vld [vmem:[%s9197_s3 + $0x1c0] sm:$0xf]  ;;  %v5810_v46 = vld [vmem:[%s9197_s3 + $0x124] sm:$0xf0] }
 0x244   :  { %v971_v26 = vsub.f32 %v969_v11, %v970_v15  ;;  %v4832_v11 = vor.u32 %v5818_v57, %v4831_v20  ;;  %v5817_v15 = vld [vmem:[%s9197_s3 + $0x164] sm:$0xf]  ;;  %v4816_v20 = vor.u32 %v5814_v51, %v4815_v47  ;;  %v5830_v57 = vld [vmem:[%s9197_s3 + $0x1c4] sm:$0xf0] }
 0x245   :  { %v5826_v47 = vld [vmem:[%s9197_s3 + $0x1a4] sm:$0xf0] }
 0x246   :  { %v972_v42 = vmax.f32 %v971_v26, 0.0  ;;  %v4833_v26 = vld [vmem:[%s9197_s3 + $0x168] sm:$0xf0]  ;;  %1733 = vmatpush.bf16.msra.mxu0 %v4832_v11 }
 0x247   :  { %v4817_v11 = vld [vmem:[%s9197_s3 + $0x148] sm:$0xf0] }
 0x248   :  { %v973_v32 = vadd.f32 1e-05, %v972_v42  ;;  %v5833_v42 = vld [vmem:[%s9197_s3 + $0x1e4] sm:$0xf] }
 0x24a   :  { %6028 = vrsqrt.f32 %v973_v32  ;;  %vm980_vm2 = vweird.f32 %v973_v32 }
 0x250   :  { %v6029_v8 = vpop.eup %6028 }
 0x251   :  { %v975_v45 = vmul.f32 %v6029_v8, %v973_v32  ;;  %vm981_vm1 = vweird.f32 %v6029_v8  ;;  %v4896_v32 = vor.u32 %v5834_v24, %v4895_v33  ;;  %v4880_v33 = vor.u32 %v5830_v57, %v4879_v14  ;;  %v5813_v24 = vld [vmem:[%s9197_s3 + $0x144] sm:$0xf] }
 0x252   :  { %vm982_vm3 = vmor %vm980_vm2, %vm981_vm1  ;;  %v5825_v14 = vld [vmem:[%s9197_s3 + $0x1a4] sm:$0xf] }
 0x253   :  { %v976_v43 = vmul.f32 %v6029_v8, %v975_v45  ;;  %v4897_v45 = vld [vmem:[%s9197_s3 + $0x1e8] sm:$0xf0]  ;;  %1777 = vmatpush.bf16.msra.mxu1 %v4896_v32 }
 0x255   :  { %v977_v44 = vmul.f32 0.5, %v976_v43  ;;  %v4823_v43 = vld [vmem:[%s9197_s3 + $0x150] sm:$0xf] }
 0x257   :  { %v978_v56 = vsub.f32 1.5, %v977_v44  ;;  %v5816_v44 = vld [vmem:[%s9197_s3 + $0x154] sm:$0xf0] }
 0x259   :  { %v979_v12 = vmul.f32 %v6029_v8, %v978_v56  ;;  %v4900_v56 = vor.u32 %v5833_v42, %v4897_v45  ;;  %v4881_v42 = vld [vmem:[%s9197_s3 + $0x1c8] sm:$0xf0]  ;;  %v5812_v45 = vld [vmem:[%s9197_s3 + $0x134] sm:$0xf0] }
 0x25b   :  { %v983_v63 = vsel %vm982_vm3, %v6029_v8, %v979_v12  ;;  %v4836_v8 = vor.u32 %v5817_v15, %v4833_v26  ;;  %v5832_v12 = vld [vmem:[%s9197_s3 + $0x1d4] sm:$0xf0]  ;;  %1865 = vmatpush.bf16.msra.mxu3 %v4900_v56  ;;  %v5829_v15 = vld [vmem:[%s9197_s3 + $0x1c4] sm:$0xf]  ;;  %v4820_v26 = vor.u32 %v5813_v24, %v4817_v11  ;;  %v4791_v24 = vld [vmem:[%s9197_s3 + $0x110] sm:$0xf] }
 0x25c   :  { %v7059_v23 = vmul.f32 %v984_v6, %v983_v63  ;;  %v4887_v6 = vld [vmem:[%s9197_s3 + $0x1d0] sm:$0xf]  ;;  %v4824_v63 = vor.u32 %v5816_v44, %v4823_v43  ;;  %v4884_v32 = vor.u32 %v5829_v15, %v4881_v42  ;;  %v5828_v56 = vld [vmem:[%s9197_s3 + $0x1b4] sm:$0xf0] }
 0x25d   :  { %1821 = vmatpush.bf16.msra.mxu2 %v4836_v8  ;;  %v4888_v13 = vor.u32 %v5832_v12, %v4887_v6  ;;  %v4807_v8 = vld [vmem:[%s9197_s3 + $0x130] sm:$0xf]  ;;  %v5811_v12 = vld [vmem:[%s9197_s3 + $0x134] sm:$0xf]  ;;  %v5808_v11 = vld [vmem:[%s9197_s3 + $0x114] sm:$0xf0] }
 0x25e   :  { %996 = vrot.lane.b32.xlu2 %v7059_v23, %s6042_s20  ;;  %993 = vrot.lane.b32.xlu1 %v7059_v23, %s6044_s22  ;;  %v987_v52 = vmul.f32 %v7059_v23, %v968_v30  ;;  %v5815_v30 = vld [vmem:[%s9197_s3 + $0x154] sm:$0xf]  ;;  %v4871_v43 = vld [vmem:[%s9197_s3 + $0x1b0] sm:$0xf]  ;;  %v4808_v44 = vor.u32 %v5812_v45, %v4807_v8  ;;  %v4792_v42 = vor.u32 %v5808_v11, %v4791_v24 }
 0x25f   :  { %990 = vrot.lane.b32.xlu0 %v7059_v23, %s6041_s19  ;;  %1734 = vmatpush.bf16.msra.mxu0 %v4824_v63  ;;  %v4828_v35 = vor.u32 %v5815_v30, %v4825_v37  ;;  %v4872_v6 = vor.u32 %v5828_v56, %v4871_v43  ;;  %v4809_v63 = vld [vmem:[%s9197_s3 + $0x138] sm:$0xf0]  ;;  %v4799_v37 = vld [vmem:[%s9197_s3 + $0x120] sm:$0xf]  ;;  %v5824_v8 = vld [vmem:[%s9197_s3 + $0x194] sm:$0xf0] }
 0x260   :  { %v7137_v36 = vsub.f32 %v986_v62, %v987_v52  ;;  %1778 = vmatpush.bf16.msra.mxu1 %v4888_v13  ;;  %1866 = vmatpush.bf16.msra.mxu3 %v4892_v40  ;;  %v5827_v52 = vld [vmem:[%s9197_s3 + $0x1b4] sm:$0xf]  ;;  %v4812_v13 = vor.u32 %v5811_v12, %v4809_v63  ;;  %v4873_v62 = vld [vmem:[%s9197_s3 + $0x1b8] sm:$0xf0]  ;;  %v4800_v54 = vor.u32 %v5810_v46, %v4799_v37  ;;  %v5809_v40 = vld [vmem:[%s9197_s3 + $0x124] sm:$0xf] }
 0x261   :  { %1822 = vmatpush.bf16.msra.mxu2 %v4828_v35  ;;  %v4876_v30 = vor.u32 %v5827_v52, %v4873_v62  ;;  %v4863_v35 = vld [vmem:[%s9197_s3 + $0x1a0] sm:$0xf]  ;;  %v5807_v56 = vld [vmem:[%s9197_s3 + $0x114] sm:$0xf]  ;;  %v4857_v52 = vld [vmem:[%s9197_s3 + $0x198] sm:$0xf0] }
 0x262   :  { %v4864_v51 = vor.u32 %v5826_v47, %v4863_v35  ;;  %v5823_v12 = vld [vmem:[%s9197_s3 + $0x194] sm:$0xf]  ;;  %v5806_v62 = vld [vmem:[%s9197_s3 + $0x104] sm:$0xf0]  ;;  %v4847_v35 = vld [vmem:[%s9197_s3 + $0x180] sm:$0xf] }
 0x263   :  { %1735 = vmatpush.bf16.msra.mxu0 %v4816_v20  ;;  %v4801_v20 = vld [vmem:[%s9197_s3 + $0x128] sm:$0xf0]  ;;  %v4860_v37 = vor.u32 %v5823_v12, %v4857_v52  ;;  %v5805_v47 = vld [vmem:[%s9197_s3 + $0x104] sm:$0xf]  ;;  %v5788_v12 = vld [vmem:[%s9197_s3 + $0x74] sm:$0xf0] }
 0x264   :  { %1779 = vmatpush.bf16.msra.mxu1 %v4880_v33  ;;  %1867 = vmatpush.bf16.msra.mxu3 %v4884_v32  ;;  %v4804_v57 = vor.u32 %v5809_v40, %v4801_v20  ;;  %v4865_v33 = vld [vmem:[%s9197_s3 + $0x1a8] sm:$0xf0]  ;;  %v4855_v32 = vld [vmem:[%s9197_s3 + $0x190] sm:$0xf]  ;;  %v5821_v20 = vld [vmem:[%s9197_s3 + $0x184] sm:$0xf] }
 0x265   :  { %1823 = vmatpush.bf16.msra.mxu2 %v4820_v26  ;;  %v4868_v26 = vor.u32 %v5825_v14, %v4865_v33  ;;  %v4856_v45 = vor.u32 %v5824_v8, %v4855_v32  ;;  %v4785_v40 = vld [vmem:[%s9197_s3 + $0x108] sm:$0xf0] }
 0x266   :  { %1005 = vrot.lane.b32.xlu2 %v7059_v23, %s6043_s21  ;;  %999 = vrot.lane.b32.xlu1 %v7059_v23, %s6038_s0  ;;  %v4849_v14 = vld [vmem:[%s9197_s3 + $0x188] sm:$0xf0]  ;;  %v4788_v33 = vor.u32 %v5805_v47, %v4785_v40 }
 0x267   :  { %1002 = vrot.lane.b32.xlu0 %v7059_v23, %s6039_s17  ;;  %1736 = vmatpush.bf16.msra.mxu0 %v4808_v44  ;;  %v4852_v24 = vor.u32 %v5821_v20, %v4849_v14 }
 0x268   :  { %1780 = vmatpush.bf16.msra.mxu1 %v4872_v6  ;;  %1868 = vmatpush.bf16.msra.mxu3 %v4876_v30  ;;  %v4793_v6 = vld [vmem:[%s9197_s3 + $0x118] sm:$0xf0] }
 0x269   :  { %1824 = vmatpush.bf16.msra.mxu2 %v4812_v13  ;;  %v4796_v63 = vor.u32 %v5807_v56, %v4793_v6  ;;  %v4783_v13 = vld [vmem:[%s9197_s3 + $0x100] sm:$0xf]  ;;  %v4967_v6 = vld [vmem:[%s9197_s3 + $0x70] sm:$0xf] }
 0x26a   :  { %v4784_v46 = vor.u32 %v5806_v62, %v4783_v13 }
 0x26b   :  { %1737 = vmatpush.bf16.msra.mxu0 %v4800_v54  ;;  %v5822_v54 = vld [vmem:[%s9197_s3 + $0x184] sm:$0xf0] }
 0x26c   :  { %1781 = vmatpush.bf16.msra.mxu1 %v4864_v51  ;;  %1869 = vmatpush.bf16.msra.mxu3 %v4868_v26  ;;  %v4848_v51 = vor.u32 %v5822_v54, %v4847_v35 }
 0x26d   :  { %1825 = vmatpush.bf16.msra.mxu2 %v4804_v57 }
 0x26e   :  { %1008 = vrot.lane.b32.xlu1 %v7059_v23, %s6040_s18  ;;  %1030 = vrot.lane.b32.xlu2 %v7137_v36, %s6044_s22 }
 0x26f   :  { %1027 = vrot.lane.b32.xlu0 %v7137_v36, %s6041_s19  ;;  %1738 = vmatpush.bf16.msra.mxu0 %v4792_v42 }
 0x270   :  { %1782 = vmatpush.bf16.msra.mxu1 %v4856_v45  ;;  %1870 = vmatpush.bf16.msra.mxu3 %v4860_v37 }
 0x271   :  { %1826 = vmatpush.bf16.msra.mxu2 %v4796_v63 }
 0x273   :  { %1739 = vmatpush.bf16.msra.mxu0 %v4784_v46 }
 0x274   :  { %1783 = vmatpush.bf16.msra.mxu1 %v4848_v51  ;;  %1871 = vmatpush.bf16.msra.mxu3 %v4852_v24 }
 0x275   :  { %1827 = vmatpush.bf16.msra.mxu2 %v4788_v33 }
 0x276   :  { %1033 = vrot.lane.b32.xlu1 %v7137_v36, %s6042_s20  ;;  %1039 = vrot.lane.b32.xlu2 %v7137_v36, %s6039_s17 }
 0x277   :  { %1036 = vrot.lane.b32.xlu0 %v7137_v36, %s6038_s0 }
 0x27e   :  { %1045 = vrot.lane.b32.xlu1 %v7137_v36, %s6040_s18 }
 0x27f   :  { %1042 = vrot.lane.b32.xlu0 %v7137_v36, %s6043_s21 }
 0x2b8   :  { %v997_v15 = vpop.permute.xlu2 %996 }
 0x2c0   :  { %v1006_v30 = vpop.permute.xlu2 %1005 }
 0x2c8   :  { %v1031_v32 = vpop.permute.xlu2 %1030 }
 0x2d0   :  { %v994_v43 = vpop.permute.xlu1 %993  ;;  %v1040_v47 = vpop.permute.xlu2 %1039 }
 0x2d1   :  { %v991_v44 = vpop.permute.xlu0 %990 }
 0x2d2   :  { %v1012_v26 = vsel %vm1011_vm4, %v7059_v23, %v991_v44  ;;  %v4968_v44 = vor.u32 %v5788_v12, %v4967_v6 }
 0x2d3   :  { %v1014_v42 = vsel %vm1013_vm5, %v1012_v26, %v994_v43  ;;  %v5031_v43 = vld [vmem:[%s9197_s3 + $0xf0] sm:$0xf] }
 0x2d4   :  { %v1016_v56 = vsel %vm1015_vm6, %v1014_v42, %v997_v15  ;;  %v5804_v15 = vld [vmem:[%s9197_s3 + $0xf4] sm:$0xf0]  ;;  %2068 = vmatpush.bf16.msrb.mxu0 %v4968_v44 }
 0x2d5   :  { %v5032_v63 = vor.u32 %v5804_v15, %v5031_v43  ;;  %v9313_v43 = vld [vmem:[#allocation5_spill] sm:$0xff] }
 0x2d7   :  { %2112 = vmatpush.bf16.msrb.mxu1 %v5032_v63 }
 0x2d8   :  { %v1000_v57 = vpop.permute.xlu1 %999 }
 0x2d9   :  { %v1003_v11 = vpop.permute.xlu0 %1002  ;;  %v1018_v23 = vsel %vm1017_vm7, %v1016_v56, %v1000_v57 }
 0x2da   :  { %v1020_v13 = vsel %vm1019_vm8, %v1018_v23, %v1003_v11  ;;  %v9312_v23 = vld [vmem:[#allocation3_spill] sm:$0xff] }
 0x2db   :  { %v1025_v46 = vsel %vm1021_vm9, %v1020_v13, 0.0  ;;  %v1022_v20 = vsel %vm1021_vm9, %v1020_v13, %v1006_v30  ;;  %v4959_v13 = vld [vmem:[%s9197_s3 + $0x60] sm:$0xf] }
 0x2e0   :  { %v1009_v8 = vpop.permute.xlu1 %1008 }
 0x2e1   :  { %v1028_v45 = vpop.permute.xlu0 %1027  ;;  %v1024_v57 = vsel %vm1023_vm10, %v1022_v20, %v1009_v8  ;;  %v5787_v8 = vld [vmem:[%s9197_s3 + $0x74] sm:$0xf] }
 0x2e2   :  { %v1048_v52 = vsel %vm1011_vm4, %v7137_v36, %v1028_v45  ;;  %v7312_v36 = vperm.slane %v1025_v46, 0  ;;  %v7319_v24 = vperm.slane %v1024_v57, 0  ;;  %v5786_v46 = vld [vmem:[%s9197_s3 + $0x64] sm:$0xf0] }
 0x2e3   :  { %v1049_v37 = vsel %vm1013_vm5, %v1048_v52, %v1031_v32  ;;  %v5033_v52 = vld [vmem:[%s9197_s3 + $0xf8] sm:$0xf0] }
 0x2e4   :  { %v1059_v26 = vmul.f32 %v7312_v36, %v9310_v25  ;;  %v1061_v42 = vmul.f32 %v7312_v36, %v9311_v4  ;;  %v4969_v25 = vld [vmem:[%s9197_s3 + $0x78] sm:$0xf0]  ;;  %v5803_v4 = vld [vmem:[%s9197_s3 + $0xf4] sm:$0xf]  ;;  %v1058_v44 = vmul.f32 %v7319_v24, %v9312_v23  ;;  %v1060_v15 = vmul.f32 %v7319_v24, %v9313_v43 }
 0x2e5   :  { %v4972_v63 = vor.u32 %v5787_v8, %v4969_v25  ;;  %v1065_v8 = vmul.f32 %v7312_v36, %v6572_v48 }
 0x2e7   :  { %2156 = vmatpush.bf16.msrb.mxu2 %v4972_v63 }
 0x2e8   :  { %v1034_v62 = vpop.permute.xlu1 %1033 }
 0x2e9   :  { %v1050_v35 = vsel %vm1015_vm6, %v1049_v37, %v1034_v62  ;;  %v1037_v54 = vpop.permute.xlu0 %1036  ;;  %v1063_v62 = vmul.f32 %v7312_v36, %v6567_v38  ;;  %v5036_v37 = vor.u32 %v5803_v4, %v5033_v52  ;;  %v4960_v38 = vor.u32 %v5786_v46, %v4959_v13 }
 0x2ea   :  { %v1051_v51 = vsel %vm1017_vm7, %v1050_v35, %v1037_v54  ;;  %v5023_v35 = vld [vmem:[%s9197_s3 + $0xe0] sm:$0xf]  ;;  %v5802_v54 = vld [vmem:[%s9197_s3 + $0xe4] sm:$0xf0] }
 0x2eb   :  { %v1052_v40 = vsel %vm1019_vm8, %v1051_v51, %v1040_v47  ;;  %2200 = vmatpush.bf16.msrb.mxu3 %v5036_v37  ;;  %2069 = vmatpush.bf16.msrb.mxu0 %v4960_v38  ;;  %v5801_v38 = vld [vmem:[%s9197_s3 + $0xe4] sm:$0xf] }
 0x2ec   :  { %v1055_v14 = vsel %vm1021_vm9, %v1052_v40, 0.0 }
 0x2ed   :  { %v7317_v33 = vperm.slane %v1055_v14, 0  ;;  %v5024_v14 = vor.u32 %v5802_v54, %v5023_v35 }
 0x2ef   :  { %v1089_v30 = vadd.f32 %v7317_v33, %v1059_v26  ;;  %v1091_v56 = vadd.f32 %v7317_v33, %v1061_v42  ;;  %v9314_v26 = vld [vmem:[#allocation7_spill] sm:$0xff]  ;;  %2113 = vmatpush.bf16.msrb.mxu1 %v5024_v14  ;;  %v1093_v63 = vadd.f32 %v7317_v33, %v1063_v62  ;;  %v1095_v13 = vadd.f32 %v7317_v33, %v1065_v8 }
 0x2f0   :  { %v1046_v11 = vpop.permute.xlu1 %1045  ;;  %v1062_v42 = vmul.f32 %v7319_v24, %v9314_v26  ;;  %v5784_v26 = vld [vmem:[%s9197_s3 + $0x54] sm:$0xf0] }
 0x2f1   :  { %v1043_v32 = vpop.permute.xlu0 %1042  ;;  %v1203_v20 = vmul.f32 0.01, %v1091_v56  ;;  %vm1173_vm11 = vcmp.ge.f32.partialorder %v1089_v30, 0.0  ;;  %vm1175_vm12 = vcmp.ge.f32.partialorder %v1091_v56, 0.0  ;;  %vm1177_vm15 = vcmp.ge.f32.partialorder %v1093_v63, 0.0 }
 0x2f2   :  { %v1053_v45 = vsel %vm1021_vm9, %v1052_v40, %v1043_v32  ;;  %v1201_v40 = vmul.f32 0.01, %v1089_v30  ;;  %v9315_v32 = vld [vmem:[#allocation8_spill] sm:$0xff]  ;;  %vm1179_vm0 = vcmp.ge.f32.partialorder %v1095_v13, 0.0  ;;  %v1207_v62 = vmul.f32 0.01, %v1095_v13 }
 0x2f3   :  { %v1054_v6 = vsel %vm1023_vm10, %v1053_v45, %v1046_v11  ;;  %v1064_v45 = vmul.f32 %v7319_v24, %v9315_v32  ;;  %v1231_v23 = vsel %vm1175_vm12, %v1091_v56, %v1203_v20  ;;  %v4961_v20 = vld [vmem:[%s9197_s3 + $0x68] sm:$0xf0] }
 0x2f4   :  { %v7338_v12 = vperm.slane %v1054_v6, 0  ;;  %v1229_v25 = vsel %vm1173_vm11, %v1089_v30, %v1201_v40  ;;  %v5785_v40 = vld [vmem:[%s9197_s3 + $0x64] sm:$0xf] }
 0x2f5   :  { %v4964_v14 = vor.u32 %v5785_v40, %v4961_v20  ;;  %v5783_v20 = vld [vmem:[%s9197_s3 + $0x54] sm:$0xf] }
 0x2f6   :  { %v1088_v47 = vadd.f32 %v7338_v12, %v1058_v44  ;;  %v1090_v51 = vadd.f32 %v7338_v12, %v1060_v15  ;;  %v1092_v15 = vadd.f32 %v7338_v12, %v1062_v42  ;;  %v1094_v52 = vadd.f32 %v7338_v12, %v1064_v45 }
 0x2f7   :  { %2157 = vmatpush.bf16.msrb.mxu2 %v4964_v14  ;;  %v5799_v14 = vld [vmem:[%s9197_s3 + $0xd4] sm:$0xf] }
 0x2f8   :  { %vm1172_vm13 = vcmp.ge.f32.partialorder %v1088_v47, 0.0  ;;  %vm1174_vm14 = vcmp.ge.f32.partialorder %v1090_v51, 0.0  ;;  %v1200_v57 = vmul.f32 0.01, %v1088_v47  ;;  %v1202_v11 = vmul.f32 0.01, %v1090_v51 }
 0x2f9   :  { %v1204_v30 = vmul.f32 0.01, %v1092_v15  ;;  %v1206_v56 = vmul.f32 0.01, %v1094_v52  ;;  %vm1176_vm1 = vcmp.ge.f32.partialorder %v1092_v15, 0.0  ;;  %vm1178_vm2 = vcmp.ge.f32.partialorder %v1094_v52, 0.0 }
 0x2fa   :  { %v1228_v6 = vsel %vm1172_vm13, %v1088_v47, %v1200_v57  ;;  %v1230_v4 = vsel %vm1174_vm14, %v1090_v51, %v1202_v11  ;;  %v1205_v51 = vmul.f32 0.01, %v1093_v63  ;;  %v5025_v57 = vld [vmem:[%s9197_s3 + $0xe8] sm:$0xf0]  ;;  %v4951_v11 = vld [vmem:[%s9197_s3 + $0x50] sm:$0xf] }
 0x2fb   :  { %v1424_v44 = vpack.c.bf16 %v1229_v25, %v1228_v6  ;;  %v1425_v43 = vpack.c.bf16 %v1231_v23, %v1230_v4  ;;  %v1232_v42 = vsel %vm1176_vm1, %v1092_v15, %v1204_v30  ;;  %v1234_v32 = vsel %vm1178_vm2, %v1094_v52, %v1206_v56  ;;  %v5015_v6 = vld [vmem:[%s9197_s3 + $0xd0] sm:$0xf]  ;;  %v5800_v25 = vld [vmem:[%s9197_s3 + $0xd4] sm:$0xf0] }
 0x2fc   :  { %v5028_v45 = vor.u32 %v5801_v38, %v5025_v57  ;;  %v4952_v8 = vor.u32 %v5784_v26, %v4951_v11  ;;  %v5016_v4 = vor.u32 %v5800_v25, %v5015_v6  ;;  %v1233_v23 = vsel %vm1177_vm15, %v1093_v63, %v1205_v51  ;;  %v4953_v38 = vld [vmem:[%s9197_s3 + $0x58] sm:$0xf0]  ;;  %v4943_v26 = vld [vmem:[%s9197_s3 + $0x40] sm:$0xf] }
 0x2fd   :  { %v1452_v37 = vunpack.c.l.b16 %v1424_v44  ;;  %v1454_v46 = vunpack.c.l.b16 %v1425_v43  ;;  %v1453_v48 = vunpack.c.h.b16 %v1424_v44  ;;  %v1455_v35 = vunpack.c.h.b16 %v1425_v43  ;;  %v5017_v11 = vld [vmem:[%s9197_s3 + $0xd8] sm:$0xf0]  ;;  %v5007_v25 = vld [vmem:[%s9197_s3 + $0xc0] sm:$0xf] }
 0x2fe   :  { %v1235_v44 = vsel %vm1179_vm0, %v1095_v13, %v1207_v62  ;;  %2201 = vmatpush.bf16.msrb.mxu3 %v5028_v45  ;;  %2070 = vmatpush.bf16.msrb.mxu0 %v4952_v8  ;;  %v1426_v43 = vpack.c.bf16 %v1233_v23, %v1232_v42  ;;  %v1066_v52 = vmul.f32 %v7319_v24, %v6577_v3  ;;  %v5782_v42 = vld [vmem:[%s9197_s3 + $0x44] sm:$0xf0] }
 0x2ff   :  { %v1480_v54 = vpack.c.b16 %v1454_v46, %v1452_v37  ;;  %v1481_v47 = vpack.c.b16 %v1455_v35, %v1453_v48  ;;  %v1427_v15 = vpack.c.bf16 %v1235_v44, %v1234_v32  ;;  %2114 = vmatpush.bf16.msrb.mxu1 %v5016_v4  ;;  %v1067_v37 = vmul.f32 %v7312_v36, %v6579_v7  ;;  %v5798_v4 = vld [vmem:[%s9197_s3 + $0xc4] sm:$0xf0] }
 0x300   :  { %v1068_v46 = vmul.f32 %v7319_v24, %v6728_v22  ;;  %v1069_v48 = vmul.f32 %v7312_v36, %v6742_v39  ;;  %v1456_v63 = vunpack.c.l.b16 %v1426_v43  ;;  %v1457_v13 = vunpack.c.h.b16 %v1426_v43 }
 0x301   :  { %1740 = vmatmul.bf16.vlgmr.msra.gmra.mxu0 %v1480_v54  ;;  %1784 = vmatmul.bf16.vlgmr.msra.gmra.mxu1 %v1481_v47  ;;  %v1458_v35 = vunpack.c.l.b16 %v1427_v15  ;;  %v1097_v30 = vadd.f32 %v7317_v33, %v1067_v37  ;;  %v4956_v57 = vor.u32 %v5783_v20, %v4953_v38  ;;  %v5020_v8 = vor.u32 %v5799_v14, %v5017_v11  ;;  %v4945_v20 = vld [vmem:[%s9197_s3 + $0x48] sm:$0xf0]  ;;  %v5797_v38 = vld [vmem:[%s9197_s3 + $0xc4] sm:$0xf]  ;;  %v4935_v11 = vld [vmem:[%s9197_s3 + $0x30] sm:$0xf] }
 0x302   :  { %1828 = vmatmul.bf16.vlgmr.msra.gmra.mxu2 %v1480_v54  ;;  %1872 = vmatmul.bf16.vlgmr.msra.gmra.mxu3 %v1481_v47  ;;  %v1459_v54 = vunpack.c.h.b16 %v1427_v15  ;;  %v1096_v47 = vadd.f32 %v7338_v12, %v1066_v52  ;;  %v1098_v56 = vadd.f32 %v7338_v12, %v1068_v46  ;;  %v1099_v3 = vadd.f32 %v7317_v33, %v1069_v48 }
 0x303   :  { %v7412_v51 = vpack.c.b16 %v1458_v35, %v1456_v63  ;;  %vm1181_vm4 = vcmp.ge.f32.partialorder %v1097_v30, 0.0  ;;  %v1209_v62 = vmul.f32 0.01, %v1097_v30  ;;  %v4944_v6 = vor.u32 %v5782_v42, %v4943_v26  ;;  %2158 = vmatpush.bf16.msrb.mxu2 %v4956_v57  ;;  %2202 = vmatpush.bf16.msrb.mxu3 %v5020_v8  ;;  %v5009_v57 = vld [vmem:[%s9197_s3 + $0xc8] sm:$0xf0] }
 0x304   :  { %v7414_v7 = vpack.c.b16 %v1459_v54, %v1457_v13  ;;  %vm1180_vm3 = vcmp.ge.f32.partialorder %v1096_v47, 0.0  ;;  %v1208_v22 = vmul.f32 0.01, %v1096_v47  ;;  %v1210_v39 = vmul.f32 0.01, %v1098_v56 }
 0x305   :  { %vm1182_vm6 = vcmp.ge.f32.partialorder %v1098_v56, 0.0  ;;  %vm1183_vm8 = vcmp.ge.f32.partialorder %v1099_v3, 0.0  ;;  %v1211_v40 = vmul.f32 0.01, %v1099_v3  ;;  %v5008_v23 = vor.u32 %v5798_v4, %v5007_v25  ;;  %2071 = vmatpush.bf16.msrb.mxu0 %v4944_v6  ;;  %v5780_v26 = vld [vmem:[%s9197_s3 + $0x34] sm:$0xf0] }
 0x306   :  { %v1236_v32 = vsel %vm1180_vm3, %v1096_v47, %v1208_v22  ;;  %v1238_v45 = vsel %vm1182_vm6, %v1098_v56, %v1210_v39  ;;  %v1237_v44 = vsel %vm1181_vm4, %v1097_v30, %v1209_v62  ;;  %v1070_v37 = vmul.f32 %v7319_v24, %v6593_v34  ;;  %v4999_v6 = vld [vmem:[%s9197_s3 + $0xb0] sm:$0xf]  ;;  %v5796_v25 = vld [vmem:[%s9197_s3 + $0xb4] sm:$0xf0]  ;;  %v5779_v4 = vld [vmem:[%s9197_s3 + $0x34] sm:$0xf] }
 0x307   :  { %v1239_v43 = vsel %vm1183_vm8, %v1099_v3, %v1211_v40  ;;  %v1428_v15 = vpack.c.bf16 %v1237_v44, %v1236_v32  ;;  %2115 = vmatpush.bf16.msrb.mxu1 %v5008_v23  ;;  %v1071_v46 = vmul.f32 %v7312_v36, %v6595_v41  ;;  %v1072_v48 = vmul.f32 %v7319_v24, %v6757_v29  ;;  %v5781_v40 = vld [vmem:[%s9197_s3 + $0x44] sm:$0xf] }
 0x308   :  { %v1429_v52 = vpack.c.bf16 %v1239_v43, %v1238_v45  ;;  %v1073_v63 = vmul.f32 %v7312_v36, %v6765_v50  ;;  %v1100_v30 = vadd.f32 %v7338_v12, %v1070_v37  ;;  %v4948_v14 = vor.u32 %v5781_v40, %v4945_v20  ;;  %v4937_v43 = vld [vmem:[%s9197_s3 + $0x38] sm:$0xf0] }
 0x309   :  { %v1460_v35 = vunpack.c.l.b16 %v1428_v15  ;;  %v1461_v54 = vunpack.c.h.b16 %v1428_v15  ;;  %v1101_v56 = vadd.f32 %v7317_v33, %v1071_v46  ;;  %v1102_v3 = vadd.f32 %v7338_v12, %v1072_v48  ;;  %v5795_v15 = vld [vmem:[%s9197_s3 + $0xb4] sm:$0xf] }
 0x30a   :  { %v1462_v13 = vunpack.c.l.b16 %v1429_v52  ;;  %v1463_v47 = vunpack.c.h.b16 %v1429_v52  ;;  %v1103_v34 = vadd.f32 %v7317_v33, %v1073_v63  ;;  %vm1184_vm10 = vcmp.ge.f32.partialorder %v1100_v30, 0.0  ;;  %2159 = vmatpush.bf16.msrb.mxu2 %v4948_v14  ;;  %v5001_v52 = vld [vmem:[%s9197_s3 + $0xb8] sm:$0xf0]  ;;  %v4927_v14 = vld [vmem:[%s9197_s3 + $0x20] sm:$0xf] }
 0x30b   :  { %vm1185_vm11 = vcmp.ge.f32.partialorder %v1101_v56, 0.0  ;;  %v1212_v29 = vmul.f32 0.01, %v1100_v30  ;;  %v1214_v50 = vmul.f32 0.01, %v1102_v3  ;;  %vm1186_vm12 = vcmp.ge.f32.partialorder %v1102_v3, 0.0 }
 0x30c   :  { %v7459_v22 = vpack.c.b16 %v1462_v13, %v1460_v35  ;;  %v7461_v41 = vpack.c.b16 %v1463_v47, %v1461_v54  ;;  %vm1187_vm13 = vcmp.ge.f32.partialorder %v1103_v34, 0.0  ;;  %v1213_v39 = vmul.f32 0.01, %v1101_v56 }
 0x30d   :  { %v1215_v62 = vmul.f32 0.01, %v1103_v34  ;;  %v1240_v42 = vsel %vm1184_vm10, %v1100_v30, %v1212_v29  ;;  %v1242_v32 = vsel %vm1186_vm12, %v1102_v3, %v1214_v50  ;;  %v5012_v45 = vor.u32 %v5797_v38, %v5009_v57  ;;  %v5778_v57 = vld [vmem:[%s9197_s3 + $0x24] sm:$0xf0] }
 0x30e   :  { %v4936_v8 = vor.u32 %v5780_v26, %v4935_v11  ;;  %v1241_v23 = vsel %vm1185_vm11, %v1101_v56, %v1213_v39  ;;  %v5000_v44 = vor.u32 %v5796_v25, %v4999_v6  ;;  %v4940_v46 = vor.u32 %v5779_v4, %v4937_v43  ;;  %v4991_v11 = vld [vmem:[%s9197_s3 + $0xa0] sm:$0xf] }
 0x30f   :  { %v1243_v37 = vsel %vm1187_vm13, %v1103_v34, %v1215_v62  ;;  %2203 = vmatpush.bf16.msrb.mxu3 %v5012_v45  ;;  %v5004_v48 = vor.u32 %v5795_v15, %v5001_v52  ;;  %v1430_v63 = vpack.c.bf16 %v1241_v23, %v1240_v42  ;;  %v1074_v13 = vmul.f32 %v7319_v24, %v6609_v58  ;;  %v5794_v42 = vld [vmem:[%s9197_s3 + $0xa4] sm:$0xf0]  ;;  %v4929_v45 = vld [vmem:[%s9197_s3 + $0x28] sm:$0xf0]  ;;  %v5793_v23 = vld [vmem:[%s9197_s3 + $0xa4] sm:$0xf] }
 0x310   :  { %2072 = vmatpush.bf16.msrb.mxu0 %v4936_v8  ;;  %v1431_v35 = vpack.c.bf16 %v1243_v37, %v1242_v32  ;;  %2116 = vmatpush.bf16.msrb.mxu1 %v5000_v44  ;;  %v1075_v54 = vmul.f32 %v7312_v36, %v9287_v21  ;;  %v1076_v47 = vmul.f32 %v7319_v24, %v6784_v53  ;;  %v5777_v32 = vld [vmem:[%s9197_s3 + $0x24] sm:$0xf]  ;;  %v4993_v44 = vld [vmem:[%s9197_s3 + $0xa8] sm:$0xf0] }
 0x311   :  { %1745 = vmatmul.bf16.gmra.mxu0 %v7412_v51  ;;  %1789 = vmatmul.bf16.gmra.mxu1 %v7414_v7  ;;  %v1077_v30 = vmul.f32 %v7312_v36, %v6876_v16  ;;  %v1464_v56 = vunpack.c.l.b16 %v1430_v63  ;;  %v1465_v34 = vunpack.c.h.b16 %v1430_v63  ;;  %v1104_v50 = vadd.f32 %v7338_v12, %v1074_v13 }
 0x312   :  { %1833 = vmatmul.bf16.gmra.mxu2 %v7412_v51  ;;  %1877 = vmatmul.bf16.gmra.mxu3 %v7414_v7  ;;  %v1466_v3 = vunpack.c.l.b16 %v1431_v35  ;;  %v1467_v29 = vunpack.c.h.b16 %v1431_v35  ;;  %v1105_v39 = vadd.f32 %v7317_v33, %v1075_v54  ;;  %v1106_v58 = vadd.f32 %v7338_v12, %v1076_v47 }
 0x313   :  { %2160 = vmatpush.bf16.msrb.mxu2 %v4940_v46  ;;  %2204 = vmatpush.bf16.msrb.mxu3 %v5004_v48  ;;  %v1107_v62 = vadd.f32 %v7317_v33, %v1077_v30  ;;  %vm1188_vm14 = vcmp.ge.f32.partialorder %v1104_v50, 0.0  ;;  %v1216_v53 = vmul.f32 0.01, %v1104_v50  ;;  %v4928_v26 = vor.u32 %v5778_v57, %v4927_v14  ;;  %v5775_v14 = vld [vmem:[%s9197_s3 + $0x14] sm:$0xf] }
 0x314   :  { %v7518_v21 = vpack.c.b16 %v1466_v3, %v1464_v56  ;;  %v7520_v40 = vpack.c.b16 %v1467_v29, %v1465_v34  ;;  %vm1189_vm15 = vcmp.ge.f32.partialorder %v1105_v39, 0.0  ;;  %v1218_v16 = vmul.f32 0.01, %v1106_v58  ;;  %v4921_v57 = vld [vmem:[%s9197_s3 + $0x18] sm:$0xf0] }
 0x315   :  { %vm1190_vm0 = vcmp.ge.f32.partialorder %v1106_v58, 0.0  ;;  %vm1191_vm1 = vcmp.ge.f32.partialorder %v1107_v62, 0.0  ;;  %v1217_v20 = vmul.f32 0.01, %v1105_v39  ;;  %v1219_v38 = vmul.f32 0.01, %v1107_v62  ;;  %2073 = vmatpush.bf16.msrb.mxu0 %v4928_v26 }
 0x316   :  { %v1244_v8 = vsel %vm1188_vm14, %v1104_v50, %v1216_v53  ;;  %v1246_v6 = vsel %vm1190_vm0, %v1106_v58, %v1218_v16  ;;  %v4992_v25 = vor.u32 %v5794_v42, %v4991_v11  ;;  %v4932_v4 = vor.u32 %v5777_v32, %v4929_v45  ;;  %v5776_v53 = vld [vmem:[%s9197_s3 + $0x14] sm:$0xf0]  ;;  %v4983_v16 = vld [vmem:[%s9197_s3 + $0x90] sm:$0xf]  ;;  %v5791_v45 = vld [vmem:[%s9197_s3 + $0x94] sm:$0xf] }
 0x317   :  { %v4996_v43 = vor.u32 %v5793_v23, %v4993_v44  ;;  %v1245_v15 = vsel %vm1189_vm15, %v1105_v39, %v1217_v20  ;;  %v1247_v52 = vsel %vm1191_vm1, %v1107_v62, %v1219_v38  ;;  %v1078_v48 = vmul.f32 %v7319_v24, %v6630_v10  ;;  %v4919_v62 = vld [vmem:[%s9197_s3 + $0x10] sm:$0xf]  ;;  %v5792_v38 = vld [vmem:[%s9197_s3 + $0x94] sm:$0xf0]  ;;  %v5774_v23 = vld [vmem:[%s9197_s3 + $0x4] sm:$0xf0] }
 0x318   :  { %2117 = vmatpush.bf16.msrb.mxu1 %v4992_v25  ;;  %2161 = vmatpush.bf16.msrb.mxu2 %v4932_v4  ;;  %v1432_v37 = vpack.c.bf16 %v1245_v15, %v1244_v8  ;;  %v1433_v46 = vpack.c.bf16 %v1247_v52, %v1246_v6  ;;  %v1079_v63 = vmul.f32 %v7312_v36, %v9303_v55  ;;  %v4985_v8 = vld [vmem:[%s9197_s3 + $0x98] sm:$0xf0]  ;;  %v4911_v6 = vld [vmem:[%s9197_s3] sm:$0xf] }
 0x319   :  { %2205 = vmatpush.bf16.msrb.mxu3 %v4996_v43  ;;  %v1080_v35 = vmul.f32 %v7319_v24, %v6815_v28  ;;  %v1081_v13 = vmul.f32 %v7312_v36, %v6919_v1  ;;  %v1108_v3 = vadd.f32 %v7338_v12, %v1078_v48  ;;  %v4920_v20 = vor.u32 %v5776_v53, %v4919_v62  ;;  %v4975_v44 = vld [vmem:[%s9197_s3 + $0x80] sm:$0xf]  ;;  %v5790_v43 = vld [vmem:[%s9197_s3 + $0x84] sm:$0xf0]  ;;  %v4913_v48 = vld [vmem:[%s9197_s3 + $0x8] sm:$0xf0] }
 0x31a   :  { %v1468_v54 = vunpack.c.l.b16 %v1432_v37  ;;  %v1470_v47 = vunpack.c.l.b16 %v1433_v46  ;;  %v1469_v30 = vunpack.c.h.b16 %v1432_v37  ;;  %v1471_v56 = vunpack.c.h.b16 %v1433_v46  ;;  %v5773_v46 = vld [vmem:[%s9197_s3 + $0x4] sm:$0xf] }
 0x31b   :  { %v1109_v34 = vadd.f32 %v7317_v33, %v1079_v63  ;;  %v1110_v29 = vadd.f32 %v7338_v12, %v1080_v35  ;;  %v1111_v10 = vadd.f32 %v7317_v33, %v1081_v13  ;;  %vm1192_vm2 = vcmp.ge.f32.partialorder %v1108_v3, 0.0  ;;  %2074 = vmatpush.bf16.msrb.mxu0 %v4920_v20  ;;  %v5789_v63 = vld [vmem:[%s9197_s3 + $0x84] sm:$0xf] }
 0x31c   :  { %v7565_v50 = vpack.c.b16 %v1470_v47, %v1468_v54  ;;  %v7567_v55 = vpack.c.b16 %v1471_v56, %v1469_v30  ;;  %v1220_v28 = vmul.f32 0.01, %v1108_v3  ;;  %v4984_v42 = vor.u32 %v5792_v38, %v4983_v16  ;;  %v4977_v47 = vld [vmem:[%s9197_s3 + $0x88] sm:$0xf0] }
 0x31d   :  { %vm1193_vm3 = vcmp.ge.f32.partialorder %v1109_v34, 0.0  ;;  %v1222_v1 = vmul.f32 0.01, %v1110_v29  ;;  %vm1194_vm4 = vcmp.ge.f32.partialorder %v1110_v29, 0.0  ;;  %vm1195_vm6 = vcmp.ge.f32.partialorder %v1111_v10, 0.0 }
 0x31e   :  { %9316 = vst [vmem:[#allocation10_spill] sm:$0xff] %v7567_v55  ;;  %v1221_v39 = vmul.f32 0.01, %v1109_v34  ;;  %v1223_v58 = vmul.f32 0.01, %v1111_v10  ;;  %v1248_v11 = vsel %vm1192_vm2, %v1108_v3, %v1220_v28  ;;  %v4924_v32 = vor.u32 %v5775_v14, %v4921_v57  ;;  %2118 = vmatpush.bf16.msrb.mxu1 %v4984_v42 }
 0x31f   :  { %v1250_v26 = vsel %vm1194_vm4, %v1110_v29, %v1222_v1  ;;  %v4988_v4 = vor.u32 %v5791_v45, %v4985_v8  ;;  %v4912_v52 = vor.u32 %v5774_v23, %v4911_v6  ;;  %v4976_v37 = vor.u32 %v5790_v43, %v4975_v44  ;;  %v5159_v42 = vld [vmem:[%s9197_s3 + $0x2f0] sm:$0xf]  ;;  %v5868_v45 = vld [vmem:[%s9197_s3 + $0x2f4] sm:$0xf0] }
 0x320   :  { %v1249_v25 = vsel %vm1193_vm3, %v1109_v34, %v1221_v39  ;;  %v1251_v15 = vsel %vm1195_vm6, %v1111_v10, %v1223_v58  ;;  %2162 = vmatpush.bf16.msrb.mxu2 %v4924_v32  ;;  %v4916_v54 = vor.u32 %v5773_v46, %v4913_v48  ;;  %v4980_v30 = vor.u32 %v5789_v63, %v4977_v47  ;;  %v9317_v34 = vld [vmem:[#allocation38_spill] sm:$0xff] }
 0x321   :  { %1750 = vmatmul.bf16.gmra.mxu0 %v7459_v22  ;;  %1794 = vmatmul.bf16.gmra.mxu1 %v7461_v41  ;;  %v1434_v35 = vpack.c.bf16 %v1249_v25, %v1248_v11  ;;  %v1435_v13 = vpack.c.bf16 %v1251_v15, %v1250_v26  ;;  %v1083_v56 = vmul.f32 %v7312_v36, %v9309_v5  ;;  %v5095_v11 = vld [vmem:[%s9197_s3 + $0x270] sm:$0xf]  ;;  %v5852_v26 = vld [vmem:[%s9197_s3 + $0x274] sm:$0xf0] }
 0x322   :  { %1838 = vmatmul.bf16.gmra.mxu2 %v7459_v22  ;;  %1882 = vmatmul.bf16.gmra.mxu3 %v7461_v41  ;;  %v1082_v3 = vmul.f32 %v7319_v24, %v9288_v31  ;;  %v1084_v29 = vmul.f32 %v7319_v24, %v9317_v34  ;;  %v1085_v10 = vmul.f32 %v7312_v36, %v6949_v17 }
 0x323   :  { %2206 = vmatpush.bf16.msrb.mxu3 %v4988_v4  ;;  %2075 = vmatpush.bf16.msrb.mxu0 %v4912_v52  ;;  %v1472_v28 = vunpack.c.l.b16 %v1434_v35  ;;  %v1474_v1 = vunpack.c.l.b16 %v1435_v13  ;;  %v1473_v39 = vunpack.c.h.b16 %v1434_v35  ;;  %v1475_v58 = vunpack.c.h.b16 %v1435_v13  ;;  %v5851_v35 = vld [vmem:[%s9197_s3 + $0x274] sm:$0xf]  ;;  %v5097_v13 = vld [vmem:[%s9197_s3 + $0x278] sm:$0xf0] }
 0x324   :  { %2119 = vmatpush.bf16.msrb.mxu1 %v4976_v37  ;;  %2163 = vmatpush.bf16.msrb.mxu2 %v4916_v54  ;;  %v1112_v62 = vadd.f32 %v7338_v12, %v1082_v3  ;;  %v1114_v5 = vadd.f32 %v7338_v12, %v1084_v29  ;;  %v1113_v53 = vadd.f32 %v7317_v33, %v1083_v56  ;;  %v5867_v54 = vld [vmem:[%s9197_s3 + $0x2f4] sm:$0xf]  ;;  %v5087_v56 = vld [vmem:[%s9197_s3 + $0x260] sm:$0xf]  ;;  %v5850_v3 = vld [vmem:[%s9197_s3 + $0x264] sm:$0xf0] }
 0x325   :  { %v1115_v31 = vadd.f32 %v7317_v33, %v1085_v10  ;;  %v7636_v16 = vpack.c.b16 %v1474_v1, %v1472_v28  ;;  %v7638_v20 = vpack.c.b16 %v1475_v58, %v1473_v39  ;;  %v5096_v32 = vor.u32 %v5852_v26, %v5095_v11  ;;  %v5151_v10 = vld [vmem:[%s9197_s3 + $0x2e0] sm:$0xf]  ;;  %v5866_v28 = vld [vmem:[%s9197_s3 + $0x2e4] sm:$0xf0] }
 0x326   :  { %v1224_v17 = vmul.f32 0.01, %v1112_v62  ;;  %v1226_v38 = vmul.f32 0.01, %v1114_v5  ;;  %vm1196_vm8 = vcmp.ge.f32.partialorder %v1112_v62, 0.0  ;;  %vm1198_vm10 = vcmp.ge.f32.partialorder %v1114_v5, 0.0 }
 0x327   :  { %2207 = vmatpush.bf16.msrb.mxu3 %v4980_v30  ;;  %9318 = vst [vmem:[#allocation11_spill] sm:$0xff] %v7636_v16  ;;  %v1225_v14 = vmul.f32 0.01, %v1113_v53  ;;  %v1227_v57 = vmul.f32 0.01, %v1115_v31  ;;  %vm1197_vm11 = vcmp.ge.f32.partialorder %v1113_v53, 0.0  ;;  %v5160_v25 = vor.u32 %v5868_v45, %v5159_v42  ;;  %2436 = vmatpush.bf16.msra.mxu0 %v5096_v32 }
 0x328   :  { %9319 = vst [vmem:[#allocation26_spill] sm:$0xff] %v7638_v20  ;;  %vm1199_vm12 = vcmp.ge.f32.partialorder %v1115_v31, 0.0  ;;  %v1252_v8 = vsel %vm1196_vm8, %v1112_v62, %v1224_v17  ;;  %v1254_v6 = vsel %vm1198_vm10, %v1114_v5, %v1226_v38  ;;  %v5100_v47 = vor.u32 %v5851_v35, %v5097_v13  ;;  %v5161_v30 = vld [vmem:[%s9197_s3 + $0x2f8] sm:$0xf0]  ;;  %v9322_v1 = vld [vmem:[#allocation19_spill] sm:$0xff]  ;;  %v9323_v58 = vld [vmem:[#allocation32_spill] sm:$0xff] }
 0x329   :  { %v1253_v4 = vsel %vm1197_vm11, %v1113_v53, %v1225_v14  ;;  %v1255_v23 = vsel %vm1199_vm12, %v1115_v31, %v1227_v57  ;;  %2480 = vmatpush.bf16.msra.mxu1 %v5160_v25  ;;  %v5164_v34 = vor.u32 %v5867_v54, %v5161_v30  ;;  %v5088_v29 = vor.u32 %v5850_v3, %v5087_v56  ;;  %v9324_v53 = vld [vmem:[#allocation20_spill] sm:$0xff]  ;;  %v9325_v17 = vld [vmem:[#allocation31_spill] sm:$0xff] }
 0x32a   :  { %v1436_v44 = vpack.c.bf16 %v1253_v4, %v1252_v8  ;;  %v1437_v43 = vpack.c.bf16 %v1255_v23, %v1254_v6  ;;  %v1116_v39 = vmul.f32 %v7319_v24, %v9322_v1  ;;  %v1118_v62 = vmul.f32 %v7319_v24, %v9323_v58  ;;  %2524 = vmatpush.bf16.msra.mxu2 %v5100_v47  ;;  %v5153_v13 = vld [vmem:[%s9197_s3 + $0x2e8] sm:$0xf0]  ;;  %v5079_v54 = vld [vmem:[%s9197_s3 + $0x250] sm:$0xf]  ;;  %v5848_v47 = vld [vmem:[%s9197_s3 + $0x254] sm:$0xf0] }
 0x32b   :  { %v5152_v5 = vor.u32 %v5866_v28, %v5151_v10  ;;  %2568 = vmatpush.bf16.msra.mxu3 %v5164_v34  ;;  %2437 = vmatpush.bf16.msra.mxu0 %v5088_v29  ;;  %v1117_v31 = vmul.f32 %v7312_v36, %v9324_v53  ;;  %v1119_v38 = vmul.f32 %v7312_v36, %v9325_v17  ;;  %v9235_v45 = vmov 0   ;;  %v5143_v3 = vld [vmem:[%s9197_s3 + $0x2d0] sm:$0xf]  ;;  %v5864_v34 = vld [vmem:[%s9197_s3 + $0x2d4] sm:$0xf0] }
 0x32c   :  { %v1476_v15 = vunpack.c.l.b16 %v1436_v44  ;;  %v1478_v52 = vunpack.c.l.b16 %v1437_v43  ;;  %v1477_v37 = vunpack.c.h.b16 %v1436_v44  ;;  %v1479_v46 = vunpack.c.h.b16 %v1437_v43  ;;  %v5849_v43 = vld [vmem:[%s9197_s3 + $0x264] sm:$0xf]  ;;  %v9326_v29 = vld [vmem:[#allocation21_spill] sm:$0xff] }
 0x32d   :  { %v1144_v14 = vadd.f32 %v1116_v39, %v7338_v12  ;;  %v1146_v57 = vadd.f32 %v1118_v62, %v7338_v12  ;;  %2481 = vmatpush.bf16.msra.mxu1 %v5152_v5  ;;  %v1145_v11 = vadd.f32 %v1117_v31, %v7317_v33  ;;  %v1147_v26 = vadd.f32 %v1119_v38, %v7317_v33  ;;  %v9327_v39 = vld [vmem:[#allocation33_spill] sm:$0xff] }
 0x32e   :  { %v7656_v48 = vpack.c.b16 %v1478_v52, %v1476_v15  ;;  %v7658_v63 = vpack.c.b16 %v1479_v46, %v1477_v37  ;;  %v5089_v15 = vld [vmem:[%s9197_s3 + $0x268] sm:$0xf0]  ;;  %v5865_v52 = vld [vmem:[%s9197_s3 + $0x2e4] sm:$0xf]  ;;  %v5080_v56 = vor.u32 %v5848_v47, %v5079_v54  ;;  %v1120_v10 = vmul.f32 %v7319_v24, %v9326_v29 }
 0x32f   :  { %v1284_v42 = vmul.f32 0.01, %v1144_v14  ;;  %v1286_v32 = vmul.f32 0.01, %v1146_v57  ;;  %vm1256_vm13 = vcmp.ge.f32.partialorder %v1144_v14, 0.0  ;;  %vm1258_vm14 = vcmp.ge.f32.partialorder %v1146_v57, 0.0 }
 0x330   :  { %9320 = vst [vmem:[#allocation28_spill] sm:$0xff] %v7656_v48  ;;  %v1285_v8 = vmul.f32 0.01, %v1145_v11  ;;  %v1287_v6 = vmul.f32 0.01, %v1147_v26  ;;  %vm1257_vm15 = vcmp.ge.f32.partialorder %v1145_v11, 0.0  ;;  %v5092_v35 = vor.u32 %v5849_v43, %v5089_v15  ;;  %2438 = vmatpush.bf16.msra.mxu0 %v5080_v56 }
 0x331   :  { %1755 = vmatmul.bf16.gmra.mxu0 %v7518_v21  ;;  %1799 = vmatmul.bf16.gmra.mxu1 %v7520_v40  ;;  %9321 = vst [vmem:[#allocation30_spill] sm:$0xff] %v7658_v63  ;;  %vm1259_vm0 = vcmp.ge.f32.partialorder %v1147_v26, 0.0  ;;  %v1312_v25 = vsel %vm1256_vm13, %v1144_v14, %v1284_v42  ;;  %v1314_v4 = vsel %vm1258_vm14, %v1146_v57, %v1286_v32  ;;  %v5863_v43 = vld [vmem:[%s9197_s3 + $0x2d4] sm:$0xf] }
 0x332   :  { %1843 = vmatmul.bf16.gmra.mxu2 %v7518_v21  ;;  %1887 = vmatmul.bf16.gmra.mxu3 %v7520_v40  ;;  %v1313_v23 = vsel %vm1257_vm15, %v1145_v11, %v1285_v8  ;;  %v1315_v44 = vsel %vm1259_vm0, %v1147_v26, %v1287_v6  ;;  %v5156_v30 = vor.u32 %v5865_v52, %v5153_v13  ;;  %v5145_v52 = vld [vmem:[%s9197_s3 + $0x2d8] sm:$0xf0] }
 0x333   :  { %v1340_v37 = vpack.c.bf16 %v1313_v23, %v1312_v25  ;;  %v1341_v46 = vpack.c.bf16 %v1315_v44, %v1314_v4  ;;  %2525 = vmatpush.bf16.msra.mxu2 %v5092_v35  ;;  %v5144_v28 = vor.u32 %v5864_v34, %v5143_v3  ;;  %v1121_v1 = vmul.f32 %v7312_v36, %v6660_v61  ;;  %v5847_v23 = vld [vmem:[%s9197_s3 + $0x254] sm:$0xf]  ;;  %v5081_v44 = vld [vmem:[%s9197_s3 + $0x258] sm:$0xf0] }
 0x334   :  { %v1122_v58 = vmul.f32 %v7319_v24, %v9327_v39  ;;  %v1123_v62 = vmul.f32 %v7312_v36, %v6803_v19  ;;  %2569 = vmatpush.bf16.msra.mxu3 %v5156_v30  ;;  %v1148_v38 = vadd.f32 %v1120_v10, %v7338_v12  ;;  %v5084_v15 = vor.u32 %v5847_v23, %v5081_v44  ;;  %v5846_v39 = vld [vmem:[%s9197_s3 + $0x244] sm:$0xf0] }
 0x335   :  { %v1368_v5 = vunpack.c.l.b16 %v1340_v37  ;;  %v1370_v53 = vunpack.c.l.b16 %v1341_v46  ;;  %v1369_v31 = vunpack.c.h.b16 %v1340_v37  ;;  %v1371_v17 = vunpack.c.h.b16 %v1341_v46  ;;  %2482 = vmatpush.bf16.msra.mxu1 %v5144_v28 }
 0x336   :  { %v1150_v14 = vadd.f32 %v1122_v58, %v7338_v12  ;;  %v1149_v57 = vadd.f32 %v1121_v1, %v7317_v33  ;;  %v1151_v61 = vadd.f32 %v1123_v62, %v7317_v33  ;;  %v1288_v8 = vmul.f32 0.01, %v1148_v38  ;;  %v5071_v1 = vld [vmem:[%s9197_s3 + $0x240] sm:$0xf] }
 0x337   :  { %v7742_v19 = vpack.c.b16 %v1370_v53, %v1368_v5  ;;  %v7744_v32 = vpack.c.b16 %v1371_v17, %v1369_v31  ;;  %vm1260_vm1 = vcmp.ge.f32.partialorder %v1148_v38, 0.0  ;;  %v5148_v35 = vor.u32 %v5863_v43, %v5145_v52  ;;  %2526 = vmatpush.bf16.msra.mxu2 %v5084_v15  ;;  %v5135_v58 = vld [vmem:[%s9197_s3 + $0x2c0] sm:$0xf]  ;;  %v5862_v5 = vld [vmem:[%s9197_s3 + $0x2c4] sm:$0xf0] }
 0x338   :  { %v1290_v6 = vmul.f32 0.01, %v1150_v14  ;;  %vm1262_vm2 = vcmp.ge.f32.partialorder %v1150_v14, 0.0  ;;  %v1289_v25 = vmul.f32 0.01, %v1149_v57  ;;  %vm1261_vm3 = vcmp.ge.f32.partialorder %v1149_v57, 0.0 }
 0x339   :  { %v1291_v4 = vmul.f32 0.01, %v1151_v61  ;;  %vm1263_vm4 = vcmp.ge.f32.partialorder %v1151_v61, 0.0  ;;  %v1316_v37 = vsel %vm1260_vm1, %v1148_v38, %v1288_v8  ;;  %2570 = vmatpush.bf16.msra.mxu3 %v5148_v35  ;;  %v5072_v62 = vor.u32 %v5846_v39, %v5071_v1  ;;  %v9328_v31 = vld [vmem:[#allocation34_spill] sm:$0xff]  ;;  %v5137_v1 = vld [vmem:[%s9197_s3 + $0x2c8] sm:$0xf0] }
 0x33a   :  { %v1318_v46 = vsel %vm1262_vm2, %v1150_v14, %v1290_v6  ;;  %v1317_v3 = vsel %vm1261_vm3, %v1149_v57, %v1289_v25  ;;  %v5136_v53 = vor.u32 %v5862_v5, %v5135_v58  ;;  %v1124_v17 = vmul.f32 %v7319_v24, %v9328_v31  ;;  %v9329_v14 = vld [vmem:[#allocation35_spill] sm:$0xff] }
 0x33b   :  { %v1319_v34 = vsel %vm1263_vm4, %v1151_v61, %v1291_v4  ;;  %v1342_v10 = vpack.c.bf16 %v1317_v3, %v1316_v37  ;;  %v1125_v38 = vmul.f32 %v7312_v36, %v6819_v2  ;;  %v1126_v57 = vmul.f32 %v7319_v24, %v9329_v14  ;;  %2439 = vmatpush.bf16.msra.mxu0 %v5072_v62  ;;  %v5845_v3 = vld [vmem:[%s9197_s3 + $0x244] sm:$0xf] }
 0x33c   :  { %v1343_v28 = vpack.c.bf16 %v1319_v34, %v1318_v46  ;;  %v1127_v61 = vmul.f32 %v7312_v36, %v6834_v9  ;;  %2483 = vmatpush.bf16.msra.mxu1 %v5136_v53  ;;  %v1152_v25 = vadd.f32 %v1124_v17, %v7338_v12  ;;  %v5073_v34 = vld [vmem:[%s9197_s3 + $0x248] sm:$0xf0] }
 0x33d   :  { %v1373_v8 = vunpack.c.h.b16 %v1342_v10  ;;  %v1154_v4 = vadd.f32 %v1126_v57, %v7338_v12  ;;  %v1153_v2 = vadd.f32 %v1125_v38, %v7317_v33 }
 0x33e   :  { %v1375_v6 = vunpack.c.h.b16 %v1343_v28  ;;  %v1155_v43 = vadd.f32 %v1127_v61, %v7317_v33  ;;  %vm1264_vm6 = vcmp.ge.f32.partialorder %v1152_v25, 0.0  ;;  %v5063_v61 = vld [vmem:[%s9197_s3 + $0x230] sm:$0xf] }
 0x33f   :  { %vm1266_vm8 = vcmp.ge.f32.partialorder %v1154_v4, 0.0  ;;  %vm1265_vm10 = vcmp.ge.f32.partialorder %v1153_v2, 0.0 }
 0x340   :  { %v7796_v35 = vpack.c.b16 %v1375_v6, %v1373_v8  ;;  %vm1267_vm11 = vcmp.ge.f32.partialorder %v1155_v43, 0.0 }
 0x341   :  { %1760 = vmatmul.bf16.gmra.mxu0 %v7565_v50  ;;  %1804 = vmatmul.bf16.gmra.mxu1 %v7567_v55 }
 0x342   :  { %1848 = vmatmul.bf16.gmra.mxu2 %v7565_v50  ;;  %1892 = vmatmul.bf16.gmra.mxu3 %v7567_v55 }
 0x351   :  { %1765 = vmatmul.bf16.gmra.mxu0 %v7636_v16  ;;  %1809 = vmatmul.bf16.gmra.mxu1 %v7638_v20 }
 0x352   :  { %1853 = vmatmul.bf16.gmra.mxu2 %v7636_v16  ;;  %1897 = vmatmul.bf16.gmra.mxu3 %v7638_v20 }
 0x361   :  { %1770 = vmatmul.bf16.gmra.mxu0 %v7656_v48  ;;  %1814 = vmatmul.bf16.gmra.mxu1 %v7658_v63 }
 0x362   :  { %1858 = vmatmul.bf16.gmra.mxu2 %v7656_v48  ;;  %1902 = vmatmul.bf16.gmra.mxu3 %v7658_v63 }
 0x371   :  { %2076 = vmatmul.bf16.vlgmr.msrb.gmra.mxu0 %v9235_v45  ;;  %2120 = vmatmul.bf16.vlgmr.msrb.gmra.mxu1 %v9235_v45 }
 0x372   :  { %2164 = vmatmul.bf16.vlgmr.msrb.gmra.mxu2 %v9235_v45  ;;  %2208 = vmatmul.bf16.vlgmr.msrb.gmra.mxu3 %v9235_v45 }
 0x37e   :  { %v1741_v11 = vpop.f32.mrf.mxu0  ;;  %v1785_v26 = vpop.f32.mrf.mxu1 }
 0x37f   :  { %v7740_v42 = vadd.f32 %v1785_v26, %v1741_v11  ;;  %v1372_v11 = vunpack.c.l.b16 %v1342_v10  ;;  %v1374_v26 = vunpack.c.l.b16 %v1343_v28  ;;  %v5861_v10 = vld [vmem:[%s9197_s3 + $0x2c4] sm:$0xf]  ;;  %v5076_v28 = vor.u32 %v5845_v3, %v5073_v34 }
 0x380   :  { %v5140_v62 = vor.u32 %v5861_v10, %v5137_v1 }
 0x381   :  { %2081 = vmatmul.bf16.gmra.mxu0 %v7742_v19  ;;  %2125 = vmatmul.bf16.gmra.mxu1 %v7744_v32  ;;  %v7794_v46 = vpack.c.b16 %v1374_v26, %v1372_v11  ;;  %v5844_v11 = vld [vmem:[%s9197_s3 + $0x234] sm:$0xf0]  ;;  %v5127_v26 = vld [vmem:[%s9197_s3 + $0x2b0] sm:$0xf] }
 0x382   :  { %2169 = vmatmul.bf16.gmra.mxu2 %v7742_v19  ;;  %2213 = vmatmul.bf16.gmra.mxu3 %v7744_v32 }
 0x383   :  { %2527 = vmatpush.bf16.msra.mxu2 %v5076_v28  ;;  %2571 = vmatpush.bf16.msra.mxu3 %v5140_v62 }
 0x385   :  { %v1829_v13 = vpop.f32.mrf.mxu2  ;;  %v1873_v54 = vpop.f32.mrf.mxu3 }
 0x386   :  { %v7762_v47 = vadd.f32 %v1873_v54, %v1829_v13  ;;  %v1743_v30 = vpop.f32.mrf.mxu0  ;;  %v1787_v56 = vpop.f32.mrf.mxu1  ;;  %v1292_v13 = vmul.f32 0.01, %v1152_v25  ;;  %v1294_v54 = vmul.f32 0.01, %v1154_v4 }
 0x387   :  { %v7764_v29 = vadd.f32 %v1787_v56, %v1743_v30  ;;  %v1293_v30 = vmul.f32 0.01, %v1153_v2  ;;  %v1295_v56 = vmul.f32 0.01, %v1155_v43 }
 0x388   :  { %v1320_v39 = vsel %vm1264_vm6, %v1152_v25, %v1292_v13  ;;  %v1322_v58 = vsel %vm1266_vm8, %v1154_v4, %v1294_v54  ;;  %v5064_v4 = vor.u32 %v5844_v11, %v5063_v61  ;;  %v1131_v54 = vmul.f32 %v7312_v36, %v6865_v49  ;;  %v5859_v61 = vld [vmem:[%s9197_s3 + $0x2b4] sm:$0xf] }
 0x389   :  { %v1321_v14 = vsel %vm1265_vm10, %v1153_v2, %v1293_v30  ;;  %v1323_v57 = vsel %vm1267_vm11, %v1155_v43, %v1295_v56 }
 0x38a   :  { %v1344_v6 = vpack.c.bf16 %v1321_v14, %v1320_v39  ;;  %v1345_v25 = vpack.c.bf16 %v1323_v57, %v1322_v58  ;;  %2440 = vmatpush.bf16.msra.mxu0 %v5064_v4  ;;  %v5843_v14 = vld [vmem:[%s9197_s3 + $0x234] sm:$0xf]  ;;  %v5065_v57 = vld [vmem:[%s9197_s3 + $0x238] sm:$0xf0] }
 0x38c   :  { %v1376_v56 = vunpack.c.l.b16 %v1344_v6  ;;  %v1378_v3 = vunpack.c.l.b16 %v1345_v25  ;;  %v1377_v34 = vunpack.c.h.b16 %v1344_v6  ;;  %v1379_v10 = vunpack.c.h.b16 %v1345_v25  ;;  %v5129_v25 = vld [vmem:[%s9197_s3 + $0x2b8] sm:$0xf0] }
 0x38d   :  { %v1831_v23 = vpop.f32.mrf.mxu2  ;;  %v1875_v44 = vpop.f32.mrf.mxu3  ;;  %v5068_v6 = vor.u32 %v5843_v14, %v5065_v57 }
 0x38e   :  { %v7790_v15 = vadd.f32 %v1875_v44, %v1831_v23  ;;  %v1746_v52 = vpop.f32.mrf.mxu0  ;;  %v1790_v9 = vpop.f32.mrf.mxu1  ;;  %v5860_v23 = vld [vmem:[%s9197_s3 + $0x2b4] sm:$0xf0]  ;;  %v9330_v44 = vld [vmem:[#allocation36_spill] sm:$0xff] }
 0x38f   :  { %v7792_v37 = vadd.f32 %v1790_v9, %v1746_v52  ;;  %v1128_v2 = vmul.f32 %v7319_v24, %v9330_v44  ;;  %v5128_v43 = vor.u32 %v5860_v23, %v5127_v26  ;;  %v1129_v52 = vmul.f32 %v7312_v36, %v6851_v60  ;;  %v9331_v9 = vld [vmem:[#allocation37_spill] sm:$0xff]  ;;  %2528 = vmatpush.bf16.msra.mxu2 %v5068_v6 }
 0x390   :  { %v1130_v13 = vmul.f32 %v7319_v24, %v9331_v9  ;;  %v1159_v60 = vadd.f32 %v1131_v54, %v7317_v33  ;;  %v5132_v44 = vor.u32 %v5859_v61, %v5129_v25  ;;  %v9332_v25 = vld [vmem:[#allocation22_spill] sm:$0xff] }
 0x391   :  { %2086 = vmatmul.bf16.gmra.mxu0 %v7794_v46  ;;  %2130 = vmatmul.bf16.gmra.mxu1 %v7796_v35  ;;  %v1156_v30 = vadd.f32 %v1128_v2, %v7338_v12  ;;  %v1157_v58 = vadd.f32 %v1129_v52, %v7317_v33  ;;  %v5055_v2 = vld [vmem:[%s9197_s3 + $0x220] sm:$0xf] }
 0x392   :  { %2174 = vmatmul.bf16.gmra.mxu2 %v7794_v46  ;;  %2218 = vmatmul.bf16.gmra.mxu3 %v7796_v35  ;;  %v1158_v28 = vadd.f32 %v1130_v13, %v7338_v12  ;;  %v1299_v23 = vmul.f32 0.01, %v1159_v60  ;;  %v5119_v52 = vld [vmem:[%s9197_s3 + $0x2a0] sm:$0xf]  ;;  %vm1271_vm15 = vcmp.ge.f32.partialorder %v1159_v60, 0.0 }
 0x393   :  { %2484 = vmatpush.bf16.msra.mxu1 %v5128_v43  ;;  %vm1268_vm12 = vcmp.ge.f32.partialorder %v1156_v30, 0.0  ;;  %v1296_v11 = vmul.f32 0.01, %v1156_v30  ;;  %v1297_v4 = vmul.f32 0.01, %v1157_v58  ;;  %vm1269_vm14 = vcmp.ge.f32.partialorder %v1157_v58, 0.0  ;;  %2572 = vmatpush.bf16.msra.mxu3 %v5132_v44 }
 0x394   :  { %v1298_v26 = vmul.f32 0.01, %v1158_v28  ;;  %vm1270_vm13 = vcmp.ge.f32.partialorder %v1158_v28, 0.0  ;;  %v5842_v43 = vld [vmem:[%s9197_s3 + $0x224] sm:$0xf0]  ;;  %v1327_v14 = vsel %vm1271_vm15, %v1159_v60, %v1299_v23  ;;  %v1135_v44 = vmul.f32 %v7312_v36, %v6896_v18 }
 0x395   :  { %v1834_v5 = vpop.f32.mrf.mxu2  ;;  %v1878_v53 = vpop.f32.mrf.mxu3  ;;  %v5056_v9 = vor.u32 %v5842_v43, %v5055_v2  ;;  %v5858_v13 = vld [vmem:[%s9197_s3 + $0x2a4] sm:$0xf0]  ;;  %v1324_v54 = vsel %vm1268_vm12, %v1156_v30, %v1296_v11  ;;  %v1132_v30 = vmul.f32 %v7319_v24, %v9332_v25  ;;  %v9333_v11 = vld [vmem:[#allocation25_spill] sm:$0xff]  ;;  %v5841_v18 = vld [vmem:[%s9197_s3 + $0x224] sm:$0xf] }
 0x396   :  { %v7814_v31 = vadd.f32 %v1878_v53, %v1834_v5  ;;  %v1748_v17 = vpop.f32.mrf.mxu0  ;;  %v1792_v38 = vpop.f32.mrf.mxu1 }
 0x397   :  { %v7825_v8 = vadd.f32 %v1792_v38, %v1748_v17  ;;  %v7846_v17 = vpack.c.b16 %v1378_v3, %v1376_v56  ;;  %v7848_v38 = vpack.c.b16 %v1379_v10, %v1377_v34  ;;  %v1326_v56 = vsel %vm1270_vm13, %v1158_v28, %v1298_v26  ;;  %2441 = vmatpush.bf16.msra.mxu0 %v5056_v9 }
 0x398   :  { %v5120_v3 = vor.u32 %v5858_v13, %v5119_v52  ;;  %v1347_v6 = vpack.c.bf16 %v1327_v14, %v1326_v56  ;;  %v1133_v28 = vmul.f32 %v7312_v36, %v6882_v0  ;;  %v1134_v26 = vmul.f32 %v7319_v24, %v9333_v11 }
 0x399   :  { %v1160_v23 = vadd.f32 %v1132_v30, %v7338_v12  ;;  %v1163_v0 = vadd.f32 %v1135_v44, %v7317_v33  ;;  %v5840_v44 = vld [vmem:[%s9197_s3 + $0x214] sm:$0xf0] }
 0x39a   :  { %2485 = vmatpush.bf16.msra.mxu1 %v5120_v3  ;;  %v1162_v43 = vadd.f32 %v1134_v26, %v7338_v12  ;;  %v1161_v13 = vadd.f32 %v1133_v28, %v7317_v33  ;;  %v5047_v26 = vld [vmem:[%s9197_s3 + $0x210] sm:$0xf] }
 0x39b   :  { %vm1272_vm0 = vcmp.ge.f32.partialorder %v1160_v23, 0.0  ;;  %v1303_v11 = vmul.f32 0.01, %v1163_v0  ;;  %vm1275_vm3 = vcmp.ge.f32.partialorder %v1163_v0, 0.0 }
 0x39c   :  { %v1302_v25 = vmul.f32 0.01, %v1162_v43  ;;  %vm1274_vm1 = vcmp.ge.f32.partialorder %v1162_v43, 0.0  ;;  %v1301_v28 = vmul.f32 0.01, %v1161_v13  ;;  %vm1273_vm2 = vcmp.ge.f32.partialorder %v1161_v13, 0.0 }
 0x39d   :  { %v1836_v1 = vpop.f32.mrf.mxu2  ;;  %v1880_v39 = vpop.f32.mrf.mxu3  ;;  %v1331_v45 = vsel %vm1275_vm3, %v1163_v0, %v1303_v11  ;;  %v9335_v0 = vld [vmem:[#allocation9_spill] sm:$0xff] }
 0x39e   :  { %v7842_v62 = vadd.f32 %v1880_v39, %v1836_v1  ;;  %v1751_v5 = vpop.f32.mrf.mxu0  ;;  %v1795_v53 = vpop.f32.mrf.mxu1 }
 0x39f   :  { %v7844_v49 = vadd.f32 %v1795_v53, %v1751_v5  ;;  %v1325_v53 = vsel %vm1269_vm14, %v1157_v58, %v1297_v4  ;;  %v1382_v58 = vunpack.c.l.b16 %v1347_v6  ;;  %v1383_v4 = vunpack.c.h.b16 %v1347_v6 }
 0x3a0   :  { %v1346_v61 = vpack.c.bf16 %v1325_v53, %v1324_v54  ;;  %v1300_v6 = vmul.f32 0.01, %v1160_v23 }
 0x3a1   :  { %2091 = vmatmul.bf16.gmra.mxu0 %v7846_v17  ;;  %2135 = vmatmul.bf16.gmra.mxu1 %v7848_v38 }
 0x3a2   :  { %2179 = vmatmul.bf16.gmra.mxu2 %v7846_v17  ;;  %2223 = vmatmul.bf16.gmra.mxu3 %v7848_v38  ;;  %v1380_v2 = vunpack.c.l.b16 %v1346_v61  ;;  %v1381_v60 = vunpack.c.h.b16 %v1346_v61  ;;  %v5121_v61 = vld [vmem:[%s9197_s3 + $0x2a8] sm:$0xf0] }
 0x3a4   :  { %v7911_v53 = vpack.c.b16 %v1383_v4, %v1381_v60  ;;  %v5856_v60 = vld [vmem:[%s9197_s3 + $0x294] sm:$0xf0]  ;;  %v1328_v4 = vsel %vm1272_vm0, %v1160_v23, %v1300_v6  ;;  %v5839_v23 = vld [vmem:[%s9197_s3 + $0x214] sm:$0xf] }
 0x3a5   :  { %v1839_v34 = vpop.f32.mrf.mxu2  ;;  %v1883_v10 = vpop.f32.mrf.mxu3  ;;  %v5855_v6 = vld [vmem:[%s9197_s3 + $0x294] sm:$0xf] }
 0x3a6   :  { %v7880_v1 = vadd.f32 %v1883_v10, %v1839_v34  ;;  %v1753_v39 = vpop.f32.mrf.mxu0  ;;  %v1797_v5 = vpop.f32.mrf.mxu1  ;;  %v5057_v34 = vld [vmem:[%s9197_s3 + $0x228] sm:$0xf0]  ;;  %v5857_v10 = vld [vmem:[%s9197_s3 + $0x2a4] sm:$0xf] }
 0x3a7   :  { %v7882_v57 = vadd.f32 %v1797_v5, %v1753_v39  ;;  %v7909_v5 = vpack.c.b16 %v1382_v58, %v1380_v2  ;;  %v5060_v14 = vor.u32 %v5841_v18, %v5057_v34  ;;  %v5124_v30 = vor.u32 %v5857_v10, %v5121_v61  ;;  %v5111_v2 = vld [vmem:[%s9197_s3 + $0x290] sm:$0xf] }
 0x3a8   :  { %v5048_v58 = vor.u32 %v5840_v44, %v5047_v26  ;;  %v1329_v61 = vsel %vm1273_vm2, %v1161_v13, %v1301_v28  ;;  %v1138_v28 = vmul.f32 %v7319_v24, %v9335_v0 }
 0x3a9   :  { %2529 = vmatpush.bf16.msra.mxu2 %v5060_v14  ;;  %2573 = vmatpush.bf16.msra.mxu3 %v5124_v30  ;;  %v1348_v30 = vpack.c.bf16 %v1329_v61, %v1328_v4 }
 0x3aa   :  { %2442 = vmatpush.bf16.msra.mxu0 %v5048_v58 }
 0x3ab   :  { %v1384_v4 = vunpack.c.l.b16 %v1348_v30 }
 0x3ad   :  { %v1841_v52 = vpop.f32.mrf.mxu2  ;;  %v1885_v9 = vpop.f32.mrf.mxu3 }
 0x3ae   :  { %v7896_v54 = vadd.f32 %v1885_v9, %v1841_v52  ;;  %v1756_v56 = vpop.f32.mrf.mxu0  ;;  %v1800_v3 = vpop.f32.mrf.mxu1  ;;  %v1330_v52 = vsel %vm1274_vm1, %v1162_v43, %v1302_v25  ;;  %v5112_v9 = vor.u32 %v5856_v60, %v5111_v2  ;;  %v5049_v43 = vld [vmem:[%s9197_s3 + $0x218] sm:$0xf0]  ;;  %v9334_v25 = vld [vmem:[#allocation27_spill] sm:$0xff]  ;;  %v1137_v2 = vmul.f32 %v7312_v36, %v6908_v27 }
 0x3af   :  { %v7907_v39 = vadd.f32 %v1800_v3, %v1756_v56  ;;  %v1349_v26 = vpack.c.bf16 %v1331_v45, %v1330_v52  ;;  %v1136_v13 = vmul.f32 %v7319_v24, %v9334_v25  ;;  %v5052_v11 = vor.u32 %v5839_v23, %v5049_v43  ;;  %v5113_v45 = vld [vmem:[%s9197_s3 + $0x298] sm:$0xf0] }
 0x3b0   :  { %2486 = vmatpush.bf16.msra.mxu1 %v5112_v9  ;;  %v5116_v44 = vor.u32 %v5855_v6, %v5113_v45  ;;  %v1166_v60 = vadd.f32 %v1138_v28, %v7338_v12  ;;  %v1385_v9 = vunpack.c.h.b16 %v1348_v30  ;;  %v1165_v61 = vadd.f32 %v1137_v2, %v7317_v33  ;;  %v5838_v28 = vld [vmem:[%s9197_s3 + $0x204] sm:$0xf0]  ;;  %v5837_v2 = vld [vmem:[%s9197_s3 + $0x204] sm:$0xf] }
 0x3b1   :  { %2096 = vmatmul.bf16.gmra.mxu0 %v7909_v5  ;;  %2140 = vmatmul.bf16.gmra.mxu1 %v7911_v53  ;;  %v1164_v58 = vadd.f32 %v1136_v13, %v7338_v12  ;;  %v1386_v52 = vunpack.c.l.b16 %v1349_v26 }
 0x3b2   :  { %2184 = vmatmul.bf16.gmra.mxu2 %v7909_v5  ;;  %2228 = vmatmul.bf16.gmra.mxu3 %v7911_v53  ;;  %v1306_v13 = vmul.f32 0.01, %v1166_v60  ;;  %vm1278_vm6 = vcmp.ge.f32.partialorder %v1166_v60, 0.0  ;;  %vm1277_vm8 = vcmp.ge.f32.partialorder %v1165_v61, 0.0 }
 0x3b3   :  { %2530 = vmatpush.bf16.msra.mxu2 %v5052_v11  ;;  %2574 = vmatpush.bf16.msra.mxu3 %v5116_v44  ;;  %v1304_v25 = vmul.f32 0.01, %v1164_v58  ;;  %v7964_v30 = vpack.c.b16 %v1386_v52, %v1384_v4  ;;  %v5103_v11 = vld [vmem:[%s9197_s3 + $0x280] sm:$0xf]  ;;  %v5854_v44 = vld [vmem:[%s9197_s3 + $0x284] sm:$0xf0] }
 0x3b4   :  { %v5041_v4 = vld [vmem:[%s9197_s3 + $0x208] sm:$0xf0]  ;;  %vm1276_vm4 = vcmp.ge.f32.partialorder %v1164_v58, 0.0  ;;  %v5104_v52 = vor.u32 %v5854_v44, %v5103_v11 }
 0x3b5   :  { %v1844_v56 = vpop.f32.mrf.mxu2  ;;  %v1888_v3 = vpop.f32.mrf.mxu3 }
 0x3b6   :  { %v7932_v18 = vadd.f32 %v1888_v3, %v1844_v56  ;;  %v1758_v34 = vpop.f32.mrf.mxu0  ;;  %v1802_v10 = vpop.f32.mrf.mxu1  ;;  %v1387_v56 = vunpack.c.h.b16 %v1349_v26  ;;  %v1139_v3 = vmul.f32 %v7312_v36, %v6922_v59  ;;  %v5039_v59 = vld [vmem:[%s9197_s3 + $0x200] sm:$0xf]  ;;  %2487 = vmatpush.bf16.msra.mxu1 %v5104_v52 }
 0x3b7   :  { %v7934_v14 = vadd.f32 %v1802_v10, %v1758_v34  ;;  %v5040_v45 = vor.u32 %v5838_v28, %v5039_v59  ;;  %v1334_v59 = vsel %vm1278_vm6, %v1166_v60, %v1306_v13 }
 0x3b8   :  { %v1167_v6 = vadd.f32 %v1139_v3, %v7317_v33  ;;  %v7966_v26 = vpack.c.b16 %v1387_v56, %v1385_v9  ;;  %v5044_v9 = vor.u32 %v5837_v2, %v5041_v4  ;;  %v5853_v56 = vld [vmem:[%s9197_s3 + $0x284] sm:$0xf]  ;;  %v5105_v3 = vld [vmem:[%s9197_s3 + $0x288] sm:$0xf0] }
 0x3b9   :  { %2443 = vmatpush.bf16.msra.mxu0 %v5040_v45 }
 0x3ba   :  { %vm1279_vm10 = vcmp.ge.f32.partialorder %v1167_v6, 0.0  ;;  %2531 = vmatpush.bf16.msra.mxu2 %v5044_v9 }
 0x3bd   :  { %v1846_v34 = vpop.f32.mrf.mxu2  ;;  %v1890_v10 = vpop.f32.mrf.mxu3 }
 0x3be   :  { %v7959_v23 = vadd.f32 %v1890_v10, %v1846_v34  ;;  %v1761_v27 = vpop.f32.mrf.mxu0  ;;  %v1805_v43 = vpop.f32.mrf.mxu1  ;;  %v1305_v34 = vmul.f32 0.01, %v1165_v61  ;;  %v1307_v10 = vmul.f32 0.01, %v1167_v6 }
 0x3bf   :  { %v7962_v0 = vadd.f32 %v1805_v43, %v1761_v27  ;;  %v5108_v27 = vor.u32 %v5853_v56, %v5105_v3  ;;  %v1332_v43 = vsel %vm1276_vm4, %v1164_v58, %v1304_v25 }
 0x3c0   :  { %v1333_v63 = vsel %vm1277_vm8, %v1165_v61, %v1305_v34  ;;  %v1335_v48 = vsel %vm1279_vm10, %v1167_v6, %v1307_v10  ;;  %v5884_v61 = vld [vmem:[%s9197_s3 + $0x374] sm:$0xf0] }
 0x3c1   :  { %2101 = vmatmul.bf16.gmra.mxu0 %v7964_v30  ;;  %2145 = vmatmul.bf16.gmra.mxu1 %v7966_v26  ;;  %v1350_v16 = vpack.c.bf16 %v1333_v63, %v1332_v43  ;;  %v1351_v56 = vpack.c.bf16 %v1335_v48, %v1334_v59  ;;  %v5287_v48 = vld [vmem:[%s9197_s3 + $0x3f0] sm:$0xf]  ;;  %v5900_v10 = vld [vmem:[%s9197_s3 + $0x3f4] sm:$0xf0] }
 0x3c2   :  { %2189 = vmatmul.bf16.gmra.mxu2 %v7964_v30  ;;  %2233 = vmatmul.bf16.gmra.mxu3 %v7966_v26  ;;  %v5288_v43 = vor.u32 %v5900_v10, %v5287_v48  ;;  %v5898_v48 = vld [vmem:[%s9197_s3 + $0x3e4] sm:$0xf0] }
 0x3c3   :  { %2575 = vmatpush.bf16.msra.mxu3 %v5108_v27  ;;  %v1388_v3 = vunpack.c.l.b16 %v1350_v16  ;;  %v1390_v55 = vunpack.c.l.b16 %v1351_v56  ;;  %v1389_v45 = vunpack.c.h.b16 %v1350_v16  ;;  %v1391_v52 = vunpack.c.h.b16 %v1351_v56  ;;  %v5223_v27 = vld [vmem:[%s9197_s3 + $0x370] sm:$0xf]  ;;  %v5883_v56 = vld [vmem:[%s9197_s3 + $0x374] sm:$0xf] }
 0x3c4   :  { %v5224_v34 = vor.u32 %v5884_v61, %v5223_v27  ;;  %2876 = vmatpush.bf16.msrb.mxu1 %v5288_v43  ;;  %v5279_v61 = vld [vmem:[%s9197_s3 + $0x3e0] sm:$0xf] }
 0x3c5   :  { %v1849_v28 = vpop.f32.mrf.mxu2  ;;  %v1893_v11 = vpop.f32.mrf.mxu3  ;;  %v8013_v63 = vpack.c.b16 %v1390_v55, %v1388_v3  ;;  %v8015_v6 = vpack.c.b16 %v1391_v52, %v1389_v45  ;;  %v5225_v3 = vld [vmem:[%s9197_s3 + $0x378] sm:$0xf0]  ;;  %v5899_v45 = vld [vmem:[%s9197_s3 + $0x3f4] sm:$0xf] }
 0x3c6   :  { %v7996_v44 = vadd.f32 %v1893_v11, %v1849_v28  ;;  %v1763_v2 = vpop.f32.mrf.mxu0  ;;  %v1807_v4 = vpop.f32.mrf.mxu1  ;;  %2832 = vmatpush.bf16.msrb.mxu0 %v5224_v34  ;;  %v5228_v52 = vor.u32 %v5883_v56, %v5225_v3  ;;  %v5280_v34 = vor.u32 %v5898_v48, %v5279_v61  ;;  %v5207_v61 = vld [vmem:[%s9197_s3 + $0x350] sm:$0xf]  ;;  %v5880_v48 = vld [vmem:[%s9197_s3 + $0x354] sm:$0xf0] }
 0x3c7   :  { %v7998_v20 = vadd.f32 %v1807_v4, %v1763_v2 }
 0x3c8   :  { %2920 = vmatpush.bf16.msrb.mxu2 %v5228_v52  ;;  %2877 = vmatpush.bf16.msrb.mxu1 %v5280_v34 }
 0x3cd   :  { %v1851_v58 = vpop.f32.mrf.mxu2  ;;  %v1895_v60 = vpop.f32.mrf.mxu3 }
 0x3ce   :  { %v8000_v25 = vadd.f32 %v1895_v60, %v1851_v58  ;;  %v1766_v13 = vpop.f32.mrf.mxu0  ;;  %v1810_v9 = vpop.f32.mrf.mxu1  ;;  %v5289_v58 = vld [vmem:[%s9197_s3 + $0x3f8] sm:$0xf0]  ;;  %v5215_v60 = vld [vmem:[%s9197_s3 + $0x360] sm:$0xf] }
 0x3cf   :  { %v8011_v16 = vadd.f32 %v1810_v9, %v1766_v13  ;;  %v5882_v13 = vld [vmem:[%s9197_s3 + $0x364] sm:$0xf0]  ;;  %v5292_v9 = vor.u32 %v5899_v45, %v5289_v58 }
 0x3d0   :  { %v5216_v27 = vor.u32 %v5882_v13, %v5215_v60  ;;  %v5881_v13 = vld [vmem:[%s9197_s3 + $0x364] sm:$0xf] }
 0x3d1   :  { %2106 = vmatmul.bf16.gmra.mxu0 %v8013_v63  ;;  %2150 = vmatmul.bf16.gmra.mxu1 %v8015_v6 }
 0x3d2   :  { %2194 = vmatmul.bf16.gmra.mxu2 %v8013_v63  ;;  %2238 = vmatmul.bf16.gmra.mxu3 %v8015_v6 }
 0x3d3   :  { %2964 = vmatpush.bf16.msrb.mxu3 %v5292_v9  ;;  %2833 = vmatpush.bf16.msrb.mxu0 %v5216_v27  ;;  %v5217_v9 = vld [vmem:[%s9197_s3 + $0x368] sm:$0xf0] }
 0x3d4   :  { %v5281_v27 = vld [vmem:[%s9197_s3 + $0x3e8] sm:$0xf0] }
 0x3d5   :  { %v1854_v55 = vpop.f32.mrf.mxu2  ;;  %v1898_v59 = vpop.f32.mrf.mxu3 }
 0x3d6   :  { %v8024_v28 = vadd.f32 %v1898_v59, %v1854_v55  ;;  %v1768_v11 = vpop.f32.mrf.mxu0  ;;  %v1812_v2 = vpop.f32.mrf.mxu1 }
 0x3d7   :  { %v8026_v4 = vadd.f32 %v1812_v2, %v1768_v11 }
 0x3dd   :  { %v1856_v10 = vpop.f32.mrf.mxu2  ;;  %v1900_v43 = vpop.f32.mrf.mxu3 }
 0x3de   :  { %v8052_v55 = vadd.f32 %v1900_v43, %v1856_v10  ;;  %v1771_v59 = vpop.f32.mrf.mxu0  ;;  %v1815_v11 = vpop.f32.mrf.mxu1  ;;  %v5208_v10 = vor.u32 %v5880_v48, %v5207_v61  ;;  %v5271_v43 = vld [vmem:[%s9197_s3 + $0x3d0] sm:$0xf]  ;;  %v5273_v48 = vld [vmem:[%s9197_s3 + $0x3d8] sm:$0xf0] }
 0x3df   :  { %v8054_v2 = vadd.f32 %v1815_v11, %v1771_v59  ;;  %v5896_v59 = vld [vmem:[%s9197_s3 + $0x3d4] sm:$0xf0] }
 0x3e0   :  { %v5272_v11 = vor.u32 %v5896_v59, %v5271_v43  ;;  %2834 = vmatpush.bf16.msrb.mxu0 %v5208_v10 }
 0x3e1   :  { %2444 = vmatmul.bf16.vlgmr.msra.gmra.mxu0 %v7742_v19  ;;  %2488 = vmatmul.bf16.vlgmr.msra.gmra.mxu1 %v7744_v32 }
 0x3e2   :  { %2532 = vmatmul.bf16.vlgmr.msra.gmra.mxu2 %v7742_v19  ;;  %2576 = vmatmul.bf16.vlgmr.msra.gmra.mxu3 %v7744_v32  ;;  %v5897_v19 = vld [vmem:[%s9197_s3 + $0x3e4] sm:$0xf]  ;;  %v5220_v32 = vor.u32 %v5881_v13, %v5217_v9 }
 0x3e3   :  { %v5284_v34 = vor.u32 %v5897_v19, %v5281_v27  ;;  %2878 = vmatpush.bf16.msrb.mxu1 %v5272_v11  ;;  %v5209_v27 = vld [vmem:[%s9197_s3 + $0x358] sm:$0xf0] }
 0x3e4   :  { %2921 = vmatpush.bf16.msrb.mxu2 %v5220_v32  ;;  %v5879_v32 = vld [vmem:[%s9197_s3 + $0x354] sm:$0xf] }
 0x3e5   :  { %v1859_v56 = vpop.f32.mrf.mxu2  ;;  %v1903_v3 = vpop.f32.mrf.mxu3  ;;  %2965 = vmatpush.bf16.msrb.mxu3 %v5284_v34  ;;  %v5212_v61 = vor.u32 %v5879_v32, %v5209_v27 }
 0x3e6   :  { %v8060_v45 = vadd.f32 %v1903_v3, %v1859_v56  ;;  %v1773_v52 = vpop.f32.mrf.mxu0  ;;  %v1817_v58 = vpop.f32.mrf.mxu1 }
 0x3e7   :  { %v8062_v60 = vadd.f32 %v1817_v58, %v1773_v52 }
 0x3e8   :  { %2922 = vmatpush.bf16.msrb.mxu2 %v5212_v61 }
 0x3ed   :  { %v1861_v56 = vpop.f32.mrf.mxu2  ;;  %v1905_v3 = vpop.f32.mrf.mxu3 }
 0x3ee   :  { %v8088_v52 = vadd.f32 %v1905_v3, %v1861_v56  ;;  %v2077_v58 = vpop.f32.mrf.mxu0  ;;  %v2121_v13 = vpop.f32.mrf.mxu1 }
 0x3ef   :  { %v2078_v9 = vadd.f32 %v2077_v58, %v7740_v42  ;;  %v5895_v42 = vld [vmem:[%s9197_s3 + $0x3d4] sm:$0xf]  ;;  %v5199_v58 = vld [vmem:[%s9197_s3 + $0x340] sm:$0xf] }
 0x3f1   :  { %v8091_v19 = vadd.f32 %v2121_v13, %v2078_v9  ;;  %2449 = vmatmul.bf16.gmra.mxu0 %v7794_v46  ;;  %2493 = vmatmul.bf16.gmra.mxu1 %v7796_v35  ;;  %v5878_v13 = vld [vmem:[%s9197_s3 + $0x344] sm:$0xf0] }
 0x3f2   :  { %2537 = vmatmul.bf16.gmra.mxu2 %v7794_v46  ;;  %2581 = vmatmul.bf16.gmra.mxu3 %v7796_v35  ;;  %v5276_v46 = vor.u32 %v5895_v42, %v5273_v48  ;;  %v5200_v9 = vor.u32 %v5878_v13, %v5199_v58 }
 0x3f4   :  { %2966 = vmatpush.bf16.msrb.mxu3 %v5276_v46  ;;  %2835 = vmatpush.bf16.msrb.mxu0 %v5200_v9 }
 0x3f5   :  { %v2165_v34 = vpop.f32.mrf.mxu2  ;;  %v2209_v35 = vpop.f32.mrf.mxu3 }
 0x3f6   :  { %v2166_v10 = vadd.f32 %v2165_v34, %v7762_v47  ;;  %v2079_v43 = vpop.f32.mrf.mxu0  ;;  %v2123_v59 = vpop.f32.mrf.mxu1  ;;  %v5263_v47 = vld [vmem:[%s9197_s3 + $0x3c0] sm:$0xf] }
 0x3f7   :  { %v2080_v11 = vadd.f32 %v2079_v43, %v7764_v29  ;;  %v5894_v29 = vld [vmem:[%s9197_s3 + $0x3c4] sm:$0xf0]  ;;  %v5893_v43 = vld [vmem:[%s9197_s3 + $0x3c4] sm:$0xf] }
 0x3f8   :  { %v8111_v56 = vadd.f32 %v2209_v35, %v2166_v10  ;;  %v5264_v32 = vor.u32 %v5894_v29, %v5263_v47 }
 0x3f9   :  { %v8113_v3 = vadd.f32 %v2123_v59, %v2080_v11  ;;  %v5265_v11 = vld [vmem:[%s9197_s3 + $0x3c8] sm:$0xf0] }
 0x3fa   :  { %2879 = vmatpush.bf16.msrb.mxu1 %v5264_v32 }
 0x3fd   :  { %v2167_v27 = vpop.f32.mrf.mxu2  ;;  %v2211_v42 = vpop.f32.mrf.mxu3 }
 0x3fe   :  { %v2168_v61 = vadd.f32 %v2167_v27, %v7790_v15  ;;  %v2082_v48 = vpop.f32.mrf.mxu0  ;;  %v2126_v46 = vpop.f32.mrf.mxu1  ;;  %v5877_v15 = vld [vmem:[%s9197_s3 + $0x344] sm:$0xf]  ;;  %v5191_v27 = vld [vmem:[%s9197_s3 + $0x330] sm:$0xf] }
 0x3ff   :  { %v2083_v34 = vadd.f32 %v2082_v48, %v7792_v37  ;;  %v5201_v37 = vld [vmem:[%s9197_s3 + $0x348] sm:$0xf0] }
 0x400   :  { %v8129_v35 = vadd.f32 %v2211_v42, %v2168_v61  ;;  %v5204_v59 = vor.u32 %v5877_v15, %v5201_v37  ;;  %v5876_v42 = vld [vmem:[%s9197_s3 + $0x334] sm:$0xf0]  ;;  %v5255_v61 = vld [vmem:[%s9197_s3 + $0x3b0] sm:$0xf] }
 0x401   :  { %v8131_v10 = vadd.f32 %v2126_v46, %v2083_v34  ;;  %2454 = vmatmul.bf16.gmra.mxu0 %v7846_v17  ;;  %2498 = vmatmul.bf16.gmra.mxu1 %v7848_v38  ;;  %v5192_v48 = vor.u32 %v5876_v42, %v5191_v27 }
 0x402   :  { %2542 = vmatmul.bf16.gmra.mxu2 %v7846_v17  ;;  %2586 = vmatmul.bf16.gmra.mxu3 %v7848_v38  ;;  %v5268_v17 = vor.u32 %v5893_v43, %v5265_v11 }
 0x403   :  { %2923 = vmatpush.bf16.msrb.mxu2 %v5204_v59  ;;  %2836 = vmatpush.bf16.msrb.mxu0 %v5192_v48 }
 0x404   :  { %2967 = vmatpush.bf16.msrb.mxu3 %v5268_v17 }
 0x405   :  { %v2170_v58 = vpop.f32.mrf.mxu2  ;;  %v2214_v38 = vpop.f32.mrf.mxu3 }
 0x406   :  { %v2171_v13 = vadd.f32 %v2170_v58, %v7814_v31  ;;  %v2084_v47 = vpop.f32.mrf.mxu0  ;;  %v2128_v9 = vpop.f32.mrf.mxu1 }
 0x407   :  { %v2085_v29 = vadd.f32 %v2084_v47, %v7825_v8  ;;  %v5892_v8 = vld [vmem:[%s9197_s3 + $0x3b4] sm:$0xf0]  ;;  %v5257_v47 = vld [vmem:[%s9197_s3 + $0x3b8] sm:$0xf0] }
 0x408   :  { %v8151_v32 = vadd.f32 %v2214_v38, %v2171_v13  ;;  %v5256_v46 = vor.u32 %v5892_v8, %v5255_v61  ;;  %v5875_v38 = vld [vmem:[%s9197_s3 + $0x334] sm:$0xf] }
 0x409   :  { %v8162_v31 = vadd.f32 %v2128_v9, %v2085_v29  ;;  %v5183_v9 = vld [vmem:[%s9197_s3 + $0x320] sm:$0xf]  ;;  %v5874_v29 = vld [vmem:[%s9197_s3 + $0x324] sm:$0xf0] }
 0x40a   :  { %2880 = vmatpush.bf16.msrb.mxu1 %v5256_v46  ;;  %v5184_v42 = vor.u32 %v5874_v29, %v5183_v9  ;;  %v5889_v29 = vld [vmem:[%s9197_s3 + $0x3a4] sm:$0xf] }
 0x40c   :  { %2837 = vmatpush.bf16.msrb.mxu0 %v5184_v42 }
 0x40d   :  { %v2172_v34 = vpop.f32.mrf.mxu2  ;;  %v2216_v15 = vpop.f32.mrf.mxu3 }
 0x40e   :  { %v2173_v37 = vadd.f32 %v2172_v34, %v7842_v62  ;;  %v2087_v43 = vpop.f32.mrf.mxu0  ;;  %v2131_v59 = vpop.f32.mrf.mxu1  ;;  %v5193_v62 = vld [vmem:[%s9197_s3 + $0x338] sm:$0xf0] }
 0x40f   :  { %v2088_v11 = vadd.f32 %v2087_v43, %v7844_v49  ;;  %v5891_v49 = vld [vmem:[%s9197_s3 + $0x3b4] sm:$0xf]  ;;  %v5196_v13 = vor.u32 %v5875_v38, %v5193_v62 }
 0x410   :  { %v8169_v17 = vadd.f32 %v2216_v15, %v2173_v37  ;;  %v5260_v27 = vor.u32 %v5891_v49, %v5257_v47 }
 0x411   :  { %v8171_v58 = vadd.f32 %v2131_v59, %v2088_v11  ;;  %2459 = vmatmul.bf16.gmra.mxu0 %v7909_v5  ;;  %2503 = vmatmul.bf16.gmra.mxu1 %v7911_v53 }
 0x412   :  { %2547 = vmatmul.bf16.gmra.mxu2 %v7909_v5  ;;  %2591 = vmatmul.bf16.gmra.mxu3 %v7911_v53  ;;  %v5247_v5 = vld [vmem:[%s9197_s3 + $0x3a0] sm:$0xf]  ;;  %v5890_v53 = vld [vmem:[%s9197_s3 + $0x3a4] sm:$0xf0] }
 0x413   :  { %2924 = vmatpush.bf16.msrb.mxu2 %v5196_v13  ;;  %v5248_v61 = vor.u32 %v5890_v53, %v5247_v5  ;;  %2968 = vmatpush.bf16.msrb.mxu3 %v5260_v27  ;;  %v5175_v5 = vld [vmem:[%s9197_s3 + $0x310] sm:$0xf]  ;;  %v5872_v53 = vld [vmem:[%s9197_s3 + $0x314] sm:$0xf0] }
 0x415   :  { %v2175_v48 = vpop.f32.mrf.mxu2  ;;  %v2219_v8 = vpop.f32.mrf.mxu3  ;;  %2881 = vmatpush.bf16.msrb.mxu1 %v5248_v61  ;;  %v5239_v61 = vld [vmem:[%s9197_s3 + $0x390] sm:$0xf] }
 0x416   :  { %v2176_v46 = vadd.f32 %v2175_v48, %v7880_v1  ;;  %v2089_v34 = vpop.f32.mrf.mxu0  ;;  %v2133_v15 = vpop.f32.mrf.mxu1  ;;  %v5873_v1 = vld [vmem:[%s9197_s3 + $0x324] sm:$0xf]  ;;  %v5176_v48 = vor.u32 %v5872_v53, %v5175_v5 }
 0x417   :  { %v2090_v37 = vadd.f32 %v2089_v34, %v7882_v57  ;;  %v5185_v57 = vld [vmem:[%s9197_s3 + $0x328] sm:$0xf0] }
 0x418   :  { %v8203_v43 = vadd.f32 %v2219_v8, %v2176_v46  ;;  %2838 = vmatpush.bf16.msrb.mxu0 %v5176_v48 }
 0x419   :  { %v8205_v59 = vadd.f32 %v2133_v15, %v2090_v37 }
 0x41d   :  { %v2177_v11 = vpop.f32.mrf.mxu2  ;;  %v2221_v38 = vpop.f32.mrf.mxu3 }
 0x41e   :  { %v2178_v62 = vadd.f32 %v2177_v11, %v7896_v54  ;;  %v2092_v49 = vpop.f32.mrf.mxu0  ;;  %v2136_v13 = vpop.f32.mrf.mxu1  ;;  %v5188_v54 = vor.u32 %v5873_v1, %v5185_v57  ;;  %v5871_v57 = vld [vmem:[%s9197_s3 + $0x314] sm:$0xf] }
 0x41f   :  { %v2093_v47 = vadd.f32 %v2092_v49, %v7907_v39  ;;  %v5249_v39 = vld [vmem:[%s9197_s3 + $0x3a8] sm:$0xf0]  ;;  %v9336_v49 = vld [vmem:[#allocation15_spill] sm:$0xff] }
 0x420   :  { %v8209_v9 = vadd.f32 %v2221_v38, %v2178_v62  ;;  %v5252_v42 = vor.u32 %v5889_v29, %v5249_v39  ;;  %2925 = vmatpush.bf16.msrb.mxu2 %v5188_v54  ;;  %v9338_v29 = vld [vmem:[#allocation23_spill] sm:$0xff]  ;;  %v9339_v39 = vld [vmem:[#allocation29_spill] sm:$0xff] }
 0x421   :  { %v8220_v27 = vadd.f32 %v2136_v13, %v2093_v47  ;;  %2464 = vmatmul.bf16.gmra.mxu0 %v7964_v30  ;;  %2508 = vmatmul.bf16.gmra.mxu1 %v7966_v26  ;;  %v1140_v13 = vmul.f32 %v7319_v24, %v9336_v49  ;;  %v9337_v47 = vld [vmem:[#allocation24_spill] sm:$0xff]  ;;  %v1141_v54 = vmul.f32 %v7312_v36, %v9338_v29 }
 0x422   :  { %2552 = vmatmul.bf16.gmra.mxu2 %v7964_v30  ;;  %2596 = vmatmul.bf16.gmra.mxu3 %v7966_v26  ;;  %v5888_v30 = vld [vmem:[%s9197_s3 + $0x394] sm:$0xf0]  ;;  %v1142_v1 = vmul.f32 %v7319_v24, %v9337_v47  ;;  %v5241_v24 = vld [vmem:[%s9197_s3 + $0x398] sm:$0xf0]  ;;  %v5169_v29 = vld [vmem:[%s9197_s3 + $0x308] sm:$0xf0] }
 0x423   :  { %2969 = vmatpush.bf16.msrb.mxu3 %v5252_v42  ;;  %v5240_v26 = vor.u32 %v5888_v30, %v5239_v61  ;;  %v1143_v42 = vmul.f32 %v7312_v36, %v9339_v39  ;;  %v1168_v53 = vadd.f32 %v1140_v13, %v7338_v12  ;;  %v1169_v30 = vadd.f32 %v1141_v54, %v7317_v33 }
 0x424   :  { %v1170_v61 = vadd.f32 %v1142_v1, %v7338_v12 }
 0x425   :  { %v2180_v8 = vpop.f32.mrf.mxu2  ;;  %v2224_v46 = vpop.f32.mrf.mxu3  ;;  %2882 = vmatpush.bf16.msrb.mxu1 %v5240_v26  ;;  %v1171_v26 = vadd.f32 %v1143_v42, %v7317_v33  ;;  %vm1280_vm11 = vcmp.ge.f32.partialorder %v1168_v53, 0.0  ;;  %v1309_v12 = vmul.f32 0.01, %v1169_v30  ;;  %v5167_v33 = vld [vmem:[%s9197_s3 + $0x300] sm:$0xf]  ;;  %vm1281_vm13 = vcmp.ge.f32.partialorder %v1169_v30, 0.0 }
 0x426   :  { %v2181_v34 = vadd.f32 %v2180_v8, %v7932_v18  ;;  %v2094_v15 = vpop.f32.mrf.mxu0  ;;  %v2138_v37 = vpop.f32.mrf.mxu1  ;;  %v5177_v18 = vld [vmem:[%s9197_s3 + $0x318] sm:$0xf0]  ;;  %vm1282_vm12 = vcmp.ge.f32.partialorder %v1170_v61, 0.0  ;;  %v1310_v13 = vmul.f32 0.01, %v1170_v61 }
 0x427   :  { %v2095_v11 = vadd.f32 %v2094_v15, %v7934_v14  ;;  %v5887_v14 = vld [vmem:[%s9197_s3 + $0x394] sm:$0xf]  ;;  %v5180_v5 = vor.u32 %v5871_v57, %v5177_v18  ;;  %v1311_v47 = vmul.f32 0.01, %v1171_v26  ;;  %v5886_v18 = vld [vmem:[%s9197_s3 + $0x384] sm:$0xf0] }
 0x428   :  { %v8243_v38 = vadd.f32 %v2224_v46, %v2181_v34  ;;  %v5244_v48 = vor.u32 %v5887_v14, %v5241_v24  ;;  %v5869_v14 = vld [vmem:[%s9197_s3 + $0x304] sm:$0xf]  ;;  %vm1283_vm14 = vcmp.ge.f32.partialorder %v1171_v26, 0.0 }
 0x429   :  { %v8245_v62 = vadd.f32 %v2138_v37, %v2095_v11  ;;  %2926 = vmatpush.bf16.msrb.mxu2 %v5180_v5  ;;  %v1308_v11 = vmul.f32 0.01, %v1168_v53  ;;  %v5172_v39 = vor.u32 %v5869_v14, %v5169_v29  ;;  %v1338_v5 = vsel %vm1282_vm12, %v1170_v61, %v1310_v13 }
 0x42a   :  { %2970 = vmatpush.bf16.msrb.mxu3 %v5244_v48 }
 0x42b   :  { %v1336_v42 = vsel %vm1280_vm11, %v1168_v53, %v1308_v11 }
 0x42d   :  { %v2182_v8 = vpop.f32.mrf.mxu2  ;;  %v2226_v46 = vpop.f32.mrf.mxu3  ;;  %2927 = vmatpush.bf16.msrb.mxu2 %v5172_v39 }
 0x42e   :  { %v2183_v36 = vadd.f32 %v2182_v8, %v7959_v23  ;;  %v2097_v34 = vpop.f32.mrf.mxu0  ;;  %v2141_v15 = vpop.f32.mrf.mxu1  ;;  %v5870_v23 = vld [vmem:[%s9197_s3 + $0x304] sm:$0xf0] }
 0x42f   :  { %v2098_v37 = vadd.f32 %v2097_v34, %v7962_v0  ;;  %v5231_v0 = vld [vmem:[%s9197_s3 + $0x380] sm:$0xf]  ;;  %v5168_v57 = vor.u32 %v5870_v23, %v5167_v33 }
 0x430   :  { %v8273_v49 = vadd.f32 %v2226_v46, %v2183_v36  ;;  %v5232_v54 = vor.u32 %v5886_v18, %v5231_v0 }
 0x431   :  { %v8275_v1 = vadd.f32 %v2141_v15, %v2098_v37  ;;  %2469 = vmatmul.bf16.gmra.mxu0 %v8013_v63  ;;  %2513 = vmatmul.bf16.gmra.mxu1 %v8015_v6  ;;  %v1337_v15 = vsel %vm1281_vm13, %v1169_v30, %v1309_v12  ;;  %v1339_v37 = vsel %vm1283_vm14, %v1171_v26, %v1311_v47 }
 0x432   :  { %2557 = vmatmul.bf16.gmra.mxu2 %v8013_v63  ;;  %2601 = vmatmul.bf16.gmra.mxu3 %v8015_v6  ;;  %v5885_v63 = vld [vmem:[%s9197_s3 + $0x384] sm:$0xf]  ;;  %v5233_v6 = vld [vmem:[%s9197_s3 + $0x388] sm:$0xf0]  ;;  %v1352_v53 = vpack.c.bf16 %v1337_v15, %v1336_v42  ;;  %v1353_v11 = vpack.c.bf16 %v1339_v37, %v1338_v5 }
 0x433   :  { %2839 = vmatpush.bf16.msrb.mxu0 %v5168_v57  ;;  %v5236_v24 = vor.u32 %v5885_v63, %v5233_v6  ;;  %2883 = vmatpush.bf16.msrb.mxu1 %v5232_v54 }
 0x434   :  { %v1392_v23 = vunpack.c.l.b16 %v1352_v53  ;;  %v1394_v0 = vunpack.c.l.b16 %v1353_v11  ;;  %v1393_v57 = vunpack.c.h.b16 %v1352_v53  ;;  %v1395_v18 = vunpack.c.h.b16 %v1353_v11 }
 0x435   :  { %v2185_v48 = vpop.f32.mrf.mxu2  ;;  %v2229_v8 = vpop.f32.mrf.mxu3  ;;  %2971 = vmatpush.bf16.msrb.mxu3 %v5236_v24 }
 0x436   :  { %v2186_v46 = vadd.f32 %v2185_v48, %v7996_v44  ;;  %v2099_v36 = vpop.f32.mrf.mxu0  ;;  %v2143_v34 = vpop.f32.mrf.mxu1  ;;  %v1408_v47 = vpack.c.b16 %v1394_v0, %v1392_v23 }
 0x437   :  { %v2100_v33 = vadd.f32 %v2099_v36, %v7998_v20  ;;  %v1409_v20 = vpack.c.b16 %v1395_v18, %v1393_v57 }
 0x438   :  { %v8311_v61 = vadd.f32 %v2229_v8, %v2186_v46 }
 0x439   :  { %v8313_v13 = vadd.f32 %v2143_v34, %v2100_v33 }
 0x43d   :  { %v2187_v44 = vpop.f32.mrf.mxu2  ;;  %v2231_v14 = vpop.f32.mrf.mxu3 }
 0x43e   :  { %v2188_v29 = vadd.f32 %v2187_v44, %v8000_v25  ;;  %v2102_v30 = vpop.f32.mrf.mxu0  ;;  %v2146_v12 = vpop.f32.mrf.mxu1 }
 0x43f   :  { %v2103_v26 = vadd.f32 %v2102_v30, %v8011_v16 }
 0x440   :  { %v8317_v54 = vadd.f32 %v2231_v14, %v2188_v29 }
 0x441   :  { %v8319_v39 = vadd.f32 %v2146_v12, %v2103_v26  ;;  %2474 = vmatmul.bf16.gmra.mxu0 %v1408_v47  ;;  %2518 = vmatmul.bf16.gmra.mxu1 %v1409_v20 }
 0x442   :  { %2562 = vmatmul.bf16.gmra.mxu2 %v1408_v47  ;;  %2606 = vmatmul.bf16.gmra.mxu3 %v1409_v20 }
 0x445   :  { %v2190_v63 = vpop.f32.mrf.mxu2  ;;  %v2234_v6 = vpop.f32.mrf.mxu3 }
 0x446   :  { %v2191_v42 = vadd.f32 %v2190_v63, %v8024_v28  ;;  %v2104_v5 = vpop.f32.mrf.mxu0  ;;  %v2148_v25 = vpop.f32.mrf.mxu1 }
 0x447   :  { %v2105_v24 = vadd.f32 %v2104_v5, %v8026_v4 }
 0x448   :  { %v8323_v48 = vadd.f32 %v2234_v6, %v2191_v42 }
 0x449   :  { %v8325_v16 = vadd.f32 %v2148_v25, %v2105_v24 }
 0x44d   :  { %v2192_v8 = vpop.f32.mrf.mxu2  ;;  %v2236_v46 = vpop.f32.mrf.mxu3 }
 0x44e   :  { %v2193_v36 = vadd.f32 %v2192_v8, %v8052_v55  ;;  %v2107_v34 = vpop.f32.mrf.mxu0  ;;  %v2151_v15 = vpop.f32.mrf.mxu1 }
 0x44f   :  { %v2108_v37 = vadd.f32 %v2107_v34, %v8054_v2 }
 0x450   :  { %v8329_v33 = vadd.f32 %v2236_v46, %v2193_v36 }
 0x451   :  { %v8331_v53 = vadd.f32 %v2151_v15, %v2108_v37  ;;  %2840 = vmatmul.bf16.vlgmr.msrb.gmra.mxu0 %v7412_v51  ;;  %2884 = vmatmul.bf16.vlgmr.msrb.gmra.mxu1 %v7414_v7 }
 0x452   :  { %2928 = vmatmul.bf16.vlgmr.msrb.gmra.mxu2 %v7412_v51  ;;  %2972 = vmatmul.bf16.vlgmr.msrb.gmra.mxu3 %v7414_v7 }
 0x455   :  { %v2195_v28 = vpop.f32.mrf.mxu2  ;;  %v2239_v4 = vpop.f32.mrf.mxu3 }
 0x456   :  { %v2196_v55 = vadd.f32 %v2195_v28, %v8060_v45  ;;  %v2109_v11 = vpop.f32.mrf.mxu0  ;;  %v2153_v23 = vpop.f32.mrf.mxu1 }
 0x457   :  { %v2110_v2 = vadd.f32 %v2109_v11, %v8062_v60 }
 0x458   :  { %v8339_v0 = vadd.f32 %v2239_v4, %v2196_v55 }
 0x459   :  { %v8341_v57 = vadd.f32 %v2153_v23, %v2110_v2  ;;  %v9340_v2 = vld [vmem:[#allocation10_spill] sm:$0xff] }
 0x45d   :  { %v2197_v18 = vpop.f32.mrf.mxu2  ;;  %v2241_v44 = vpop.f32.mrf.mxu3 }
 0x45e   :  { %v2198_v14 = vadd.f32 %v2197_v18, %v8088_v52  ;;  %v2445_v29 = vpop.f32.mrf.mxu0  ;;  %v2489_v51 = vpop.f32.mrf.mxu1 }
 0x45f   :  { %v2490_v30 = vadd.f32 %v2489_v51, %v2445_v29 }
 0x460   :  { %v8344_v7 = vadd.f32 %v2241_v44, %v2198_v14 }
 0x461   :  { %v8347_v12 = vadd.f32 %v2490_v30, %v8091_v19  ;;  %2845 = vmatmul.bf16.gmra.mxu0 %v7459_v22  ;;  %2889 = vmatmul.bf16.gmra.mxu1 %v7461_v41 }
 0x462   :  { %2933 = vmatmul.bf16.gmra.mxu2 %v7459_v22  ;;  %2977 = vmatmul.bf16.gmra.mxu3 %v7461_v41 }
 0x465   :  { %v2533_v45 = vpop.f32.mrf.mxu2  ;;  %v2577_v60 = vpop.f32.mrf.mxu3 }
 0x466   :  { %v2578_v26 = vadd.f32 %v2577_v60, %v2533_v45  ;;  %v2447_v52 = vpop.f32.mrf.mxu0  ;;  %v2491_v47 = vpop.f32.mrf.mxu1  ;;  %v9341_v60 = vld [vmem:[#allocation11_spill] sm:$0xff] }
 0x467   :  { %v2492_v20 = vadd.f32 %v2491_v47, %v2447_v52 }
 0x468   :  { %v8354_v63 = vadd.f32 %v2578_v26, %v8111_v56  ;;  %v9342_v26 = vld [vmem:[#allocation26_spill] sm:$0xff] }
 0x469   :  { %v8357_v19 = vadd.f32 %v2492_v20, %v8113_v3 }
 0x46d   :  { %v2535_v6 = vpop.f32.mrf.mxu2  ;;  %v2579_v42 = vpop.f32.mrf.mxu3 }
 0x46e   :  { %v2580_v5 = vadd.f32 %v2579_v42, %v2535_v6  ;;  %v2450_v25 = vpop.f32.mrf.mxu0  ;;  %v2494_v24 = vpop.f32.mrf.mxu1 }
 0x46f   :  { %v2495_v22 = vadd.f32 %v2494_v24, %v2450_v25 }
 0x470   :  { %v8360_v41 = vadd.f32 %v2580_v5, %v8129_v35 }
 0x471   :  { %v8363_v8 = vadd.f32 %v2495_v22, %v8131_v10  ;;  %2850 = vmatmul.bf16.gmra.mxu0 %v7518_v21  ;;  %2894 = vmatmul.bf16.gmra.mxu1 %v7520_v40 }
 0x472   :  { %2938 = vmatmul.bf16.gmra.mxu2 %v7518_v21  ;;  %2982 = vmatmul.bf16.gmra.mxu3 %v7520_v40 }
 0x475   :  { %v2538_v56 = vpop.f32.mrf.mxu2  ;;  %v2582_v3 = vpop.f32.mrf.mxu3 }
 0x476   :  { %v2583_v46 = vadd.f32 %v2582_v3, %v2538_v56  ;;  %v2452_v36 = vpop.f32.mrf.mxu0  ;;  %v2496_v34 = vpop.f32.mrf.mxu1  ;;  %v9344_v3 = vld [vmem:[#allocation28_spill] sm:$0xff] }
 0x477   :  { %v2497_v15 = vadd.f32 %v2496_v34, %v2452_v36 }
 0x478   :  { %v8370_v35 = vadd.f32 %v2583_v46, %v8151_v32  ;;  %v9345_v46 = vld [vmem:[#allocation30_spill] sm:$0xff] }
 0x479   :  { %v8373_v10 = vadd.f32 %v2497_v15, %v8162_v31 }
 0x47d   :  { %v2540_v37 = vpop.f32.mrf.mxu2  ;;  %v2584_v28 = vpop.f32.mrf.mxu3 }
 0x47e   :  { %v2585_v4 = vadd.f32 %v2584_v28, %v2540_v37  ;;  %v2455_v55 = vpop.f32.mrf.mxu0  ;;  %v2499_v11 = vpop.f32.mrf.mxu1 }
 0x47f   :  { %v2500_v21 = vadd.f32 %v2499_v11, %v2455_v55 }
 0x480   :  { %v8376_v40 = vadd.f32 %v2585_v4, %v8169_v17 }
 0x481   :  { %v8379_v23 = vadd.f32 %v2500_v21, %v8171_v58  ;;  %2855 = vmatmul.bf16.gmra.mxu0 %v7565_v50  ;;  %2899 = vmatmul.bf16.gmra.mxu1 %v9340_v2 }
 0x482   :  { %2943 = vmatmul.bf16.gmra.mxu2 %v7565_v50  ;;  %2987 = vmatmul.bf16.gmra.mxu3 %v9340_v2 }
 0x485   :  { %v2543_v32 = vpop.f32.mrf.mxu2  ;;  %v2587_v31 = vpop.f32.mrf.mxu3 }
 0x486   :  { %v2588_v18 = vadd.f32 %v2587_v31, %v2543_v32  ;;  %v8385_v44 = vpop.f32.mrf.mxu0  ;;  %v8387_v14 = vpop.f32.mrf.mxu1  ;;  %v9348_v32 = vmov 0  }
 0x488   :  { %v8390_v17 = vadd.f32 %v2588_v18, %v8203_v43 }
 0x48d   :  { %v8392_v58 = vpop.f32.mrf.mxu2  ;;  %v8394_v29 = vpop.f32.mrf.mxu3 }
 0x48e   :  { %v2460_v51 = vpop.f32.mrf.mxu0  ;;  %v2504_v30 = vpop.f32.mrf.mxu1 }
 0x48f   :  { %v2505_v45 = vadd.f32 %v2504_v30, %v2460_v51 }
 0x491   :  { %v8397_v50 = vadd.f32 %v2505_v45, %v8220_v27  ;;  %2860 = vmatmul.bf16.gmra.mxu0 %v9341_v60  ;;  %2904 = vmatmul.bf16.gmra.mxu1 %v9342_v26 }
 0x492   :  { %2948 = vmatmul.bf16.gmra.mxu2 %v9341_v60  ;;  %2992 = vmatmul.bf16.gmra.mxu3 %v9342_v26 }
 0x495   :  { %v2548_v43 = vpop.f32.mrf.mxu2  ;;  %v2592_v52 = vpop.f32.mrf.mxu3 }
 0x496   :  { %v2593_v47 = vadd.f32 %v2592_v52, %v2548_v43  ;;  %v8403_v20 = vpop.f32.mrf.mxu0  ;;  %v8405_v6 = vpop.f32.mrf.mxu1 }
 0x498   :  { %v8408_v42 = vadd.f32 %v2593_v47, %v8243_v38 }
 0x49a   :  { %9343 = vst [vmem:[#allocation13_spill] sm:$0xff] %v8408_v42 }
 0x49d   :  { %v8410_v27 = vpop.f32.mrf.mxu2  ;;  %v8412_v5 = vpop.f32.mrf.mxu3 }
 0x49e   :  { %v2465_v25 = vpop.f32.mrf.mxu0  ;;  %v2509_v24 = vpop.f32.mrf.mxu1 }
 0x49f   :  { %v2510_v22 = vadd.f32 %v2509_v24, %v2465_v25 }
 0x4a1   :  { %v8415_v56 = vadd.f32 %v2510_v22, %v8275_v1  ;;  %2865 = vmatmul.bf16.gmra.mxu0 %v9344_v3  ;;  %2909 = vmatmul.bf16.gmra.mxu1 %v9345_v46 }
 0x4a2   :  { %2953 = vmatmul.bf16.gmra.mxu2 %v9344_v3  ;;  %2997 = vmatmul.bf16.gmra.mxu3 %v9345_v46 }
 0x4a5   :  { %v2553_v38 = vpop.f32.mrf.mxu2  ;;  %v2597_v36 = vpop.f32.mrf.mxu3 }
 0x4a6   :  { %v2598_v34 = vadd.f32 %v2597_v36, %v2553_v38  ;;  %v8421_v15 = vpop.f32.mrf.mxu0  ;;  %v8423_v37 = vpop.f32.mrf.mxu1 }
 0x4a8   :  { %v8426_v28 = vadd.f32 %v2598_v34, %v8311_v61 }
 0x4aa   :  { %9346 = vst [vmem:[#allocation14_spill] sm:$0xff] %v8426_v28  ;;  %v2507_v28 = vadd.f32 %v8405_v6, %v8403_v20 }
 0x4ad   :  { %v8428_v1 = vpop.f32.mrf.mxu2  ;;  %v8430_v4 = vpop.f32.mrf.mxu3 }
 0x4ae   :  { %v2470_v55 = vpop.f32.mrf.mxu0  ;;  %v2514_v11 = vpop.f32.mrf.mxu1 }
 0x4af   :  { %v2515_v21 = vadd.f32 %v2514_v11, %v2470_v55 }
 0x4b1   :  { %v8433_v2 = vadd.f32 %v2515_v21, %v8319_v39  ;;  %2870 = vmatmul.bf16.gmra.mxu0 %v9348_v32  ;;  %2914 = vmatmul.bf16.gmra.mxu1 %v9348_v32 }
 0x4b2   :  { %2958 = vmatmul.bf16.gmra.mxu2 %v9348_v32  ;;  %3002 = vmatmul.bf16.gmra.mxu3 %v9348_v32 }
 0x4b3   :  { %9347 = vst [vmem:[#allocation12_spill] sm:$0xff] %v8433_v2  ;;  %v2595_v2 = vadd.f32 %v8412_v5, %v8410_v27 }
 0x4b5   :  { %v2558_v61 = vpop.f32.mrf.mxu2  ;;  %v2602_v31 = vpop.f32.mrf.mxu3 }
 0x4b6   :  { %v2603_v18 = vadd.f32 %v2602_v31, %v2558_v61  ;;  %v8439_v51 = vpop.f32.mrf.mxu0  ;;  %v8441_v30 = vpop.f32.mrf.mxu1 }
 0x4b8   :  { %v8444_v45 = vadd.f32 %v2603_v18, %v8323_v48 }
 0x4ba   :  { %9349 = vst [vmem:[#allocation17_spill] sm:$0xff] %v8444_v45  ;;  %v2502_v45 = vadd.f32 %v8387_v14, %v8385_v44  ;;  %v2517_v44 = vadd.f32 %v8441_v30, %v8439_v51 }
 0x4bc   :  { %v2622_v20 = vadd.f32 %v2502_v45, %v8205_v59 }
 0x4bd   :  { %v2560_v39 = vpop.f32.mrf.mxu2  ;;  %v2604_v60 = vpop.f32.mrf.mxu3 }
 0x4be   :  { %v2605_v26 = vadd.f32 %v2604_v60, %v2560_v39  ;;  %v2475_v43 = vpop.f32.mrf.mxu0  ;;  %v2519_v52 = vpop.f32.mrf.mxu1 }
 0x4bf   :  { %v2520_v47 = vadd.f32 %v2519_v52, %v2475_v43 }
 0x4c0   :  { %v8447_v25 = vadd.f32 %v2605_v26, %v8329_v33 }
 0x4c1   :  { %v8450_v24 = vadd.f32 %v2520_v47, %v8331_v53 }
 0x4c2   :  { %9350 = vst [vmem:[#allocation18_spill] sm:$0xff] %v8447_v25 }
 0x4c3   :  { %9351 = vst [vmem:[#allocation16_spill] sm:$0xff] %v8450_v24  ;;  %v2590_v24 = vadd.f32 %v8394_v29, %v8392_v58 }
 0x4c5   :  { %v2563_v22 = vpop.f32.mrf.mxu2  ;;  %v2607_v3 = vpop.f32.mrf.mxu3  ;;  %v2623_v6 = vadd.f32 %v2590_v24, %v8209_v9 }
 0x4c6   :  { %v2608_v46 = vadd.f32 %v2607_v3, %v2563_v22  ;;  %v2477_v38 = vpop.f32.mrf.mxu0  ;;  %v2521_v36 = vpop.f32.mrf.mxu1 }
 0x4c7   :  { %v2522_v34 = vadd.f32 %v2521_v36, %v2477_v38 }
 0x4c8   :  { %v8453_v48 = vadd.f32 %v2608_v46, %v8339_v0 }
 0x4c9   :  { %v8456_v55 = vadd.f32 %v2522_v34, %v8341_v57 }
 0x4ca   :  { %9352 = vst [vmem:[#allocation4_spill] sm:$0xff] %v8453_v48 }
 0x4cb   :  { %9353 = vst [vmem:[#allocation6_spill] sm:$0xff] %v8456_v55 }
 0x4cd   :  { %v2565_v11 = vpop.f32.mrf.mxu2  ;;  %v2609_v21 = vpop.f32.mrf.mxu3 }
 0x4ce   :  { %v2610_v32 = vadd.f32 %v2609_v21, %v2565_v11  ;;  %v2841_v33 = vpop.f32.mrf.mxu0  ;;  %v2885_v61 = vpop.f32.mrf.mxu1 }
 0x4cf   :  { %v2886_v31 = vadd.f32 %v2885_v61, %v2841_v33 }
 0x4d0   :  { %v8459_v53 = vadd.f32 %v2610_v32, %v8344_v7 }
 0x4d1   :  { %v8462_v18 = vadd.f32 %v2886_v31, %v8347_v12 }
 0x4d2   :  { %9354 = vst [vmem:[#allocation3_spill] sm:$0xff] %v8459_v53 }
 0x4d3   :  { %v3074_v59 = vmul.f32 %v8462_v18, %v8462_v18 }
 0x4d5   :  { %v2929_v39 = vpop.f32.mrf.mxu2  ;;  %v2973_v60 = vpop.f32.mrf.mxu3 }
 0x4d6   :  { %v2974_v26 = vadd.f32 %v2973_v60, %v2929_v39  ;;  %v2843_v0 = vpop.f32.mrf.mxu0  ;;  %v2887_v43 = vpop.f32.mrf.mxu1 }
 0x4d7   :  { %v2888_v52 = vadd.f32 %v2887_v43, %v2843_v0 }
 0x4d8   :  { %v8465_v57 = vadd.f32 %v2974_v26, %v8354_v63 }
 0x4d9   :  { %v8468_v47 = vadd.f32 %v2888_v52, %v8357_v19 }
 0x4db   :  { %v3076_v27 = vmul.f32 %v8468_v47, %v8468_v47 }
 0x4dd   :  { %v2931_v22 = vpop.f32.mrf.mxu2  ;;  %v2975_v3 = vpop.f32.mrf.mxu3 }
 0x4de   :  { %v2976_v46 = vadd.f32 %v2975_v3, %v2931_v22  ;;  %v2846_v7 = vpop.f32.mrf.mxu0  ;;  %v2890_v38 = vpop.f32.mrf.mxu1 }
 0x4df   :  { %v2891_v36 = vadd.f32 %v2890_v38, %v2846_v7 }
 0x4e0   :  { %v8471_v12 = vadd.f32 %v2976_v46, %v8360_v41 }
 0x4e1   :  { %v8474_v34 = vadd.f32 %v2891_v36, %v8363_v8 }
 0x4e2   :  { %v3077_v9 = vmul.f32 %v8471_v12, %v8471_v12 }
 0x4e5   :  { %v2934_v11 = vpop.f32.mrf.mxu2  ;;  %v2978_v21 = vpop.f32.mrf.mxu3 }
 0x4e6   :  { %v2979_v32 = vadd.f32 %v2978_v21, %v2934_v11  ;;  %v2848_v63 = vpop.f32.mrf.mxu0  ;;  %v2892_v33 = vpop.f32.mrf.mxu1 }
 0x4e8   :  { %v8477_v19 = vadd.f32 %v2979_v32, %v8370_v35 }
 0x4ed   :  { %v2936_v61 = vpop.f32.mrf.mxu2  ;;  %v2980_v31 = vpop.f32.mrf.mxu3 }
 0x4ee   :  { %v2851_v39 = vpop.f32.mrf.mxu0  ;;  %v2895_v60 = vpop.f32.mrf.mxu1  ;;  %v2981_v5 = vadd.f32 %v2980_v31, %v2936_v61 }
 0x4ef   :  { %v2896_v14 = vadd.f32 %v2895_v60, %v2851_v39 }
 0x4f0   :  { %v8541_v45 = vadd.f32 %v2981_v5, %v8376_v40 }
 0x4f5   :  { %v2939_v26 = vpop.f32.mrf.mxu2  ;;  %v2983_v0 = vpop.f32.mrf.mxu3 }
 0x4f6   :  { %v2853_v43 = vpop.f32.mrf.mxu0  ;;  %v2897_v41 = vpop.f32.mrf.mxu1 }
 0x4fd   :  { %v2941_v52 = vpop.f32.mrf.mxu2  ;;  %v2985_v22 = vpop.f32.mrf.mxu3 }
 0x4fe   :  { %v2856_v8 = vpop.f32.mrf.mxu0  ;;  %v2900_v3 = vpop.f32.mrf.mxu1 }
 0x505   :  { %v8479_v46 = vpop.f32.mrf.mxu2  ;;  %v8481_v7 = vpop.f32.mrf.mxu3 }
 0x506   :  { %v2858_v38 = vpop.f32.mrf.mxu0  ;;  %v2902_v36 = vpop.f32.mrf.mxu1 }
 0x507   :  { %v2903_v61 = vadd.f32 %v2902_v36, %v2858_v38 }
 0x50d   :  { %v8483_v35 = vpop.f32.mrf.mxu2  ;;  %v8485_v11 = vpop.f32.mrf.mxu3 }
 0x50e   :  { %9355 = vst [vmem:[#allocation5_spill] sm:$0xff] %v8483_v35  ;;  %v2861_v21 = vpop.f32.mrf.mxu0  ;;  %v2905_v32 = vpop.f32.mrf.mxu1 }
 0x50f   :  { %9356 = vst [vmem:[#allocation7_spill] sm:$0xff] %v8485_v11  ;;  %v2893_v11 = vadd.f32 %v2892_v33, %v2848_v63  ;;  %v3079_v33 = vmul.f32 %v8477_v19, %v8477_v19  ;;  %v2906_v38 = vadd.f32 %v2905_v32, %v2861_v21 }
 0x515   :  { %v8487_v53 = vpop.f32.mrf.mxu2  ;;  %v8489_v48 = vpop.f32.mrf.mxu3 }
 0x516   :  { %9357 = vst [vmem:[#allocation8_spill] sm:$0xff] %v8487_v53  ;;  %v2863_v55 = vpop.f32.mrf.mxu0  ;;  %v2907_v25 = vpop.f32.mrf.mxu1  ;;  %v2512_v53 = vadd.f32 %v8423_v37, %v8421_v15  ;;  %v2626_v15 = vadd.f32 %v2507_v28, %v8245_v62  ;;  %v8515_v37 = vadd.f32 %v2595_v2, %v8273_v49  ;;  %v8529_v62 = vadd.f32 %v2517_v44, %v8325_v16 }
 0x517   :  { %9358 = vst [vmem:[#allocation38_spill] sm:$0xff] %v8489_v48  ;;  %v2600_v48 = vadd.f32 %v8430_v4, %v8428_v1  ;;  %v8518_v1 = vadd.f32 %v2893_v11, %v8373_v10  ;;  %v2898_v4 = vadd.f32 %v2897_v41, %v2853_v43  ;;  %v3078_v49 = vmul.f32 %v8474_v34, %v8474_v34 }
 0x518   :  { %v2630_v51 = vadd.f32 %v2512_v53, %v8313_v13  ;;  %v8534_v10 = vadd.f32 %v2896_v14, %v8379_v23  ;;  %v2901_v28 = vadd.f32 %v2900_v3, %v2856_v8  ;;  %v3075_v13 = vmul.f32 %v8465_v57, %v8465_v57 }
 0x519   :  { %v8522_v30 = vadd.f32 %v2600_v48, %v8317_v54  ;;  %v3036_v54 = vadd.f32 %v8468_v47, %v8462_v18  ;;  %v3102_v2 = vadd.f32 %v3076_v27, %v3074_v59  ;;  %v3055_v16 = vadd.f32 %v8471_v12, %v8465_v57 }
 0x51a   :  { %v3080_v24 = vmul.f32 %v8518_v1, %v8518_v1  ;;  %v2984_v48 = vadd.f32 %v2983_v0, %v2939_v26  ;;  %v8547_v23 = vadd.f32 %v2898_v4, %v2622_v20  ;;  %v3121_v53 = vadd.f32 %v3077_v9, %v3075_v13 }
 0x51b   :  { %v3037_v63 = vadd.f32 %v3036_v54, %v8474_v34  ;;  %v3103_v40 = vadd.f32 %v3102_v2, %v3078_v49  ;;  %v3082_v60 = vmul.f32 %v8534_v10, %v8534_v10  ;;  %v2986_v43 = vadd.f32 %v2985_v22, %v2941_v52  ;;  %v9360_v49 = vld [vmem:[#allocation5_spill] sm:$0xff] }
 0x51c   :  { %v8555_v41 = vadd.f32 %v2901_v28, %v8397_v50  ;;  %v3056_v8 = vadd.f32 %v3055_v16, %v8477_v19  ;;  %v3081_v11 = vmul.f32 %v8541_v45, %v8541_v45  ;;  %v8562_v44 = vadd.f32 %v2984_v48, %v8390_v17 }
 0x51d   :  { %v8503_v35 = vpop.f32.mrf.mxu2  ;;  %v8505_v42 = vpop.f32.mrf.mxu3  ;;  %v3038_v3 = vadd.f32 %v3037_v63, %v8518_v1  ;;  %v3104_v36 = vadd.f32 %v3103_v40, %v3080_v24  ;;  %v3084_v52 = vmul.f32 %v8547_v23, %v8547_v23  ;;  %v2989_v50 = vadd.f32 %v8481_v7, %v8479_v46 }
 0x51e   :  { %v2866_v58 = vpop.f32.mrf.mxu0  ;;  %v2910_v29 = vpop.f32.mrf.mxu1  ;;  %v3122_v22 = vadd.f32 %v3121_v53, %v3079_v33  ;;  %v8569_v20 = vadd.f32 %v2903_v61, %v2626_v15  ;;  %v2908_v27 = vadd.f32 %v2907_v25, %v2863_v55  ;;  %v3057_v5 = vadd.f32 %v3056_v8, %v8541_v45  ;;  %v9359_v25 = vld [vmem:[#allocation13_spill] sm:$0xff]  ;;  %v9362_v53 = vld [vmem:[#allocation8_spill] sm:$0xff]  ;;  %v9363_v63 = vld [vmem:[#allocation38_spill] sm:$0xff] }
 0x51f   :  { %v3039_v14 = vadd.f32 %v3038_v3, %v8534_v10  ;;  %v3105_v4 = vadd.f32 %v3104_v36, %v3082_v60  ;;  %v8572_v21 = vadd.f32 %v2986_v43, %v2623_v6  ;;  %v3086_v17 = vmul.f32 %v8555_v41, %v8555_v41  ;;  %v9361_v6 = vld [vmem:[#allocation7_spill] sm:$0xff]  ;;  %v9364_v43 = vld [vmem:[#allocation12_spill] sm:$0xff] }
 0x520   :  { %v3123_v32 = vadd.f32 %v3122_v22, %v3081_v11  ;;  %v8578_v9 = vadd.f32 %v2906_v38, %v8415_v56  ;;  %v2911_v46 = vadd.f32 %v2910_v29, %v2866_v58  ;;  %v3083_v7 = vmul.f32 %v8562_v44, %v8562_v44 }
 0x521   :  { %v3040_v59 = vadd.f32 %v3039_v14, %v8547_v23  ;;  %v3106_v15 = vadd.f32 %v3105_v4, %v3084_v52  ;;  %v8583_v55 = vadd.f32 %v2989_v50, %v9359_v25  ;;  %v2991_v28 = vadd.f32 %v9361_v6, %v9360_v49 }
 0x522   :  { %v3088_v54 = vmul.f32 %v8569_v20, %v8569_v20  ;;  %v8590_v2 = vadd.f32 %v2908_v27, %v2630_v51  ;;  %v3058_v29 = vadd.f32 %v3057_v5, %v8562_v44  ;;  %v3085_v24 = vmul.f32 %v8572_v21, %v8572_v21  ;;  %v9365_v5 = vld [vmem:[#allocation14_spill] sm:$0xff] }
 0x523   :  { %v3041_v13 = vadd.f32 %v3040_v59, %v8555_v41  ;;  %v3107_v48 = vadd.f32 %v3106_v15, %v3086_v17  ;;  %v2994_v33 = vadd.f32 %v9363_v63, %v9362_v53  ;;  %v3090_v51 = vmul.f32 %v8578_v9, %v8578_v9 }
 0x524   :  { %v3124_v8 = vadd.f32 %v3123_v32, %v3083_v7  ;;  %v3087_v3 = vmul.f32 %v8583_v55, %v8583_v55  ;;  %v8606_v11 = vadd.f32 %v2991_v28, %v8515_v37  ;;  %v2996_v38 = vadd.f32 %v8505_v42, %v8503_v35  ;;  %v9366_v35 = vld [vmem:[#allocation16_spill] sm:$0xff] }
 0x525   :  { %v2954_v31 = vpop.f32.mrf.mxu2  ;;  %v2998_v39 = vpop.f32.mrf.mxu3  ;;  %v3042_v60 = vadd.f32 %v3041_v13, %v8569_v20  ;;  %v3108_v36 = vadd.f32 %v3107_v48, %v3088_v54  ;;  %v3092_v50 = vmul.f32 %v8590_v2, %v8590_v2  ;;  %v3059_v14 = vadd.f32 %v3058_v29, %v8572_v21 }
 0x526   :  { %v2868_v26 = vpop.f32.mrf.mxu0  ;;  %v2912_v0 = vpop.f32.mrf.mxu1  ;;  %v3125_v27 = vadd.f32 %v3124_v8, %v3085_v24  ;;  %v8618_v4 = vadd.f32 %v2994_v33, %v9365_v5  ;;  %v2999_v37 = vadd.f32 %v2998_v39, %v2954_v31  ;;  %v8630_v7 = vadd.f32 %v2996_v38, %v8522_v30  ;;  %v9369_v8 = vld [vmem:[#allocation6_spill] sm:$0xff] }
 0x527   :  { %v2913_v56 = vadd.f32 %v2912_v0, %v2868_v26  ;;  %v8601_v26 = vadd.f32 %v2911_v46, %v9364_v43  ;;  %v3043_v52 = vadd.f32 %v3042_v60, %v8578_v9  ;;  %v3109_v17 = vadd.f32 %v3108_v36, %v3090_v51  ;;  %v9368_v60 = vld [vmem:[#allocation18_spill] sm:$0xff] }
 0x528   :  { %v3060_v46 = vadd.f32 %v3059_v14, %v8583_v55  ;;  %v3126_v25 = vadd.f32 %v3125_v27, %v3087_v3  ;;  %v3091_v54 = vmul.f32 %v8618_v4, %v8618_v4 }
 0x529   :  { %v8614_v22 = vadd.f32 %v2913_v56, %v8529_v62  ;;  %v3044_v32 = vadd.f32 %v3043_v52, %v8590_v2  ;;  %v3094_v42 = vmul.f32 %v8601_v26, %v8601_v26  ;;  %v3089_v62 = vmul.f32 %v8606_v11, %v8606_v11  ;;  %v9367_v56 = vld [vmem:[#allocation17_spill] sm:$0xff] }
 0x52a   :  { %v3110_v31 = vadd.f32 %v3109_v17, %v3092_v50  ;;  %v3061_v13 = vadd.f32 %v3060_v46, %v8606_v11  ;;  %v8639_v29 = vadd.f32 %v2999_v37, %v9367_v56  ;;  %v9370_v50 = vld [vmem:[#allocation4_spill] sm:$0xff]  ;;  %v9371_v56 = vld [vmem:[#allocation3_spill] sm:$0xff] }
 0x52b   :  { %v3045_v39 = vadd.f32 %v3044_v32, %v8601_v26  ;;  %v3096_v49 = vmul.f32 %v8614_v22, %v8614_v22  ;;  %v3127_v33 = vadd.f32 %v3126_v25, %v3089_v62 }
 0x52c   :  { %v3095_v52 = vmul.f32 %v8639_v29, %v8639_v29 }
 0x52d   :  { %v2956_v16 = vpop.f32.mrf.mxu2  ;;  %v3000_v58 = vpop.f32.mrf.mxu3  ;;  %v3046_v48 = vadd.f32 %v3045_v39, %v8614_v22  ;;  %v3128_v38 = vadd.f32 %v3127_v33, %v3091_v54 }
 0x52e   :  { %v2871_v61 = vpop.f32.mrf.mxu0  ;;  %v2915_v40 = vpop.f32.mrf.mxu1  ;;  %v3001_v15 = vadd.f32 %v3000_v58, %v2956_v16  ;;  %v3111_v58 = vadd.f32 %v3110_v31, %v3094_v42 }
 0x52f   :  { %v2916_v0 = vadd.f32 %v2915_v40, %v2871_v61  ;;  %v3062_v61 = vadd.f32 %v3061_v13, %v8618_v4  ;;  %v3093_v40 = vmul.f32 %v8630_v7, %v8630_v7 }
 0x530   :  { %v8648_v51 = vadd.f32 %v3001_v15, %v9368_v60  ;;  %v3112_v43 = vadd.f32 %v3111_v58, %v3096_v49 }
 0x531   :  { %v8624_v59 = vadd.f32 %v2916_v0, %v9366_v35  ;;  %v3063_v36 = vadd.f32 %v3062_v61, %v8630_v7  ;;  %v3129_v17 = vadd.f32 %v3128_v38, %v3093_v40 }
 0x532   :  { %v3097_v42 = vmul.f32 %v8648_v51, %v8648_v51 }
 0x533   :  { %v3098_v53 = vmul.f32 %v8624_v59, %v8624_v59  ;;  %v3047_v0 = vadd.f32 %v3046_v48, %v8624_v59  ;;  %v3064_v32 = vadd.f32 %v3063_v36, %v8639_v29  ;;  %v3130_v25 = vadd.f32 %v3129_v17, %v3095_v52 }
 0x535   :  { %v2959_v6 = vpop.f32.mrf.mxu2  ;;  %v3003_v28 = vpop.f32.mrf.mxu3  ;;  %v3113_v27 = vadd.f32 %v3112_v43, %v3098_v53  ;;  %v3065_v31 = vadd.f32 %v3064_v32, %v8648_v51  ;;  %v3131_v13 = vadd.f32 %v3130_v25, %v3097_v42 }
 0x536   :  { %v3004_v30 = vadd.f32 %v3003_v28, %v2959_v6  ;;  %v2873_v24 = vpop.f32.mrf.mxu0  ;;  %v2917_v16 = vpop.f32.mrf.mxu1 }
 0x537   :  { %v2918_v63 = vadd.f32 %v2917_v16, %v2873_v24 }
 0x538   :  { %v8658_v14 = vadd.f32 %v3004_v30, %v9370_v50 }
 0x539   :  { %v8652_v3 = vadd.f32 %v2918_v63, %v9369_v8 }
 0x53a   :  { %v3099_v39 = vmul.f32 %v8658_v14, %v8658_v14  ;;  %v3066_v54 = vadd.f32 %v3065_v31, %v8658_v14 }
 0x53b   :  { %v3048_v5 = vadd.f32 %v3047_v0, %v8652_v3  ;;  %v3100_v37 = vmul.f32 %v8652_v3, %v8652_v3 }
 0x53c   :  { %v3132_v58 = vadd.f32 %v3131_v13, %v3099_v39 }
 0x53d   :  { %v3049_v35 = vrot.slane %v3048_v5, 4  ;;  %v3114_v46 = vadd.f32 %v3113_v27, %v3100_v37  ;;  %v2961_v62 = vpop.f32.mrf.mxu2  ;;  %v3005_v15 = vpop.f32.mrf.mxu3 }
 0x53e   :  { %v3006_v49 = vadd.f32 %v3005_v15, %v2961_v62  ;;  %v6047_v15 = vmov 784.0  }
 0x53f   :  { %v3050_v6 = vadd.f32 %v3049_v35, %v3048_v5  ;;  %v3115_v28 = vrot.slane %v3114_v46, 4  ;;  %6030 = vrcp.f32 %v6047_v15 }
 0x540   :  { %v8671_v30 = vadd.f32 %v3006_v49, %v9371_v56 }
 0x541   :  { %v3051_v24 = vrot.slane %v3050_v6, 2  ;;  %v3116_v16 = vadd.f32 %v3115_v28, %v3114_v46 }
 0x542   :  { %v3067_v48 = vadd.f32 %v3066_v54, %v8671_v30  ;;  %v3101_v53 = vmul.f32 %v8671_v30, %v8671_v30 }
 0x543   :  { %v3052_v63 = vadd.f32 %v3051_v24, %v3050_v6  ;;  %v3117_v33 = vrot.slane %v3116_v16, 2 }
 0x544   :  { %v3068_v61 = vrot.slane %v3067_v48, 4  ;;  %v3133_v40 = vadd.f32 %v3132_v58, %v3101_v53 }
 0x545   :  { %v3053_v60 = vrot.slane %v3052_v63, 1  ;;  %v3118_v43 = vadd.f32 %v3117_v33, %v3116_v16  ;;  %v6031_v25 = vpop.eup %6030 }
 0x546   :  { %v3134_v0 = vrot.slane %v3133_v40, 4  ;;  %v3069_v36 = vadd.f32 %v3068_v61, %v3067_v48  ;;  %v3189_v49 = vmul.f32 784.0, %v6031_v25  ;;  %vm3193_vm15 = vweird.f32 %v6031_v25 }
 0x547   :  { %v3054_v8 = vadd.f32 %v3053_v60, %v3052_v63  ;;  %v3119_v38 = vrot.slane %v3118_v43, 1 }
 0x548   :  { %v3135_v50 = vadd.f32 %v3134_v0, %v3133_v40  ;;  %v3070_v27 = vrot.slane %v3069_v36, 2  ;;  %v3190_v54 = vsub.f32 1.0, %v3189_v49  ;;  %v5907_v49 = vld [vmem:[%s9198_s4 + $0x30] sm:$0xff] }
 0x549   :  { %3146 = vrot.lane.b32.xlu0 %v3054_v8, %s6038_s0  ;;  %3142 = vrot.lane.b32.xlu2 %v3054_v8, %s6043_s21  ;;  %v3120_v52 = vadd.f32 %v3119_v38, %v3118_v43 }
 0x54a   :  { %v3136_v5 = vrot.slane %v3135_v50, 2  ;;  %v3071_v37 = vadd.f32 %v3070_v27, %v3069_v36  ;;  %v3191_v58 = vmul.f32 %v6031_v25, %v3190_v54  ;;  %v5906_v54 = vld [vmem:[%s9198_s4 + $0x28] sm:$0xff] }
 0x54b   :  { %3166 = vrot.lane.b32.xlu1 %v3120_v52, %s6043_s21 }
 0x54c   :  { %v3137_v17 = vadd.f32 %v3136_v5, %v3135_v50  ;;  %v3072_v32 = vrot.slane %v3071_v37, 1  ;;  %v3192_v61 = vadd.f32 %v6031_v25, %v3191_v58  ;;  %v5921_v58 = vld [vmem:[%s9198_s4 + $0xa0] sm:$0xff] }
 0x54e   :  { %v3138_v42 = vrot.slane %v3137_v17, 1  ;;  %v3073_v35 = vadd.f32 %v3072_v32, %v3071_v37  ;;  %v3194_v43 = vsel %vm3193_vm15, %v6031_v25, %v3192_v61  ;;  %v5916_v25 = vld [vmem:[%s9198_s4 + $0x78] sm:$0xff] }
 0x54f   :  { %3720 = vmatpush.bf16.msra.mxu3 %v5916_v25  ;;  %v5910_v25 = vld [vmem:[%s9198_s4 + $0x48] sm:$0xff] }
 0x550   :  { %v3139_v46 = vadd.f32 %v3138_v42, %v3137_v17 }
 0x551   :  { %3170 = vrot.lane.b32.xlu0 %v3120_v52, %s6038_s0  ;;  %3150 = vrot.lane.b32.xlu2 %v3054_v8, %s6044_s22 }
 0x553   :  { %3174 = vrot.lane.b32.xlu1 %v3120_v52, %s6044_s22 }
 0x559   :  { %3160 = vrot.lane.b32.xlu0 %v3073_v35, %s6038_s0  ;;  %3156 = vrot.lane.b32.xlu2 %v3073_v35, %s6043_s21 }
 0x55b   :  { %3180 = vrot.lane.b32.xlu1 %v3139_v46, %s6043_s21 }
 0x561   :  { %3184 = vrot.lane.b32.xlu2 %v3139_v46, %s6038_s0 }
 0x5a3   :  { %v3143_v62 = vpop.permute.xlu2 %3142 }
 0x5a4   :  { %v3145_v6 = vadd.f32 %v3143_v62, %v3054_v8  ;;  %v5932_v62 = vld [vmem:[%s9198_s4 + $0xf8] sm:$0xff] }
 0x5a5   :  { %3586 = vmatpush.bf16.msra.mxu1 %v5932_v62  ;;  %v5918_v62 = vld [vmem:[%s9198_s4 + $0x88] sm:$0xff] }
 0x5ab   :  { %v3151_v31 = vpop.permute.xlu2 %3150 }
 0x5b3   :  { %v3157_v53 = vpop.permute.xlu2 %3156 }
 0x5bb   :  { %v3147_v39 = vpop.permute.xlu0 %3146  ;;  %v3185_v5 = vpop.permute.xlu2 %3184 }
 0x5bc   :  { %v3149_v13 = vadd.f32 %v3147_v39, %v3145_v6  ;;  %v5931_v39 = vld [vmem:[%s9198_s4 + $0xf0] sm:$0xff] }
 0x5bd   :  { %v3167_v28 = vpop.permute.xlu1 %3166  ;;  %v5915_v6 = vld [vmem:[%s9198_s4 + $0x70] sm:$0xff]  ;;  %3587 = vmatpush.bf16.msra.mxu1 %v5931_v39  ;;  %v5925_v39 = vld [vmem:[%s9198_s4 + $0xc0] sm:$0xff] }
 0x5be   :  { %v3153_v56 = vadd.f32 %v3151_v31, %v3149_v13  ;;  %v3169_v24 = vadd.f32 %v3167_v28, %v3120_v52  ;;  %v5923_v31 = vld [vmem:[%s9198_s4 + $0xb0] sm:$0xff]  ;;  %v5922_v28 = vld [vmem:[%s9198_s4 + $0xa8] sm:$0xff]  ;;  %3721 = vmatpush.bf16.msra.mxu3 %v5915_v6  ;;  %v5909_v6 = vld [vmem:[%s9198_s4 + $0x40] sm:$0xff] }
 0x5bf   :  { %v5930_v13 = vld [vmem:[%s9198_s4 + $0xe8] sm:$0xff] }
 0x5c0   :  { %v3154_v33 = vadd.f32 %v3153_v56, %v3073_v35  ;;  %v5924_v35 = vld [vmem:[%s9198_s4 + $0xb8] sm:$0xff]  ;;  %v5914_v56 = vld [vmem:[%s9198_s4 + $0x68] sm:$0xff] }
 0x5c1   :  { %3572 = vmatpush.bf16.msra.mxu0 %v5924_v35  ;;  %3588 = vmatpush.bf16.msra.mxu1 %v5930_v13  ;;  %v5911_v35 = vld [vmem:[%s9198_s4 + $0x50] sm:$0xff]  ;;  %v5948_v13 = vld [vmem:[%s9198_s4 + $0x178] sm:$0xff] }
 0x5c2   :  { %v3159_v60 = vadd.f32 %v3157_v53, %v3154_v33  ;;  %3722 = vmatpush.bf16.msra.mxu3 %v5914_v56  ;;  %v5905_v53 = vld [vmem:[%s9198_s4 + $0x20] sm:$0xff]  ;;  %v5964_v56 = vld [vmem:[%s9198_s4 + $0x1f8] sm:$0xff] }
 0x5c3   :  { %v3171_v16 = vpop.permute.xlu0 %3170 }
 0x5c4   :  { %v3173_v48 = vadd.f32 %v3171_v16, %v3169_v24 }
 0x5c5   :  { %v3175_v63 = vpop.permute.xlu1 %3174  ;;  %3573 = vmatpush.bf16.msra.mxu0 %v5923_v31  ;;  %v5917_v31 = vld [vmem:[%s9198_s4 + $0x80] sm:$0xff] }
 0x5c6   :  { %v3177_v40 = vadd.f32 %v3175_v63, %v3173_v48  ;;  %v5929_v48 = vld [vmem:[%s9198_s4 + $0xe0] sm:$0xff] }
 0x5c7   :  { %v5913_v63 = vld [vmem:[%s9198_s4 + $0x60] sm:$0xff]  ;;  %3589 = vmatpush.bf16.msra.mxu1 %v5929_v48  ;;  %v5963_v48 = vld [vmem:[%s9198_s4 + $0x1f0] sm:$0xff] }
 0x5c8   :  { %v3178_v36 = vadd.f32 %v3177_v40, %v3139_v46  ;;  %v5908_v46 = vld [vmem:[%s9198_s4 + $0x38] sm:$0xff]  ;;  %3723 = vmatpush.bf16.msra.mxu3 %v5913_v63  ;;  %v5946_v63 = vld [vmem:[%s9198_s4 + $0x168] sm:$0xff] }
 0x5c9   :  { %3706 = vmatpush.bf16.msra.mxu2 %v5908_v46  ;;  %3574 = vmatpush.bf16.msra.mxu0 %v5922_v28  ;;  %v5926_v46 = vld [vmem:[%s9198_s4 + $0xc8] sm:$0xff]  ;;  %v5940_v28 = vld [vmem:[%s9198_s4 + $0x138] sm:$0xff] }
 0x5cb   :  { %v3161_v0 = vpop.permute.xlu0 %3160 }
 0x5cc   :  { %v3163_v38 = vadd.f32 %v3161_v0, %v3159_v60 }
 0x5cd   :  { %v3181_v8 = vpop.permute.xlu1 %3180  ;;  %3707 = vmatpush.bf16.msra.mxu2 %v5907_v49  ;;  %3575 = vmatpush.bf16.msra.mxu0 %v5921_v58  ;;  %v5901_v49 = vld [vmem:[%s9198_s4] sm:$0xff]  ;;  %v5955_v58 = vld [vmem:[%s9198_s4 + $0x1b0] sm:$0xff] }
 0x5ce   :  { %v3195_v50 = vmul.f32 %v3194_v43, %v3163_v38  ;;  %v3183_v27 = vadd.f32 %v3181_v8, %v3178_v36  ;;  %v3213_v8 = vld [vmem:[%s9199_s6 + $0x1] sm:$0x1] }
 0x5d0   :  { %v3187_v37 = vadd.f32 %v3185_v5, %v3183_v27  ;;  %v3197_v52 = vmul.f32 %v3195_v50, %v3195_v50  ;;  %v5920_v5 = vld [vmem:[%s9198_s4 + $0x98] sm:$0xff] }
 0x5d1   :  { %3708 = vmatpush.bf16.msra.mxu2 %v5906_v54  ;;  %3576 = vmatpush.bf16.msra.mxu0 %v5920_v5  ;;  %v5956_v54 = vld [vmem:[%s9198_s4 + $0x1b8] sm:$0xff] }
 0x5d2   :  { %v3196_v17 = vmul.f32 %v3194_v43, %v3187_v37  ;;  %v3211_v43 = vld [vmem:[%s9199_s6] sm:$0x1]  ;;  %v5904_v37 = vld [vmem:[%s9198_s4 + $0x18] sm:$0xff] }
 0x5d3   :  { %v5952_v5 = vld [vmem:[%s9198_s4 + $0x198] sm:$0xff] }
 0x5d4   :  { %v3198_v32 = vsub.f32 %v3196_v17, %v3197_v52  ;;  %v5912_v52 = vld [vmem:[%s9198_s4 + $0x58] sm:$0xff]  ;;  %v5919_v17 = vld [vmem:[%s9198_s4 + $0x90] sm:$0xff] }
 0x5d5   :  { %3709 = vmatpush.bf16.msra.mxu2 %v5905_v53  ;;  %3724 = vmatpush.bf16.msra.mxu3 %v5912_v52  ;;  %v5938_v53 = vld [vmem:[%s9198_s4 + $0x128] sm:$0xff]  ;;  %v5943_v52 = vld [vmem:[%s9198_s4 + $0x150] sm:$0xff] }
 0x5d6   :  { %v3199_v42 = vmax.f32 %v3198_v32, 0.0  ;;  %v5927_v32 = vld [vmem:[%s9198_s4 + $0xd0] sm:$0xff]  ;;  %3577 = vmatpush.bf16.msra.mxu0 %v5919_v17 }
 0x5d7   :  { %v5951_v17 = vld [vmem:[%s9198_s4 + $0x190] sm:$0xff] }
 0x5d8   :  { %v3200_v15 = vadd.f32 1e-05, %v3199_v42  ;;  %v5903_v42 = vld [vmem:[%s9198_s4 + $0x10] sm:$0xff] }
 0x5d9   :  { %3710 = vmatpush.bf16.msra.mxu2 %v5904_v37  ;;  %3725 = vmatpush.bf16.msra.mxu3 %v5911_v35  ;;  %v5935_v37 = vld [vmem:[%s9198_s4 + $0x110] sm:$0xff]  ;;  %v5942_v35 = vld [vmem:[%s9198_s4 + $0x148] sm:$0xff] }
 0x5da   :  { %6032 = vrsqrt.f32 %v3200_v15  ;;  %vm3207_vm1 = vweird.f32 %v3200_v15  ;;  %3578 = vmatpush.bf16.msra.mxu0 %v5918_v62  ;;  %v5950_v62 = vld [vmem:[%s9198_s4 + $0x188] sm:$0xff] }
 0x5dd   :  { %3711 = vmatpush.bf16.msra.mxu2 %v5903_v42  ;;  %3726 = vmatpush.bf16.msra.mxu3 %v5910_v25  ;;  %v5934_v42 = vld [vmem:[%s9198_s4 + $0x108] sm:$0xff]  ;;  %v5941_v25 = vld [vmem:[%s9198_s4 + $0x140] sm:$0xff] }
 0x5de   :  { %3579 = vmatpush.bf16.msra.mxu0 %v5917_v31  ;;  %v5949_v31 = vld [vmem:[%s9198_s4 + $0x180] sm:$0xff] }
 0x5e0   :  { %v6033_v24 = vpop.eup %6032 }
 0x5e1   :  { %v3202_v16 = vmul.f32 %v6033_v24, %v3200_v15  ;;  %vm3208_vm0 = vweird.f32 %v6033_v24  ;;  %v5902_v15 = vld [vmem:[%s9198_s4 + $0x8] sm:$0xff]  ;;  %3727 = vmatpush.bf16.msra.mxu3 %v5909_v6 }
 0x5e2   :  { %vm3209_vm2 = vmor %vm3207_vm1, %vm3208_vm0  ;;  %3712 = vmatpush.bf16.msra.mxu2 %v5902_v15  ;;  %3872 = vmatpush.bf16.msrb.mxu0 %v5940_v28  ;;  %v5933_v15 = vld [vmem:[%s9198_s4 + $0x100] sm:$0xff] }
 0x5e3   :  { %v3203_v33 = vmul.f32 %v6033_v24, %v3202_v16  ;;  %v5947_v16 = vld [vmem:[%s9198_s4 + $0x170] sm:$0xff] }
 0x5e5   :  { %v3204_v61 = vmul.f32 0.5, %v3203_v33  ;;  %4054 = vmatpush.bf16.msrb.mxu3 %v5964_v56  ;;  %v5954_v33 = vld [vmem:[%s9198_s4 + $0x1a8] sm:$0xff] }
 0x5e6   :  { %3713 = vmatpush.bf16.msra.mxu2 %v5901_v49 }
 0x5e7   :  { %v3205_v40 = vsub.f32 1.5, %v3204_v61  ;;  %v5962_v61 = vld [vmem:[%s9198_s4 + $0x1e8] sm:$0xff] }
 0x5e9   :  { %v3206_v60 = vmul.f32 %v6033_v24, %v3205_v40  ;;  %4055 = vmatpush.bf16.msrb.mxu3 %v5963_v48  ;;  %v5937_v40 = vld [vmem:[%s9198_s4 + $0x120] sm:$0xff] }
 0x5ea   :  { %4040 = vmatpush.bf16.msrb.mxu2 %v5956_v54 }
 0x5eb   :  { %v3210_v0 = vsel %vm3209_vm2, %v6033_v24, %v3206_v60  ;;  %v5939_v24 = vld [vmem:[%s9198_s4 + $0x130] sm:$0xff]  ;;  %v5945_v60 = vld [vmem:[%s9198_s4 + $0x160] sm:$0xff] }
 0x5ec   :  { %v8737_v38 = vmul.f32 %v3211_v43, %v3210_v0  ;;  %3873 = vmatpush.bf16.msrb.mxu0 %v5939_v24  ;;  %v5953_v43 = vld [vmem:[%s9198_s4 + $0x1a0] sm:$0xff] }
 0x5ed   :  { %4056 = vmatpush.bf16.msrb.mxu3 %v5962_v61  ;;  %v5961_v0 = vld [vmem:[%s9198_s4 + $0x1e0] sm:$0xff] }
 0x5ee   :  { %3223 = vrot.lane.b32.xlu2 %v8737_v38, %s6043_s21  ;;  %3220 = vrot.lane.b32.xlu1 %v8737_v38, %s6038_s0  ;;  %v3214_v36 = vmul.f32 %v8737_v38, %v3195_v50  ;;  %v5928_v50 = vld [vmem:[%s9198_s4 + $0xd8] sm:$0xff] }
 0x5ef   :  { %3217 = vrot.lane.b32.xlu0 %v8737_v38, %s6044_s22  ;;  %3590 = vmatpush.bf16.msra.mxu1 %v5928_v50  ;;  %v5960_v50 = vld [vmem:[%s9198_s4 + $0x1d8] sm:$0xff] }
 0x5f0   :  { %v8749_v27 = vsub.f32 %v3213_v8, %v3214_v36  ;;  %4041 = vmatpush.bf16.msrb.mxu2 %v5955_v58  ;;  %3874 = vmatpush.bf16.msrb.mxu0 %v5938_v53  ;;  %v5936_v36 = vld [vmem:[%s9198_s4 + $0x118] sm:$0xff] }
 0x5f1   :  { %v5944_v8 = vld [vmem:[%s9198_s4 + $0x158] sm:$0xff]  ;;  %4057 = vmatpush.bf16.msrb.mxu3 %v5961_v0 }
 0x5f3   :  { %3591 = vmatpush.bf16.msra.mxu1 %v5927_v32  ;;  %v5959_v32 = vld [vmem:[%s9198_s4 + $0x1d0] sm:$0xff] }
 0x5f4   :  { %4042 = vmatpush.bf16.msrb.mxu2 %v5954_v33  ;;  %3875 = vmatpush.bf16.msrb.mxu0 %v5937_v40 }
 0x5f5   :  { %4058 = vmatpush.bf16.msrb.mxu3 %v5960_v50 }
 0x5f6   :  { %3237 = vrot.lane.b32.xlu2 %v8749_v27, %s6043_s21  ;;  %3234 = vrot.lane.b32.xlu1 %v8749_v27, %s6038_s0 }
 0x5f7   :  { %3231 = vrot.lane.b32.xlu0 %v8749_v27, %s6044_s22  ;;  %3592 = vmatpush.bf16.msra.mxu1 %v5926_v46  ;;  %v5958_v46 = vld [vmem:[%s9198_s4 + $0x1c8] sm:$0xff] }
 0x5f8   :  { %4043 = vmatpush.bf16.msrb.mxu2 %v5953_v43  ;;  %3876 = vmatpush.bf16.msrb.mxu0 %v5936_v36 }
 0x5f9   :  { %4059 = vmatpush.bf16.msrb.mxu3 %v5959_v32 }
 0x5fb   :  { %3593 = vmatpush.bf16.msra.mxu1 %v5925_v39  ;;  %v5957_v39 = vld [vmem:[%s9198_s4 + $0x1c0] sm:$0xff] }
 0x5fc   :  { %4044 = vmatpush.bf16.msrb.mxu2 %v5952_v5  ;;  %3877 = vmatpush.bf16.msrb.mxu0 %v5935_v37 }
 0x5fd   :  { %4060 = vmatpush.bf16.msrb.mxu3 %v5958_v46 }
 0x5ff   :  { %3886 = vmatpush.bf16.msrb.mxu1 %v5948_v13 }
 0x600   :  { %4045 = vmatpush.bf16.msrb.mxu2 %v5951_v17  ;;  %3878 = vmatpush.bf16.msrb.mxu0 %v5934_v42 }
 0x601   :  { %4061 = vmatpush.bf16.msrb.mxu3 %v5957_v39 }
 0x603   :  { %3887 = vmatpush.bf16.msrb.mxu1 %v5947_v16 }
 0x604   :  { %4046 = vmatpush.bf16.msrb.mxu2 %v5950_v62  ;;  %3879 = vmatpush.bf16.msrb.mxu0 %v5933_v15 }
 0x607   :  { %3888 = vmatpush.bf16.msrb.mxu1 %v5946_v63 }
 0x608   :  { %4047 = vmatpush.bf16.msrb.mxu2 %v5949_v31 }
 0x60b   :  { %3889 = vmatpush.bf16.msrb.mxu1 %v5945_v60 }
 0x60f   :  { %3890 = vmatpush.bf16.msrb.mxu1 %v5944_v8 }
 0x613   :  { %3891 = vmatpush.bf16.msrb.mxu1 %v5943_v52 }
 0x617   :  { %3892 = vmatpush.bf16.msrb.mxu1 %v5942_v35 }
 0x61b   :  { %3893 = vmatpush.bf16.msrb.mxu1 %v5941_v25 }
 0x648   :  { %v3224_v6 = vpop.permute.xlu2 %3223 }
 0x650   :  { %v3238_v43 = vpop.permute.xlu2 %3237 }
 0x660   :  { %v3221_v49 = vpop.permute.xlu1 %3220 }
 0x661   :  { %v3218_v28 = vpop.permute.xlu0 %3217 }
 0x662   :  { %v3226_v13 = vsel %vm1013_vm5, %v8737_v38, %v3218_v28 }
 0x663   :  { %v3227_v54 = vsel %vm1017_vm7, %v3226_v13, %v3221_v49 }
 0x664   :  { %v3228_v56 = vsel %vm1021_vm9, %v3227_v54, %v3224_v6  ;;  %v3229_v24 = vsel %vm1021_vm9, %v3227_v54, 0.0 }
 0x665   :  { %v8906_v16 = vperm.slane %v3228_v56, 0  ;;  %v8908_v58 = vperm.slane %v3229_v24, 0 }
 0x667   :  { %v3250_v63 = vmul.f32 %v8906_v16, %v8474_v34  ;;  %v3251_v33 = vmul.f32 %v8908_v58, %v8477_v19  ;;  %v3252_v61 = vmul.f32 %v8906_v16, %v8518_v1  ;;  %v3253_v40 = vmul.f32 %v8908_v58, %v8541_v45 }
 0x668   :  { %v3235_v48 = vpop.permute.xlu1 %3234  ;;  %v3246_v60 = vmul.f32 %v8906_v16, %v8462_v18  ;;  %v3247_v34 = vmul.f32 %v8908_v58, %v8465_v57  ;;  %v3248_v19 = vmul.f32 %v8906_v16, %v8468_v47  ;;  %v3254_v45 = vmul.f32 %v8906_v16, %v8534_v10 }
 0x669   :  { %v3232_v53 = vpop.permute.xlu0 %3231  ;;  %v3255_v18 = vmul.f32 %v8908_v58, %v8562_v44  ;;  %v3256_v57 = vmul.f32 %v8906_v16, %v8547_v23  ;;  %v3257_v47 = vmul.f32 %v8908_v58, %v8572_v21  ;;  %v8949_v10 = vmul.f32 %v8908_v58, %v8583_v55 }
 0x66a   :  { %v3240_v38 = vsel %vm1013_vm5, %v8749_v27, %v3232_v53  ;;  %v3249_v27 = vmul.f32 %v8908_v58, %v8471_v12  ;;  %v8945_v12 = vmul.f32 %v8906_v16, %v8555_v41  ;;  %v8953_v44 = vmul.f32 %v8906_v16, %v8569_v20 }
 0x66b   :  { %v3241_v0 = vsel %vm1017_vm7, %v3240_v38, %v3235_v48  ;;  %v8957_v50 = vmul.f32 %v8908_v58, %v8606_v11 }
 0x66c   :  { %v3242_v1 = vsel %vm1021_vm9, %v3241_v0, %v3238_v43  ;;  %v3243_v36 = vsel %vm1021_vm9, %v3241_v0, 0.0  ;;  %v5972_v0 = vld [vmem:[%s9198_s4 + $0x238] sm:$0xff] }
 0x66d   :  { %v8935_v8 = vperm.slane %v3242_v1, 0  ;;  %v8937_v5 = vperm.slane %v3243_v36, 0 }
 0x66f   :  { %v3280_v23 = vadd.f32 %v8935_v8, %v3250_v63  ;;  %v3281_v21 = vadd.f32 %v8937_v5, %v3251_v33  ;;  %v3282_v37 = vadd.f32 %v8935_v8, %v3252_v61  ;;  %v3283_v41 = vadd.f32 %v8937_v5, %v3253_v40 }
 0x670   :  { %v3276_v52 = vadd.f32 %v8935_v8, %v3246_v60  ;;  %v3277_v55 = vadd.f32 %v8937_v5, %v3247_v34  ;;  %v3278_v17 = vadd.f32 %v8935_v8, %v3248_v19  ;;  %v3279_v20 = vadd.f32 %v8937_v5, %v3249_v27  ;;  %v5980_v34 = vld [vmem:[%s9198_s4 + $0x278] sm:$0xff] }
 0x671   :  { %vm3308_vm5 = vcmp.ge.f32.partialorder %v3280_v23, 0.0  ;;  %vm3309_vm7 = vcmp.ge.f32.partialorder %v3281_v21, 0.0  ;;  %vm3310_vm9 = vcmp.ge.f32.partialorder %v3282_v37, 0.0  ;;  %vm3311_vm3 = vcmp.ge.f32.partialorder %v3283_v41, 0.0 }
 0x672   :  { %v3336_v11 = vmul.f32 0.01, %v3280_v23  ;;  %v3337_v32 = vmul.f32 0.01, %v3281_v21  ;;  %v3338_v42 = vmul.f32 0.01, %v3282_v37  ;;  %v3284_v35 = vadd.f32 %v8935_v8, %v3254_v45 }
 0x673   :  { %v3339_v62 = vmul.f32 0.01, %v3283_v41  ;;  %vm3304_vm4 = vcmp.ge.f32.partialorder %v3276_v52, 0.0  ;;  %vm3305_vm6 = vcmp.ge.f32.partialorder %v3277_v55, 0.0  ;;  %vm3306_vm8 = vcmp.ge.f32.partialorder %v3278_v17, 0.0 }
 0x674   :  { %v3364_v46 = vsel %vm3308_vm5, %v3280_v23, %v3336_v11  ;;  %v3365_v15 = vsel %vm3309_vm7, %v3281_v21, %v3337_v32  ;;  %v3366_v25 = vsel %vm3310_vm9, %v3282_v37, %v3338_v42  ;;  %vm3307_vm10 = vcmp.ge.f32.partialorder %v3279_v20, 0.0  ;;  %v5988_v37 = vld [vmem:[%s9198_s4 + $0x2b8] sm:$0xff] }
 0x675   :  { %v3367_v31 = vsel %vm3311_vm3, %v3283_v41, %v3339_v62  ;;  %v3390_v39 = vpack.c.bf16 %v3365_v15, %v3364_v46  ;;  %v3332_v49 = vmul.f32 0.01, %v3276_v52  ;;  %v3333_v6 = vmul.f32 0.01, %v3277_v55  ;;  %v5996_v41 = vld [vmem:[%s9198_s4 + $0x2f8] sm:$0xff] }
 0x676   :  { %v3391_v28 = vpack.c.bf16 %v3367_v31, %v3366_v25  ;;  %v3334_v13 = vmul.f32 0.01, %v3278_v17  ;;  %v3335_v54 = vmul.f32 0.01, %v3279_v20  ;;  %v3285_v56 = vadd.f32 %v8937_v5, %v3255_v18 }
 0x677   :  { %v3468_v24 = vunpack.c.l.b16 %v3390_v39  ;;  %v3469_v48 = vunpack.c.h.b16 %v3390_v39  ;;  %v3360_v53 = vsel %vm3304_vm4, %v3276_v52, %v3332_v49  ;;  %v3361_v63 = vsel %vm3305_vm6, %v3277_v55, %v3333_v6 }
 0x678   :  { %v3470_v33 = vunpack.c.l.b16 %v3391_v28  ;;  %v3471_v38 = vunpack.c.h.b16 %v3391_v28  ;;  %v3362_v61 = vsel %vm3306_vm8, %v3278_v17, %v3334_v13  ;;  %v3363_v40 = vsel %vm3307_vm10, %v3279_v20, %v3335_v54  ;;  %v5971_v17 = vld [vmem:[%s9198_s4 + $0x230] sm:$0xff]  ;;  %v5970_v28 = vld [vmem:[%s9198_s4 + $0x228] sm:$0xff] }
 0x679   :  { %v3388_v60 = vpack.c.bf16 %v3361_v63, %v3360_v53  ;;  %v3389_v43 = vpack.c.bf16 %v3363_v40, %v3362_v61  ;;  %v3286_v19 = vadd.f32 %v8935_v8, %v3256_v57  ;;  %v3287_v27 = vadd.f32 %v8937_v5, %v3257_v47  ;;  %v5979_v20 = vld [vmem:[%s9198_s4 + $0x270] sm:$0xff]  ;;  %v5978_v13 = vld [vmem:[%s9198_s4 + $0x268] sm:$0xff] }
 0x67a   :  { %v3472_v1 = vpack.c.b16 %v3470_v33, %v3468_v24  ;;  %v3473_v36 = vpack.c.b16 %v3471_v38, %v3469_v48  ;;  %vm3312_vm11 = vcmp.ge.f32.partialorder %v3284_v35, 0.0  ;;  %vm3313_vm12 = vcmp.ge.f32.partialorder %v3285_v56, 0.0  ;;  %v5986_v38 = vld [vmem:[%s9198_s4 + $0x2a8] sm:$0xff] }
 0x67b   :  { %v3602_v45 = vunpack.c.l.b16 %v3388_v60  ;;  %v3604_v18 = vunpack.c.l.b16 %v3389_v43  ;;  %v3603_v23 = vunpack.c.h.b16 %v3388_v60  ;;  %v3605_v21 = vunpack.c.h.b16 %v3389_v43  ;;  %v5994_v61 = vld [vmem:[%s9198_s4 + $0x2e8] sm:$0xff] }
 0x67c   :  { %3580 = vmatmul.bf16.vlgmr.msra.gmra.mxu0 %v3472_v1  ;;  %3594 = vmatmul.bf16.vlgmr.msra.gmra.mxu1 %v3473_v36  ;;  %vm3314_vm13 = vcmp.ge.f32.partialorder %v3286_v19, 0.0  ;;  %vm3315_vm14 = vcmp.ge.f32.partialorder %v3287_v27, 0.0  ;;  %v3340_v57 = vmul.f32 0.01, %v3284_v35  ;;  %v3341_v47 = vmul.f32 0.01, %v3285_v56 }
 0x67d   :  { %v3606_v52 = vpack.c.b16 %v3604_v18, %v3602_v45  ;;  %v3607_v55 = vpack.c.b16 %v3605_v21, %v3603_v23  ;;  %4208 = vmatpush.bf16.msra.mxu0 %v5972_v0  ;;  %4222 = vmatpush.bf16.msra.mxu1 %v5980_v34  ;;  %v3342_v11 = vmul.f32 0.01, %v3286_v19  ;;  %v3343_v32 = vmul.f32 0.01, %v3287_v27  ;;  %v5969_v0 = vld [vmem:[%s9198_s4 + $0x220] sm:$0xff] }
 0x67e   :  { %v3368_v42 = vsel %vm3312_vm11, %v3284_v35, %v3340_v57  ;;  %v3369_v62 = vsel %vm3313_vm12, %v3285_v56, %v3341_v47  ;;  %v3288_v46 = vadd.f32 %v8935_v8, %v8945_v12  ;;  %v3289_v15 = vadd.f32 %v8937_v5, %v8949_v10  ;;  %v5987_v35 = vld [vmem:[%s9198_s4 + $0x2b0] sm:$0xff]  ;;  %v5977_v34 = vld [vmem:[%s9198_s4 + $0x260] sm:$0xff] }
 0x67f   :  { %3714 = vmatmul.bf16.vlgmr.msra.gmra.mxu2 %v3606_v52  ;;  %3728 = vmatmul.bf16.vlgmr.msra.gmra.mxu3 %v3607_v55  ;;  %v3370_v25 = vsel %vm3314_vm13, %v3286_v19, %v3342_v11  ;;  %v3371_v31 = vsel %vm3315_vm14, %v3287_v27, %v3343_v32  ;;  %v3392_v39 = vpack.c.bf16 %v3369_v62, %v3368_v42  ;;  %v5995_v12 = vld [vmem:[%s9198_s4 + $0x2f0] sm:$0xff]  ;;  %v5968_v11 = vld [vmem:[%s9198_s4 + $0x218] sm:$0xff] }
 0x680   :  { %4376 = vmatpush.bf16.msra.mxu2 %v5988_v37  ;;  %4390 = vmatpush.bf16.msra.mxu3 %v5996_v41  ;;  %v3393_v49 = vpack.c.bf16 %v3371_v31, %v3370_v25  ;;  %v3290_v10 = vadd.f32 %v8935_v8, %v8953_v44  ;;  %v3291_v6 = vadd.f32 %v8937_v5, %v8957_v50  ;;  %vm3316_vm15 = vcmp.ge.f32.partialorder %v3288_v46, 0.0  ;;  %v5976_v32 = vld [vmem:[%s9198_s4 + $0x258] sm:$0xff] }
 0x681   :  { %4209 = vmatpush.bf16.msra.mxu0 %v5971_v17  ;;  %4223 = vmatpush.bf16.msra.mxu1 %v5979_v20  ;;  %v3768_v54 = vunpack.c.l.b16 %v3392_v39  ;;  %v3769_v56 = vunpack.c.h.b16 %v3392_v39  ;;  %vm3317_vm0 = vcmp.ge.f32.partialorder %v3289_v15, 0.0  ;;  %v3344_v24 = vmul.f32 0.01, %v3288_v46  ;;  %v5992_v25 = vld [vmem:[%s9198_s4 + $0x2d8] sm:$0xff] }
 0x682   :  { %v3770_v48 = vunpack.c.l.b16 %v3393_v49  ;;  %v3771_v44 = vunpack.c.h.b16 %v3393_v49  ;;  %vm3318_vm1 = vcmp.ge.f32.partialorder %v3290_v10, 0.0  ;;  %vm3319_vm2 = vcmp.ge.f32.partialorder %v3291_v6, 0.0 }
 0x683   :  { %v3345_v50 = vmul.f32 0.01, %v3289_v15  ;;  %v3346_v53 = vmul.f32 0.01, %v3290_v10  ;;  %v3347_v63 = vmul.f32 0.01, %v3291_v6  ;;  %v3372_v33 = vsel %vm3316_vm15, %v3288_v46, %v3344_v24 }
 0x684   :  { %4377 = vmatpush.bf16.msra.mxu2 %v5987_v35  ;;  %4391 = vmatpush.bf16.msra.mxu3 %v5995_v12  ;;  %v3772_v40 = vpack.c.b16 %v3770_v48, %v3768_v54  ;;  %v3773_v60 = vpack.c.b16 %v3771_v44, %v3769_v56  ;;  %v3262_v43 = vmul.f32 %v8906_v16, %v8578_v9  ;;  %v5983_v24 = vld [vmem:[%s9198_s4 + $0x290] sm:$0xff] }
 0x685   :  { %4210 = vmatpush.bf16.msra.mxu0 %v5970_v28  ;;  %4224 = vmatpush.bf16.msra.mxu1 %v5978_v13  ;;  %v3373_v19 = vsel %vm3317_vm0, %v3289_v15, %v3345_v50  ;;  %v3374_v27 = vsel %vm3318_vm1, %v3290_v10, %v3346_v53  ;;  %v3375_v1 = vsel %vm3319_vm2, %v3291_v6, %v3347_v63  ;;  %v5984_v15 = vld [vmem:[%s9198_s4 + $0x298] sm:$0xff]  ;;  %v5967_v6 = vld [vmem:[%s9198_s4 + $0x210] sm:$0xff]  ;;  %v5966_v53 = vld [vmem:[%s9198_s4 + $0x208] sm:$0xff] }
 0x686   :  { %v3394_v36 = vpack.c.bf16 %v3373_v19, %v3372_v33  ;;  %v3395_v45 = vpack.c.bf16 %v3375_v1, %v3374_v27  ;;  %v3263_v9 = vmul.f32 %v8908_v58, %v8618_v4  ;;  %v3264_v18 = vmul.f32 %v8906_v16, %v8590_v2  ;;  %v5985_v4 = vld [vmem:[%s9198_s4 + $0x2a0] sm:$0xff]  ;;  %v5975_v28 = vld [vmem:[%s9198_s4 + $0x250] sm:$0xff]  ;;  %v5974_v63 = vld [vmem:[%s9198_s4 + $0x248] sm:$0xff] }
 0x687   :  { %v3265_v23 = vmul.f32 %v8908_v58, %v8630_v7  ;;  %v3292_v21 = vadd.f32 %v8935_v8, %v3262_v43  ;;  %v3266_v37 = vmul.f32 %v8906_v16, %v8601_v26  ;;  %v3267_v41 = vmul.f32 %v8908_v58, %v8639_v29  ;;  %v5993_v2 = vld [vmem:[%s9198_s4 + $0x2e0] sm:$0xff]  ;;  %v5991_v48 = vld [vmem:[%s9198_s4 + $0x2d0] sm:$0xff]  ;;  %v5982_v43 = vld [vmem:[%s9198_s4 + $0x288] sm:$0xff] }
 0x688   :  { %4378 = vmatpush.bf16.msra.mxu2 %v5986_v38  ;;  %4392 = vmatpush.bf16.msra.mxu3 %v5994_v61  ;;  %v3936_v57 = vunpack.c.l.b16 %v3394_v36  ;;  %v3938_v7 = vunpack.c.l.b16 %v3395_v45  ;;  %v3937_v47 = vunpack.c.h.b16 %v3394_v36  ;;  %v3939_v52 = vunpack.c.h.b16 %v3395_v45 }
 0x689   :  { %4211 = vmatpush.bf16.msra.mxu0 %v5969_v0  ;;  %4225 = vmatpush.bf16.msra.mxu1 %v5977_v34  ;;  %v3293_v26 = vadd.f32 %v8937_v5, %v3263_v9  ;;  %v3294_v29 = vadd.f32 %v8935_v8, %v3264_v18  ;;  %v3295_v55 = vadd.f32 %v8937_v5, %v3265_v23  ;;  %vm3320_vm5 = vcmp.ge.f32.partialorder %v3292_v21, 0.0  ;;  %v5990_v0 = vld [vmem:[%s9198_s4 + $0x2c8] sm:$0xff]  ;;  %v5965_v18 = vld [vmem:[%s9198_s4 + $0x200] sm:$0xff] }
 0x68a   :  { %v3940_v17 = vpack.c.b16 %v3938_v7, %v3936_v57  ;;  %v3941_v20 = vpack.c.b16 %v3939_v52, %v3937_v47  ;;  %v3348_v42 = vmul.f32 0.01, %v3292_v21  ;;  %v3268_v62 = vmul.f32 %v8906_v16, %v8614_v22  ;;  %v5973_v23 = vld [vmem:[%s9198_s4 + $0x240] sm:$0xff] }
 0x68b   :  { %vm3321_vm7 = vcmp.ge.f32.partialorder %v3293_v26, 0.0  ;;  %vm3322_vm9 = vcmp.ge.f32.partialorder %v3294_v29, 0.0  ;;  %vm3323_vm3 = vcmp.ge.f32.partialorder %v3295_v55, 0.0  ;;  %v3349_v46 = vmul.f32 0.01, %v3293_v26  ;;  %v5981_v7 = vld [vmem:[%s9198_s4 + $0x280] sm:$0xff] }
 0x68c   :  { %4379 = vmatpush.bf16.msra.mxu2 %v5985_v4  ;;  %4393 = vmatpush.bf16.msra.mxu3 %v5993_v2  ;;  %v3350_v31 = vmul.f32 0.01, %v3294_v29  ;;  %v3351_v39 = vmul.f32 0.01, %v3295_v55  ;;  %v3376_v35 = vsel %vm3320_vm5, %v3292_v21, %v3348_v42  ;;  %v3269_v22 = vmul.f32 %v8908_v58, %v8648_v51  ;;  %v6004_v21 = vld [vmem:[%s9198_s4 + $0x338] sm:$0xff]  ;;  %v5989_v47 = vld [vmem:[%s9198_s4 + $0x2c0] sm:$0xff] }
 0x68d   :  { %3880 = vmatmul.bf16.vlgmr.msrb.gmra.mxu0 %v3772_v40  ;;  %3894 = vmatmul.bf16.vlgmr.msrb.gmra.mxu1 %v3773_v60  ;;  %v3377_v12 = vsel %vm3321_vm7, %v3293_v26, %v3349_v46  ;;  %v3296_v49 = vadd.f32 %v8935_v8, %v3266_v37  ;;  %v3297_v10 = vadd.f32 %v8937_v5, %v3267_v41  ;;  %v6012_v37 = vld [vmem:[%s9198_s4 + $0x378] sm:$0xff] }
 0x68e   :  { %4212 = vmatpush.bf16.msra.mxu0 %v5968_v11  ;;  %4226 = vmatpush.bf16.msra.mxu1 %v5976_v32  ;;  %v3378_v13 = vsel %vm3322_vm9, %v3294_v29, %v3350_v31  ;;  %v3379_v51 = vsel %vm3323_vm3, %v3295_v55, %v3351_v39  ;;  %v3298_v54 = vadd.f32 %v8935_v8, %v3268_v62  ;;  %vm4646_vm9 = vcmask 7168  }
 0x68f   :  { %4048 = vmatmul.bf16.vlgmr.msrb.gmra.mxu2 %v3940_v17  ;;  %4062 = vmatmul.bf16.vlgmr.msrb.gmra.mxu3 %v3941_v20  ;;  %v3299_v56 = vadd.f32 %v8937_v5, %v3269_v22  ;;  %vm3324_vm4 = vcmp.ge.f32.partialorder %v3296_v49, 0.0  ;;  %v3396_v44 = vpack.c.bf16 %v3377_v12, %v3376_v35  ;;  %v3352_v50 = vmul.f32 0.01, %v3296_v49  ;;  %v6002_v35 = vld [vmem:[%s9198_s4 + $0x328] sm:$0xff] }
 0x690   :  { %4380 = vmatpush.bf16.msra.mxu2 %v5984_v15  ;;  %4394 = vmatpush.bf16.msra.mxu3 %v5992_v25  ;;  %v3397_v33 = vpack.c.bf16 %v3379_v51, %v3378_v13  ;;  %vm3325_vm6 = vcmp.ge.f32.partialorder %v3297_v10, 0.0  ;;  %vm3326_vm8 = vcmp.ge.f32.partialorder %v3298_v54, 0.0  ;;  %v3353_v38 = vmul.f32 0.01, %v3297_v10  ;;  %v6010_v22 = vld [vmem:[%s9198_s4 + $0x368] sm:$0xff] }
 0x691   :  { %vm3327_vm10 = vcmp.ge.f32.partialorder %v3299_v56, 0.0  ;;  %v3354_v61 = vmul.f32 0.01, %v3298_v54  ;;  %v3355_v40 = vmul.f32 0.01, %v3299_v56  ;;  %v3380_v60 = vsel %vm3324_vm4, %v3296_v49, %v3352_v50  ;;  %v6008_v50 = vld [vmem:[%s9198_s4 + $0x358] sm:$0xff] }
 0x692   :  { %4213 = vmatpush.bf16.msra.mxu0 %v5967_v6  ;;  %4227 = vmatpush.bf16.msra.mxu1 %v5975_v28  ;;  %v3381_v34 = vsel %vm3325_vm6, %v3297_v10, %v3353_v38  ;;  %v4104_v1 = vunpack.c.l.b16 %v3396_v44  ;;  %v4106_v36 = vunpack.c.l.b16 %v3397_v33  ;;  %v4105_v41 = vunpack.c.h.b16 %v3396_v44  ;;  %v6000_v44 = vld [vmem:[%s9198_s4 + $0x318] sm:$0xff]  ;;  %v6006_v38 = vld [vmem:[%s9198_s4 + $0x348] sm:$0xff] }
 0x693   :  { %v3382_v19 = vsel %vm3326_vm8, %v3298_v54, %v3354_v61  ;;  %v3383_v27 = vsel %vm3327_vm10, %v3299_v56, %v3355_v40  ;;  %v3398_v45 = vpack.c.bf16 %v3381_v34, %v3380_v60  ;;  %v4107_v4 = vunpack.c.h.b16 %v3397_v33  ;;  %v6001_v54 = vld [vmem:[%s9198_s4 + $0x320] sm:$0xff]  ;;  %v5998_v33 = vld [vmem:[%s9198_s4 + $0x308] sm:$0xff] }
 0x694   :  { %4381 = vmatpush.bf16.msra.mxu2 %v5983_v24  ;;  %4395 = vmatpush.bf16.msra.mxu3 %v5991_v48  ;;  %v3399_v9 = vpack.c.bf16 %v3383_v27, %v3382_v19  ;;  %v3270_v52 = vmul.f32 %v8906_v16, %v8624_v59  ;;  %v3271_v26 = vmul.f32 %v8908_v58, %v8658_v14  ;;  %v6009_v56 = vld [vmem:[%s9198_s4 + $0x360] sm:$0xff] }
 0x695   :  { %v4272_v2 = vunpack.c.l.b16 %v3398_v45  ;;  %v3272_v29 = vmul.f32 %v8906_v16, %v8652_v3  ;;  %v4108_v55 = vpack.c.b16 %v4106_v36, %v4104_v1  ;;  %v4273_v17 = vunpack.c.h.b16 %v3398_v45  ;;  %v6003_v3 = vld [vmem:[%s9198_s4 + $0x330] sm:$0xff]  ;;  %v5997_v61 = vld [vmem:[%s9198_s4 + $0x300] sm:$0xff] }
 0x696   :  { %4214 = vmatpush.bf16.msra.mxu0 %v5966_v53  ;;  %4228 = vmatpush.bf16.msra.mxu1 %v5974_v63  ;;  %v4274_v57 = vunpack.c.l.b16 %v3399_v9  ;;  %v4275_v20 = vunpack.c.h.b16 %v3399_v9  ;;  %v3273_v11 = vmul.f32 %v8908_v58, %v8671_v30  ;;  %v3300_v32 = vadd.f32 %v8935_v8, %v3270_v52  ;;  %v6011_v30 = vld [vmem:[%s9198_s4 + $0x370] sm:$0xff]  ;;  %v6005_v40 = vld [vmem:[%s9198_s4 + $0x340] sm:$0xff] }
 0x697   :  { %v3301_v42 = vadd.f32 %v8937_v5, %v3271_v26  ;;  %v3302_v59 = vadd.f32 %v8935_v8, %v3272_v29  ;;  %v4109_v14 = vpack.c.b16 %v4107_v4, %v4105_v41  ;;  %v5999_v53 = vld [vmem:[%s9198_s4 + $0x310] sm:$0xff] }
 0x698   :  { %4382 = vmatpush.bf16.msra.mxu2 %v5982_v43  ;;  %4396 = vmatpush.bf16.msra.mxu3 %v5990_v0  ;;  %v4276_v62 = vpack.c.b16 %v4274_v57, %v4272_v2  ;;  %v3303_v16 = vadd.f32 %v8937_v5, %v3273_v11  ;;  %vm3328_vm11 = vcmp.ge.f32.partialorder %v3300_v32, 0.0  ;;  %v3356_v58 = vmul.f32 0.01, %v3300_v32  ;;  %v6007_v63 = vld [vmem:[%s9198_s4 + $0x350] sm:$0xff] }
 0x699   :  { %vm3329_vm12 = vcmp.ge.f32.partialorder %v3301_v42, 0.0  ;;  %vm3330_vm13 = vcmp.ge.f32.partialorder %v3302_v59, 0.0  ;;  %v4277_v8 = vpack.c.b16 %v4275_v20, %v4273_v17  ;;  %v3357_v46 = vmul.f32 0.01, %v3301_v42 }
 0x69a   :  { %4215 = vmatpush.bf16.msra.mxu0 %v5965_v18  ;;  %4229 = vmatpush.bf16.msra.mxu1 %v5973_v23  ;;  %vm3331_vm14 = vcmp.ge.f32.partialorder %v3303_v16, 0.0  ;;  %v3358_v15 = vmul.f32 0.01, %v3302_v59  ;;  %v3359_v25 = vmul.f32 0.01, %v3303_v16  ;;  %v3384_v31 = vsel %vm3328_vm11, %v3300_v32, %v3356_v58 }
 0x69b   :  { %v3385_v5 = vsel %vm3329_vm12, %v3301_v42, %v3357_v46 }
 0x69c   :  { %4383 = vmatpush.bf16.msra.mxu2 %v5981_v7  ;;  %4397 = vmatpush.bf16.msra.mxu3 %v5989_v47  ;;  %v3386_v39 = vsel %vm3330_vm13, %v3302_v59, %v3358_v15  ;;  %v3387_v12 = vsel %vm3331_vm14, %v3303_v16, %v3359_v25  ;;  %v3400_v49 = vpack.c.bf16 %v3385_v5, %v3384_v31 }
 0x69d   :  { %4216 = vmatmul.bf16.vlgmr.msra.gmra.mxu0 %v4108_v55  ;;  %4230 = vmatmul.bf16.vlgmr.msra.gmra.mxu1 %v4109_v14  ;;  %v3401_v10 = vpack.c.bf16 %v3387_v12, %v3386_v39  ;;  %v6048_v14 = vmov 16.0  }
 0x69e   :  { %4544 = vmatpush.bf16.msrb.mxu0 %v6004_v21  ;;  %4558 = vmatpush.bf16.msrb.mxu1 %v6012_v37  ;;  %v4440_v6 = vunpack.c.l.b16 %v3400_v49  ;;  %v4441_v28 = vunpack.c.h.b16 %v3400_v49  ;;  %6034 = vrcp.f32 %v6048_v14 }
 0x69f   :  { %4384 = vmatmul.bf16.vlgmr.msra.gmra.mxu2 %v4276_v62  ;;  %4398 = vmatmul.bf16.vlgmr.msra.gmra.mxu3 %v4277_v8  ;;  %v4442_v13 = vunpack.c.l.b16 %v3401_v10  ;;  %v4443_v51 = vunpack.c.h.b16 %v3401_v10 }
 0x6a1   :  { %v4444_v24 = vpack.c.b16 %v4442_v13, %v4440_v6  ;;  %v4445_v48 = vpack.c.b16 %v4443_v51, %v4441_v28 }
 0x6a2   :  { %4545 = vmatpush.bf16.msrb.mxu0 %v6003_v3  ;;  %4559 = vmatpush.bf16.msrb.mxu1 %v6011_v30 }
 0x6a6   :  { %4546 = vmatpush.bf16.msrb.mxu0 %v6002_v35  ;;  %4560 = vmatpush.bf16.msrb.mxu1 %v6010_v22  ;;  %v6035_v35 = vpop.eup %6034 }
 0x6a7   :  { %vm4586_vm15 = vweird.f32 %v6035_v35 }
 0x6aa   :  { %4547 = vmatpush.bf16.msrb.mxu0 %v6001_v54  ;;  %4561 = vmatpush.bf16.msrb.mxu1 %v6009_v56  ;;  %v4582_v54 = vmul.f32 16.0, %v6035_v35 }
 0x6ae   :  { %4548 = vmatpush.bf16.msrb.mxu0 %v6000_v44  ;;  %4562 = vmatpush.bf16.msrb.mxu1 %v6008_v50  ;;  %v4583_v50 = vsub.f32 1.0, %v4582_v54 }
 0x6b2   :  { %4549 = vmatpush.bf16.msrb.mxu0 %v5999_v53  ;;  %4563 = vmatpush.bf16.msrb.mxu1 %v6007_v63 }
 0x6b6   :  { %4550 = vmatpush.bf16.msrb.mxu0 %v5998_v33  ;;  %4564 = vmatpush.bf16.msrb.mxu1 %v6006_v38 }
 0x6ba   :  { %4551 = vmatpush.bf16.msrb.mxu0 %v5997_v61  ;;  %4565 = vmatpush.bf16.msrb.mxu1 %v6005_v40  ;;  %v4584_v40 = vmul.f32 %v6035_v35, %v4583_v50 }
 0x6bd   :  { %4552 = vmatmul.bf16.vlgmr.msrb.gmra.mxu0 %v4444_v24  ;;  %4566 = vmatmul.bf16.vlgmr.msrb.gmra.mxu1 %v4445_v48 }
 0x6f9   :  { %v3581_v60 = vpop.f32.mrf.mxu0  ;;  %v3595_v43 = vpop.f32.mrf.mxu1 }
 0x6fa   :  { %v3596_v29 = vadd.f32 %v3595_v43, %v3581_v60 }
 0x701   :  { %v3583_v19 = vpop.f32.mrf.mxu0  ;;  %v3597_v27 = vpop.f32.mrf.mxu1 }
 0x702   :  { %v3715_v0 = vpop.f32.mrf.mxu2  ;;  %v3729_v34 = vpop.f32.mrf.mxu3  ;;  %v3598_v17 = vadd.f32 %v3597_v27, %v3583_v19  ;;  %v4585_v19 = vadd.f32 %v6035_v35, %v4584_v40 }
 0x703   :  { %v3716_v55 = vadd.f32 %v3715_v0, %v3596_v29 }
 0x705   :  { %v3730_v32 = vadd.f32 %v3729_v34, %v3716_v55 }
 0x70a   :  { %v3717_v1 = vpop.f32.mrf.mxu2  ;;  %v3731_v36 = vpop.f32.mrf.mxu3 }
 0x70b   :  { %v3881_v45 = vpop.f32.mrf.mxu0  ;;  %v3895_v9 = vpop.f32.mrf.mxu1  ;;  %v3718_v20 = vadd.f32 %v3717_v1, %v3598_v17 }
 0x70c   :  { %v3896_v11 = vadd.f32 %v3895_v9, %v3881_v45  ;;  %v4587_v9 = vsel %vm4586_vm15, %v6035_v35, %v4585_v19 }
 0x70d   :  { %v3732_v16 = vadd.f32 %v3731_v36, %v3718_v20 }
 0x70e   :  { %v3900_v30 = vadd.f32 %v3896_v11, %v3730_v32  ;;  %v4613_v11 = vld [vmem:[%s9202_s7] sm:$0x1] }
 0x712   :  { %v4049_v18 = vpop.f32.mrf.mxu2  ;;  %v4063_v23 = vpop.f32.mrf.mxu3 }
 0x713   :  { %v3883_v21 = vpop.f32.mrf.mxu0  ;;  %v3897_v37 = vpop.f32.mrf.mxu1  ;;  %v4064_v42 = vadd.f32 %v4063_v23, %v4049_v18 }
 0x714   :  { %v3898_v59 = vadd.f32 %v3897_v37, %v3883_v21 }
 0x715   :  { %v4068_v25 = vadd.f32 %v4064_v42, %v3900_v30 }
 0x716   :  { %v3901_v31 = vadd.f32 %v3898_v59, %v3732_v16  ;;  %v4615_v59 = vld [vmem:[%s9202_s7 + $0x1] sm:$0x1] }
 0x71a   :  { %v4051_v41 = vpop.f32.mrf.mxu2  ;;  %v4065_v4 = vpop.f32.mrf.mxu3 }
 0x71b   :  { %v4217_v2 = vpop.f32.mrf.mxu0  ;;  %v4231_v57 = vpop.f32.mrf.mxu1  ;;  %v4066_v58 = vadd.f32 %v4065_v4, %v4051_v41 }
 0x71c   :  { %v4232_v8 = vadd.f32 %v4231_v57, %v4217_v2 }
 0x71d   :  { %v4069_v22 = vadd.f32 %v4066_v58, %v3901_v31 }
 0x71e   :  { %v4236_v12 = vadd.f32 %v4232_v8, %v4068_v25 }
 0x722   :  { %v4385_v7 = vpop.f32.mrf.mxu2  ;;  %v4399_v47 = vpop.f32.mrf.mxu3 }
 0x723   :  { %v4219_v52 = vpop.f32.mrf.mxu0  ;;  %v4233_v26 = vpop.f32.mrf.mxu1  ;;  %v4400_v5 = vadd.f32 %v4399_v47, %v4385_v7  ;;  %v15_v47 = vstv %s9201_s9 }
 0x724   :  { %v4234_v39 = vadd.f32 %v4233_v26, %v4219_v52  ;;  %16 = vst [vmem:[#allocation2] sm:$0x1] %v15_v47 }
 0x725   :  { %v4404_v6 = vadd.f32 %v4400_v5, %v4236_v12 }
 0x726   :  { %v4237_v28 = vadd.f32 %v4234_v39, %v4069_v22 }
 0x72a   :  { %v4387_v46 = vpop.f32.mrf.mxu2  ;;  %v4401_v15 = vpop.f32.mrf.mxu3 }
 0x72b   :  { %v4402_v49 = vadd.f32 %v4401_v15, %v4387_v46  ;;  %v6024_v15 = vld [vmem:[%s9200_s8] ss:$0 sm:$0xff] }
 0x72c   :  { %v6025_v12 = vld [vmem:[#allocation2] ss:$0 sm:$0xff] }
 0x72d   :  { %v4405_v56 = vadd.f32 %v4402_v49, %v4237_v28 }
 0x73a   :  { %v4553_v62 = vpop.f32.mrf.mxu0  ;;  %v4567_v3 = vpop.f32.mrf.mxu1 }
 0x73b   :  { %v4568_v10 = vadd.f32 %v4567_v3, %v4553_v62 }
 0x73d   :  { %v4572_v24 = vadd.f32 %v4568_v10, %v4404_v6 }
 0x73f   :  { %v4589_v53 = vmul.f32 %v4572_v24, %v4572_v24 }
 0x742   :  { %v4555_v13 = vpop.f32.mrf.mxu0  ;;  %v4569_v51 = vpop.f32.mrf.mxu1 }
 0x743   :  { %v4570_v48 = vadd.f32 %v4569_v51, %v4555_v13 }
 0x745   :  { %v4573_v44 = vadd.f32 %v4570_v48, %v4405_v56 }
 0x747   :  { %v4574_v63 = vadd.f32 %v4573_v44, %v4572_v24  ;;  %v4590_v33 = vmul.f32 %v4573_v44, %v4573_v44 }
 0x749   :  { %v4575_v38 = vrot.slane %v4574_v63, 4  ;;  %v4591_v61 = vadd.f32 %v4590_v33, %v4589_v53 }
 0x74b   :  { %v4576_v60 = vadd.f32 %v4575_v38, %v4574_v63  ;;  %v4592_v43 = vrot.slane %v4591_v61, 4 }
 0x74d   :  { %v4577_v0 = vrot.slane %v4576_v60, 2  ;;  %v4593_v34 = vadd.f32 %v4592_v43, %v4591_v61 }
 0x74f   :  { %v4578_v27 = vadd.f32 %v4577_v0, %v4576_v60  ;;  %v4594_v1 = vrot.slane %v4593_v34, 2 }
 0x751   :  { %v4579_v36 = vrot.slane %v4578_v27, 1  ;;  %v4595_v45 = vadd.f32 %v4594_v1, %v4593_v34 }
 0x753   :  { %v4580_v18 = vadd.f32 %v4579_v36, %v4578_v27  ;;  %v4596_v23 = vrot.slane %v4595_v45, 1 }
 0x755   :  { %v4588_v21 = vmul.f32 %v4587_v9, %v4580_v18  ;;  %v4597_v37 = vadd.f32 %v4596_v23, %v4595_v45 }
 0x757   :  { %v4598_v41 = vmul.f32 %v4597_v37, %v4587_v9  ;;  %v4599_v4 = vmul.f32 %v4588_v21, %v4588_v21 }
 0x759   :  { %v4600_v2 = vsub.f32 %v4598_v41, %v4599_v4 }
 0x75b   :  { %v4601_v57 = vmax.f32 %v4600_v2, 0.0 }
 0x75d   :  { %v4602_v7 = vadd.f32 1e-05, %v4601_v57 }
 0x75f   :  { %6036 = vrsqrt.f32 %v4602_v7  ;;  %vm4609_vm1 = vweird.f32 %v4602_v7 }
 0x765   :  { %v6037_v52 = vpop.eup %6036 }
 0x766   :  { %v4604_v26 = vmul.f32 %v6037_v52, %v4602_v7  ;;  %vm4610_vm0 = vweird.f32 %v6037_v52 }
 0x767   :  { %vm4611_vm2 = vmor %vm4609_vm1, %vm4610_vm0 }
 0x768   :  { %v4605_v29 = vmul.f32 %v6037_v52, %v4604_v26 }
 0x76a   :  { %v4606_v55 = vmul.f32 0.5, %v4605_v29 }
 0x76c   :  { %v4607_v17 = vsub.f32 1.5, %v4606_v55 }
 0x76e   :  { %v4608_v20 = vmul.f32 %v6037_v52, %v4607_v17 }
 0x770   :  { %v4612_v32 = vsel %vm4611_vm2, %v6037_v52, %v4608_v20 }
 0x771   :  { %v4614_v42 = vmul.f32 %v4613_v11, %v4612_v32 }
 0x773   :  { %v4618_v14 = vperm.slane %v4614_v42, 0  ;;  %v4616_v62 = vmul.f32 %v4614_v42, %v4588_v21 }
 0x775   :  { %v4617_v3 = vsub.f32 %v4615_v59, %v4616_v62  ;;  %v4620_v16 = vmul.f32 %v4618_v14, %v4573_v44  ;;  %v4619_v58 = vmul.f32 %v4618_v14, %v4572_v24 }
 0x777   :  { %v4621_v30 = vperm.slane %v4617_v3, 0 }
 0x779   :  { %v4623_v8 = vadd.f32 %v4621_v30, %v4620_v16  ;;  %v4622_v46 = vadd.f32 %v4621_v30, %v4619_v58 }
 0x77b   :  { %vm4625_vm5 = vcmp.ge.f32.partialorder %v4623_v8, 0.0  ;;  %v4627_v25 = vmul.f32 0.01, %v4623_v8  ;;  %vm4624_vm7 = vcmp.ge.f32.partialorder %v4622_v46, 0.0  ;;  %v4626_v31 = vmul.f32 0.01, %v4622_v46 }
 0x77d   :  { %v4629_v5 = vsel %vm4625_vm5, %v4623_v8, %v4627_v25  ;;  %v4628_v39 = vsel %vm4624_vm7, %v4622_v46, %v4626_v31 }
 0x77e   :  { %v4635_v35 = vmul.f32 %v6024_v15, %v4629_v5  ;;  %v4634_v22 = vmul.f32 %v6024_v15, %v4628_v39 }
 0x780   :  { %4638 = vadd.xlane.f32.xlu1 %v4635_v35  ;;  %4636 = vadd.xlane.f32.xlu0 %v4634_v22 }
 0x7f3   :  { %v4639_v49 = vpop.xlane.xlu1 %4638  ;;  %v4637_v10 = vpop.xlane.xlu0 %4636 }
 0x7f4   :  { %v4645_v6 = vadd.f32 %v6025_v12, %v4639_v49  ;;  %v4644_v28 = vadd.f32 %v6025_v12, %v4637_v10 }
 0x7f6   :  { %4648 = vst.msk [vmem:[%s9203_s10 + $0x8] sm:$0xff] %vm4646_vm9, %v4645_v6 }
 0x7f7   :  { %4647 = vst.msk [vmem:[%s9203_s10] sm:$0xff] %vm4646_vm9, %v4644_v28 }

</bundles_post_ra>
